<compile_context>
chip_gen: v7x
topology: tpu7x:2x2x1
jax: 0.10.0
libtpu: 0.0.40
codegen_flags: <defaults>
</compile_context>

<pallas_src>
import functools

import jax
import jax.numpy as jnp
from jax.experimental import pallas as pl
from jax.experimental.pallas import tpu as pltpu


# ----------------------------------------------------------------------------
# Fused MV2 block kernel
# ----------------------------------------------------------------------------
def _mv2_fused_kernel(*refs, stride, tro, w_true, wo, h_true,
                      use_expand, use_res, use_sel):
    """One grid step = one (batch, output-row-tile) block of the MV2 block."""
    i = 0
    xh_ref = refs[i]; i += 1
    if use_expand:
        w1_ref, s1_ref, b1_ref = refs[i:i + 3]; i += 3
    wdw_ref, sdw_ref, bdw_ref = refs[i:i + 3]; i += 3
    w2_ref, s2_ref, b2_ref = refs[i:i + 3]; i += 3
    sel_ref = None
    if use_sel:
        sel_ref = refs[i]; i += 1
    res_ref = None
    if use_res:
        res_ref = refs[i]; i += 1
    o_ref, hid_ref, dw_ref = refs[i], refs[i + 1], refs[i + 2]

    r = pl.program_id(1)
    _, _, tri, wp, cin = xh_ref.shape
    chid = hid_ref.shape[-1]

    # ---- 1x1 expand + BN + SiLU (bf16 on the MXU, f32 accumulation) --------
    if use_expand:
        x = xh_ref[0, 0].reshape(tri * wp, cin)
        h = jnp.dot(x.astype(jnp.bfloat16), w1_ref[...],
                    preferred_element_type=jnp.float32)
        h = h * s1_ref[...] + b1_ref[...]
        h = h * jax.nn.sigmoid(h)                       # SiLU, f32
        h = h.reshape(tri, wp, chid)
        # The depthwise conv sees a zero-padded hidden map.  Positions of this
        # tile that came from spatial padding must therefore be forced to 0
        # (the affine bias + SiLU would otherwise make them non-zero).
        row0 = r * (tri - 2)                            # tile start (padded coords)
        gr = row0 + jax.lax.broadcasted_iota(jnp.int32, (tri, wp, chid), 0)
        gc = jax.lax.broadcasted_iota(jnp.int32, (tri, wp, chid), 1)
        valid = (gr >= 1) & (gr <= h_true) & (gc >= 1) & (gc <= w_true)
        hid_ref[...] = jnp.where(valid, h, 0.0)
    else:
        # expansion == 1: depthwise is applied directly to the (zero-padded)
        # block input, which is already correctly zero at padded positions.
        hid_ref[...] = xh_ref[0, 0]

    # ---- 3x3 depthwise + BN + SiLU (VPU, f32), dense over input columns ----
    for oy in range(tro):                               # static unroll
        acc = jnp.zeros((w_true, chid), jnp.float32)
        for k in range(9):
            dy, dx = divmod(k, 3)
            tap = hid_ref[dy + stride * oy, pl.ds(dx, w_true), :]
            acc = acc + tap * wdw_ref[pl.ds(k, 1), :]
        d = acc * sdw_ref[...] + bdw_ref[...]
        dw_ref[pl.ds(oy * w_true, w_true), :] = d * jax.nn.sigmoid(d)

    # ---- stride-2 column subsample folded into a 0/1 selection matmul ------
    d_all = dw_ref[...]
    if use_sel:
        d_all = jnp.dot(sel_ref[...], d_all, preferred_element_type=jnp.float32)

    # ---- 1x1 projection + BN (bf16 MXU, f32 epilogue), optional residual ---
    y = jnp.dot(d_all.astype(jnp.bfloat16), w2_ref[...],
                preferred_element_type=jnp.float32)
    y = y * s2_ref[...] + b2_ref[...]
    y = y.reshape(tro, wo, -1)
    if use_res:
        y = y + res_ref[0]
    o_ref[0] = y.astype(o_ref.dtype)


def _pick_row_tile(ho, target=8):
    t = min(ho, target)
    while ho % t:
        t -= 1
    return t


def mv2_block_forward(x_nchw, params, stride):
    """MV2Block forward (eval mode, BatchNorm folded), NCHW in / NCHW out."""
    assert stride in (1, 2)
    x = jnp.transpose(x_nchw, (0, 2, 3, 1)).astype(jnp.float32)   # NCHW -> NHWC
    B, H, W, Cin = x.shape
    use_expand = "w1" in params
    Chid = params["wdw"].shape[1]
    Cout = params["w2"].shape[1]
    Ho = (H - 1) // stride + 1
    Wo = (W - 1) // stride + 1
    use_res = (stride == 1 and Cin == Cout)
    use_sel = (stride != 1)

    TRo = _pick_row_tile(Ho, 8)          # output rows per grid step
    R = Ho // TRo
    TRi = TRo * stride + 2               # input rows per step (incl. halo)
    Wp = W + 2
    pad_bottom = Ho * stride + 1 - H     # >= 1 (handles odd H at stride 2)

    xp = jnp.pad(x, ((0, 0), (1, pad_bottom), (1, 1), (0, 0)))
    # Row tiles with a one-row halo on each side (tiny duplication; replaces
    # the 9x im2col tensor of the previous version).
    xh = jnp.stack(
        [jax.lax.slice_in_dim(xp, r * TRo * stride, r * TRo * stride + TRi,
                              axis=1) for r in range(R)],
        axis=1)                                           # (B, R, TRi, Wp, Cin)

    def vec(v):                                           # per-channel rows
        return v.reshape(1, -1).astype(jnp.float32)

    in_specs = [pl.BlockSpec((1, 1, TRi, Wp, Cin), lambda b, r: (b, r, 0, 0, 0))]
    operands = [xh]
    if use_expand:
        in_specs += [pl.BlockSpec((Cin, Chid), lambda b, r: (0, 0)),
                     pl.BlockSpec((1, Chid), lambda b, r: (0, 0)),
                     pl.BlockSpec((1, Chid), lambda b, r: (0, 0))]
        operands += [params["w1"].astype(jnp.bfloat16),
                     vec(params["s1"]), vec(params["b1"])]
    in_specs += [pl.BlockSpec((9, Chid), lambda b, r: (0, 0)),
                 pl.BlockSpec((1, Chid), lambda b, r: (0, 0)),
                 pl.BlockSpec((1, Chid), lambda b, r: (0, 0)),
                 pl.BlockSpec((Chid, Cout), lambda b, r: (0, 0)),
                 pl.BlockSpec((1, Cout), lambda b, r: (0, 0)),
                 pl.BlockSpec((1, Cout), lambda b, r: (0, 0))]
    operands += [params["wdw"].astype(jnp.float32),
                 vec(params["sdw"]), vec(params["bdw"]),
                 params["w2"].astype(jnp.bfloat16),
                 vec(params["s2"]), vec(params["b2"])]
    if use_sel:
        ri = jnp.arange(TRo * Wo)
        tgt = (ri // Wo) * W + (ri % Wo) * stride
        sel = (jnp.arange(TRo * W)[None, :] == tgt[:, None]).astype(jnp.float32)
        in_specs.append(pl.BlockSpec((TRo * Wo, TRo * W), lambda b, r: (0, 0)))
        operands.append(sel)
    if use_res:
        in_specs.append(pl.BlockSpec((1, TRo, Wo, Cin), lambda b, r: (b, r, 0, 0)))
        operands.append(x)

    # Explicit VMEM budget from the chosen block sizes (double-buffered tiles
    # + scratch + weights), clamped to stay valid on v5e/v6e/v7x.
    f32 = 4
    need = (2 * (TRi * Wp * Cin + TRo * Wo * Cout
                 + (TRo * Wo * Cin if use_res else 0)) * f32
            + (TRi * Wp * Chid + TRo * W * Chid) * f32
            + 2 * (Cin * Chid * 2 + Chid * Cout * 2 + 20 * Chid * f32
                   + 6 * Cout * f32
                   + (TRo * Wo * TRo * W * f32 if use_sel else 0)))
    vmem_limit = int(min(64 * 1024 * 1024, max(8 * 1024 * 1024, 2 * need)))

    kern = functools.partial(
        _mv2_fused_kernel, stride=stride, tro=TRo, w_true=W, wo=Wo, h_true=H,
        use_expand=use_expand, use_res=use_res, use_sel=use_sel)

    out = pl.pallas_call(
        kern,
        out_shape=jax.ShapeDtypeStruct((B, Ho, Wo, Cout), jnp.float32),
        grid=(B, R),
        in_specs=in_specs,
        out_specs=pl.BlockSpec((1, TRo, Wo, Cout), lambda b, r: (b, r, 0, 0)),
        scratch_shapes=[pltpu.VMEM((TRi, Wp, Chid), jnp.float32),
                        pltpu.VMEM((TRo * W, Chid), jnp.float32)],
        compiler_params=pltpu.CompilerParams(
            dimension_semantics=("parallel", "parallel"),
            vmem_limit_bytes=vmem_limit),
    )(*operands)
    return jnp.transpose(out, (0, 3, 1, 2))               # NHWC -> NCHW


# ----------------------------------------------------------------------------
# Pure-JAX reference (same math, f32) and deterministic parameters
# ----------------------------------------------------------------------------
def mv2_block_reference(x_nhwc, params, stride):
    p = {k: v.astype(jnp.float32) for k, v in params.items()}
    h = x_nhwc
    if "w1" in p:
        h = jnp.einsum("bhwc,cd->bhwd", x_nhwc, p["w1"]) * p["s1"] + p["b1"]
        h = h * jax.nn.sigmoid(h)
    B, H, W, _ = x_nhwc.shape
    Ho = (H - 1) // stride + 1
    Wo = (W - 1) // stride + 1
    hp = jnp.pad(h, ((0, 0), (1, 1), (1, 1), (0, 0)))
    acc = jnp.zeros((B, Ho, Wo, h.shape[-1]), jnp.float32)
    for k in range(9):
        dy, dx = divmod(k, 3)
        tap = hp[:, dy:dy + (Ho - 1) * stride + 1:stride,
                 dx:dx + (Wo - 1) * stride + 1:stride, :]
        acc = acc + tap * p["wdw"][k]
    d = acc * p["sdw"] + p["bdw"]
    d = d * jax.nn.sigmoid(d)
    y = jnp.einsum("bhwc,cd->bhwd", d, p["w2"]) * p["s2"] + p["b2"]
    if stride == 1 and x_nhwc.shape[-1] == y.shape[-1]:
        y = y + x_nhwc
    return y


def _bn_fold(key, c):
    k1, k2, k3, k4 = jax.random.split(key, 4)
    gamma = 1.0 + 0.1 * jax.random.normal(k1, (c,), jnp.float32)
    beta = 0.1 * jax.random.normal(k2, (c,), jnp.float32)
    mean = 0.1 * jax.random.normal(k3, (c,), jnp.float32)
    var = 1.0 + jnp.abs(0.1 * jax.random.normal(k4, (c,), jnp.float32))
    scale = gamma / jnp.sqrt(var + 1e-5)
    bias = beta - mean * scale
    return scale, bias


def make_mv2_params(key, inp, oup, expansion):
    hidden = int(inp * expansion)
    ks = jax.random.split(key, 6)
    p = {}
    if expansion != 1:
        p["w1"] = 0.05 * jax.random.normal(ks[0], (inp, hidden), jnp.float32)
        p["s1"], p["b1"] = _bn_fold(ks[1], hidden)
    p["wdw"] = 0.2 * jax.random.normal(ks[2], (9, hidden), jnp.float32)
    p["sdw"], p["bdw"] = _bn_fold(ks[3], hidden)
    p["w2"] = 0.05 * jax.random.normal(ks[4], (hidden, oup), jnp.float32)
    p["s2"], p["b2"] = _bn_fold(ks[5], oup)
    return p


if __name__ == "__main__":
    key = jax.random.PRNGKey(0)
    kx, kp1, kp2, kp3 = jax.random.split(key, 4)
    x_nchw = jax.random.normal(kx, (2, 16, 16, 16), jnp.float32)

    configs = [
        # (inp, oup, stride, expansion)
        (16, 16, 1, 4),   # residual branch (stride=1, inp == oup)
        (16, 24, 2, 4),   # down-sampling branch
        (16, 16, 1, 1),   # expansion == 1 variant (no pointwise expand)
    ]
    for (inp, oup, stride, expansion), pk in zip(configs, (kp1, kp2, kp3)):
        params = make_mv2_params(pk, inp, oup, expansion)
        fwd = jax.jit(functools.partial(mv2_block_forward, stride=stride))
        out = jax.block_until_ready(fwd(x_nchw, params))

        ho = (16 - 1) // stride + 1
        assert out.shape == (2, oup, ho, ho), out.shape
        assert bool(jnp.all(jnp.isfinite(out)))

        ref = mv2_block_reference(jnp.transpose(x_nchw, (0, 2, 3, 1)),
                                  params, stride)
        ref = jnp.transpose(ref, (0, 3, 1, 2))
        err = float(jnp.max(jnp.abs(out - ref)))
        assert err < 2e-2, f"max abs error {err}"

    print("KERNEL_OK")
</pallas_src>

<mosaic_0001>
module attributes {stable_mosaic.version = 11 : i64} {
  func.func @_mv2_fused_kernel(%arg0: i32, %arg1: i32, %arg2: memref<1x1x10x18x16xf32, #tpu.memory_space<vmem>>, %arg3: memref<16x64xbf16, #tpu.memory_space<vmem>>, %arg4: memref<1x64xf32, #tpu.memory_space<vmem>>, %arg5: memref<1x64xf32, #tpu.memory_space<vmem>>, %arg6: memref<9x64xf32, #tpu.memory_space<vmem>>, %arg7: memref<1x64xf32, #tpu.memory_space<vmem>>, %arg8: memref<1x64xf32, #tpu.memory_space<vmem>>, %arg9: memref<64x16xbf16, #tpu.memory_space<vmem>>, %arg10: memref<1x16xf32, #tpu.memory_space<vmem>>, %arg11: memref<1x16xf32, #tpu.memory_space<vmem>>, %arg12: memref<1x8x16x16xf32, #tpu.memory_space<vmem>>, %arg13: memref<1x8x16x16xf32, #tpu.memory_space<vmem>>, %arg14: memref<10x18x64xf32, #tpu.memory_space<vmem>>, %arg15: memref<128x64xf32, #tpu.memory_space<vmem>>) attributes {dimension_semantics = [#tpu.dimension_semantics<parallel>, #tpu.dimension_semantics<parallel>], iteration_bounds = array<i64: 2, 2>, scalar_prefetch = 0 : i64, scratch_operands = 2 : i64, tpu.core_type = #tpu.core_type<tc>, window_params = [{transform_indices = @transform_0, window_bounds = array<i64: 1, 1, 10, 18, 16>}, {pipeline_mode = #tpu.pipeline_mode<synchronous>, transform_indices = @transform_1, window_bounds = array<i64: 16, 64>}, {pipeline_mode = #tpu.pipeline_mode<synchronous>, transform_indices = @transform_2, window_bounds = array<i64: 1, 64>}, {pipeline_mode = #tpu.pipeline_mode<synchronous>, transform_indices = @transform_3, window_bounds = array<i64: 1, 64>}, {pipeline_mode = #tpu.pipeline_mode<synchronous>, transform_indices = @transform_4, window_bounds = array<i64: 9, 64>}, {pipeline_mode = #tpu.pipeline_mode<synchronous>, transform_indices = @transform_5, window_bounds = array<i64: 1, 64>}, {pipeline_mode = #tpu.pipeline_mode<synchronous>, transform_indices = @transform_6, window_bounds = array<i64: 1, 64>}, {pipeline_mode = #tpu.pipeline_mode<synchronous>, transform_indices = @transform_7, window_bounds = array<i64: 64, 16>}, {pipeline_mode = #tpu.pipeline_mode<synchronous>, transform_indices = @transform_8, window_bounds = array<i64: 1, 16>}, {pipeline_mode = #tpu.pipeline_mode<synchronous>, transform_indices = @transform_9, window_bounds = array<i64: 1, 16>}, {transform_indices = @transform_10, window_bounds = array<i64: 1, 8, 16, 16>}, {transform_indices = @transform_11, window_bounds = array<i64: 1, 8, 16, 16>}]} {
    %c0 = arith.constant 0 : index
    %c0_0 = arith.constant 0 : index
    %c0_1 = arith.constant 0 : index
    %c0_2 = arith.constant 0 : index
    %c0_3 = arith.constant 0 : index
    %0 = vector.load %arg2[%c0, %c0_0, %c0_1, %c0_2, %c0_3] : memref<1x1x10x18x16xf32, #tpu.memory_space<vmem>>, vector<1x1x10x18x16xf32>
    %1 = vector.shape_cast %0 : vector<1x1x10x18x16xf32> to vector<10x18x16xf32>
    %2 = vector.shape_cast %1 : vector<10x18x16xf32> to vector<180x16xf32>
    %3 = arith.truncf %2 : vector<180x16xf32> to vector<180x16xbf16>
    %c0_4 = arith.constant 0 : index
    %c0_5 = arith.constant 0 : index
    %4 = vector.load %arg3[%c0_4, %c0_5] : memref<16x64xbf16, #tpu.memory_space<vmem>>, vector<16x64xbf16>
    %cst = arith.constant dense<0.000000e+00> : vector<180x64xf32>
    %5 = tpu.matmul %3, %4, %cst {dimension_numbers = #tpu.dot_dimension_numbers<[1], [0], [0], [1], [0, 0, 1, 1], [], []>} : vector<180x16xbf16>, vector<16x64xbf16>, vector<180x64xf32> -> vector<180x64xf32>
    %c0_6 = arith.constant 0 : index
    %c0_7 = arith.constant 0 : index
    %6 = vector.load %arg4[%c0_6, %c0_7] : memref<1x64xf32, #tpu.memory_space<vmem>>, vector<1x64xf32>
    %7 = vector.broadcast %6 : vector<1x64xf32> to vector<180x64xf32>
    %8 = arith.mulf %5, %7 : vector<180x64xf32>
    %c0_8 = arith.constant 0 : index
    %c0_9 = arith.constant 0 : index
    %9 = vector.load %arg5[%c0_8, %c0_9] : memref<1x64xf32, #tpu.memory_space<vmem>>, vector<1x64xf32>
    %10 = vector.broadcast %9 : vector<1x64xf32> to vector<180x64xf32>
    %11 = arith.addf %8, %10 : vector<180x64xf32>
    %12 = arith.negf %11 : vector<180x64xf32>
    %13 = math.exp %12 : vector<180x64xf32>
    %cst_10 = arith.constant 1.000000e+00 : f32
    %14 = vector.broadcast %cst_10 : f32 to vector<180x64xf32>
    %15 = arith.addf %14, %13 : vector<180x64xf32>
    %16 = arith.divf %14, %15 : vector<180x64xf32>
    %17 = arith.mulf %11, %16 : vector<180x64xf32>
    %18 = vector.shape_cast %17 : vector<180x64xf32> to vector<10x18x64xf32>
    %c8_i32 = arith.constant 8 : i32
    %19 = arith.muli %arg1, %c8_i32 : i32
    %20 = tpu.iota {dimensions = array<i32: 0>} : vector<10x18x64xi32>
    %21 = vector.broadcast %19 : i32 to vector<10x18x64xi32>
    %22 = arith.addi %21, %20 : vector<10x18x64xi32>
    %23 = tpu.iota {dimensions = array<i32: 1>} : vector<10x18x64xi32>
    %c1_i32 = arith.constant 1 : i32
    %24 = vector.broadcast %c1_i32 : i32 to vector<10x18x64xi32>
    %25 = arith.cmpi sge, %22, %24 : vector<10x18x64xi32>
    %c16_i32 = arith.constant 16 : i32
    %26 = vector.broadcast %c16_i32 : i32 to vector<10x18x64xi32>
    %27 = arith.cmpi sle, %22, %26 : vector<10x18x64xi32>
    %28 = arith.andi %25, %27 : vector<10x18x64xi1>
    %c1_i32_11 = arith.constant 1 : i32
    %29 = vector.broadcast %c1_i32_11 : i32 to vector<10x18x64xi32>
    %30 = arith.cmpi sge, %23, %29 : vector<10x18x64xi32>
    %31 = arith.andi %28, %30 : vector<10x18x64xi1>
    %c16_i32_12 = arith.constant 16 : i32
    %32 = vector.broadcast %c16_i32_12 : i32 to vector<10x18x64xi32>
    %33 = arith.cmpi sle, %23, %32 : vector<10x18x64xi32>
    %34 = arith.andi %31, %33 : vector<10x18x64xi1>
    %cst_13 = arith.constant 0.000000e+00 : f32
    %35 = vector.broadcast %cst_13 : f32 to vector<10x18x64xf32>
    %36 = arith.select %34, %18, %35 : vector<10x18x64xi1>, vector<10x18x64xf32>
    %c0_14 = arith.constant 0 : index
    %c0_15 = arith.constant 0 : index
    %c0_16 = arith.constant 0 : index
    %37 = vector.load %arg14[%c0_14, %c0_15, %c0_16] : memref<10x18x64xf32, #tpu.memory_space<vmem>>, vector<10x18x64xf32>
    tpu.vector_store %arg14[%c0_14, %c0_15, %c0_16], %36 {strides = array<i32>} : memref<10x18x64xf32, #tpu.memory_space<vmem>>, vector<10x18x64xf32>,
    %cst_17 = arith.constant 0.000000e+00 : f32
    %38 = vector.broadcast %cst_17 : f32 to vector<16x64xf32>
    %c0_18 = arith.constant 0 : index
    %c0_19 = arith.constant 0 : index
    %c0_20 = arith.constant 0 : index
    %39 = vector.load %arg14[%c0_18, %c0_19, %c0_20] : memref<10x18x64xf32, #tpu.memory_space<vmem>>, vector<1x16x64xf32>
    %40 = vector.shape_cast %39 : vector<1x16x64xf32> to vector<16x64xf32>
    %c0_21 = arith.constant 0 : index
    %c0_22 = arith.constant 0 : index
    %41 = vector.load %arg6[%c0_21, %c0_22] : memref<9x64xf32, #tpu.memory_space<vmem>>, vector<1x64xf32>
    %42 = vector.broadcast %41 : vector<1x64xf32> to vector<16x64xf32>
    %43 = arith.mulf %40, %42 : vector<16x64xf32>
    %44 = arith.addf %38, %43 : vector<16x64xf32>
    %c0_23 = arith.constant 0 : index
    %c1 = arith.constant 1 : index
    %c0_24 = arith.constant 0 : index
    %45 = vector.load %arg14[%c0_23, %c1, %c0_24] : memref<10x18x64xf32, #tpu.memory_space<vmem>>, vector<1x16x64xf32>
    %46 = vector.shape_cast %45 : vector<1x16x64xf32> to vector<16x64xf32>
    %c1_25 = arith.constant 1 : index
    %c0_26 = arith.constant 0 : index
    %47 = vector.load %arg6[%c1_25, %c0_26] : memref<9x64xf32, #tpu.memory_space<vmem>>, vector<1x64xf32>
    %48 = vector.broadcast %47 : vector<1x64xf32> to vector<16x64xf32>
    %49 = arith.mulf %46, %48 : vector<16x64xf32>
    %50 = arith.addf %44, %49 : vector<16x64xf32>
    %c0_27 = arith.constant 0 : index
    %c2 = arith.constant 2 : index
    %c0_28 = arith.constant 0 : index
    %51 = vector.load %arg14[%c0_27, %c2, %c0_28] : memref<10x18x64xf32, #tpu.memory_space<vmem>>, vector<1x16x64xf32>
    %52 = vector.shape_cast %51 : vector<1x16x64xf32> to vector<16x64xf32>
    %c2_29 = arith.constant 2 : index
    %c0_30 = arith.constant 0 : index
    %53 = vector.load %arg6[%c2_29, %c0_30] : memref<9x64xf32, #tpu.memory_space<vmem>>, vector<1x64xf32>
    %54 = vector.broadcast %53 : vector<1x64xf32> to vector<16x64xf32>
    %55 = arith.mulf %52, %54 : vector<16x64xf32>
    %56 = arith.addf %50, %55 : vector<16x64xf32>
    %c1_31 = arith.constant 1 : index
    %c0_32 = arith.constant 0 : index
    %c0_33 = arith.constant 0 : index
    %57 = vector.load %arg14[%c1_31, %c0_32, %c0_33] : memref<10x18x64xf32, #tpu.memory_space<vmem>>, vector<1x16x64xf32>
    %58 = vector.shape_cast %57 : vector<1x16x64xf32> to vector<16x64xf32>
    %c3 = arith.constant 3 : index
    %c0_34 = arith.constant 0 : index
    %59 = vector.load %arg6[%c3, %c0_34] : memref<9x64xf32, #tpu.memory_space<vmem>>, vector<1x64xf32>
    %60 = vector.broadcast %59 : vector<1x64xf32> to vector<16x64xf32>
    %61 = arith.mulf %58, %60 : vector<16x64xf32>
    %62 = arith.addf %56, %61 : vector<16x64xf32>
    %c1_35 = arith.constant 1 : index
    %c1_36 = arith.constant 1 : index
    %c0_37 = arith.constant 0 : index
    %63 = vector.load %arg14[%c1_35, %c1_36, %c0_37] : memref<10x18x64xf32, #tpu.memory_space<vmem>>, vector<1x16x64xf32>
    %64 = vector.shape_cast %63 : vector<1x16x64xf32> to vector<16x64xf32>
    %c4 = arith.constant 4 : index
    %c0_38 = arith.constant 0 : index
    %65 = vector.load %arg6[%c4, %c0_38] : memref<9x64xf32, #tpu.memory_space<vmem>>, vector<1x64xf32>
    %66 = vector.broadcast %65 : vector<1x64xf32> to vector<16x64xf32>
    %67 = arith.mulf %64, %66 : vector<16x64xf32>
    %68 = arith.addf %62, %67 : vector<16x64xf32>
    %c1_39 = arith.constant 1 : index
    %c2_40 = arith.constant 2 : index
    %c0_41 = arith.constant 0 : index
    %69 = vector.load %arg14[%c1_39, %c2_40, %c0_41] : memref<10x18x64xf32, #tpu.memory_space<vmem>>, vector<1x16x64xf32>
    %70 = vector.shape_cast %69 : vector<1x16x64xf32> to vector<16x64xf32>
    %c5 = arith.constant 5 : index
    %c0_42 = arith.constant 0 : index
    %71 = vector.load %arg6[%c5, %c0_42] : memref<9x64xf32, #tpu.memory_space<vmem>>, vector<1x64xf32>
    %72 = vector.broadcast %71 : vector<1x64xf32> to vector<16x64xf32>
    %73 = arith.mulf %70, %72 : vector<16x64xf32>
    %74 = arith.addf %68, %73 : vector<16x64xf32>
    %c2_43 = arith.constant 2 : index
    %c0_44 = arith.constant 0 : index
    %c0_45 = arith.constant 0 : index
    %75 = vector.load %arg14[%c2_43, %c0_44, %c0_45] : memref<10x18x64xf32, #tpu.memory_space<vmem>>, vector<1x16x64xf32>
    %76 = vector.shape_cast %75 : vector<1x16x64xf32> to vector<16x64xf32>
    %c6 = arith.constant 6 : index
    %c0_46 = arith.constant 0 : index
    %77 = vector.load %arg6[%c6, %c0_46] : memref<9x64xf32, #tpu.memory_space<vmem>>, vector<1x64xf32>
    %78 = vector.broadcast %77 : vector<1x64xf32> to vector<16x64xf32>
    %79 = arith.mulf %76, %78 : vector<16x64xf32>
    %80 = arith.addf %74, %79 : vector<16x64xf32>
    %c2_47 = arith.constant 2 : index
    %c1_48 = arith.constant 1 : index
    %c0_49 = arith.constant 0 : index
    %81 = vector.load %arg14[%c2_47, %c1_48, %c0_49] : memref<10x18x64xf32, #tpu.memory_space<vmem>>, vector<1x16x64xf32>
    %82 = vector.shape_cast %81 : vector<1x16x64xf32> to vector<16x64xf32>
    %c7 = arith.constant 7 : index
    %c0_50 = arith.constant 0 : index
    %83 = vector.load %arg6[%c7, %c0_50] : memref<9x64xf32, #tpu.memory_space<vmem>>, vector<1x64xf32>
    %84 = vector.broadcast %83 : vector<1x64xf32> to vector<16x64xf32>
    %85 = arith.mulf %82, %84 : vector<16x64xf32>
    %86 = arith.addf %80, %85 : vector<16x64xf32>
    %c2_51 = arith.constant 2 : index
    %c2_52 = arith.constant 2 : index
    %c0_53 = arith.constant 0 : index
    %87 = vector.load %arg14[%c2_51, %c2_52, %c0_53] : memref<10x18x64xf32, #tpu.memory_space<vmem>>, vector<1x16x64xf32>
    %88 = vector.shape_cast %87 : vector<1x16x64xf32> to vector<16x64xf32>
    %c8 = arith.constant 8 : index
    %c0_54 = arith.constant 0 : index
    %89 = vector.load %arg6[%c8, %c0_54] : memref<9x64xf32, #tpu.memory_space<vmem>>, vector<1x64xf32>
    %90 = vector.broadcast %89 : vector<1x64xf32> to vector<16x64xf32>
    %91 = arith.mulf %88, %90 : vector<16x64xf32>
    %92 = arith.addf %86, %91 : vector<16x64xf32>
    %c0_55 = arith.constant 0 : index
    %c0_56 = arith.constant 0 : index
    %93 = vector.load %arg7[%c0_55, %c0_56] : memref<1x64xf32, #tpu.memory_space<vmem>>, vector<1x64xf32>
    %94 = vector.broadcast %93 : vector<1x64xf32> to vector<16x64xf32>
    %95 = arith.mulf %92, %94 : vector<16x64xf32>
    %c0_57 = arith.constant 0 : index
    %c0_58 = arith.constant 0 : index
    %96 = vector.load %arg8[%c0_57, %c0_58] : memref<1x64xf32, #tpu.memory_space<vmem>>, vector<1x64xf32>
    %97 = vector.broadcast %96 : vector<1x64xf32> to vector<16x64xf32>
    %98 = arith.addf %95, %97 : vector<16x64xf32>
    %99 = arith.negf %98 : vector<16x64xf32>
    %100 = math.exp %99 : vector<16x64xf32>
    %cst_59 = arith.constant 1.000000e+00 : f32
    %101 = vector.broadcast %cst_59 : f32 to vector<16x64xf32>
    %102 = arith.addf %101, %100 : vector<16x64xf32>
    %103 = arith.divf %101, %102 : vector<16x64xf32>
    %104 = arith.mulf %98, %103 : vector<16x64xf32>
    %c0_60 = arith.constant 0 : index
    %c0_61 = arith.constant 0 : index
    %105 = vector.load %arg15[%c0_60, %c0_61] : memref<128x64xf32, #tpu.memory_space<vmem>>, vector<16x64xf32>
    tpu.vector_store %arg15[%c0_60, %c0_61], %104 {strides = array<i32>} : memref<128x64xf32, #tpu.memory_space<vmem>>, vector<16x64xf32>,
    %cst_62 = arith.constant 0.000000e+00 : f32
    %106 = vector.broadcast %cst_62 : f32 to vector<16x64xf32>
    %c1_63 = arith.constant 1 : index
    %c0_64 = arith.constant 0 : index
    %c0_65 = arith.constant 0 : index
    %107 = vector.load %arg14[%c1_63, %c0_64, %c0_65] : memref<10x18x64xf32, #tpu.memory_space<vmem>>, vector<1x16x64xf32>
    %108 = vector.shape_cast %107 : vector<1x16x64xf32> to vector<16x64xf32>
    %c0_66 = arith.constant 0 : index
    %c0_67 = arith.constant 0 : index
    %109 = vector.load %arg6[%c0_66, %c0_67] : memref<9x64xf32, #tpu.memory_space<vmem>>, vector<1x64xf32>
    %110 = vector.broadcast %109 : vector<1x64xf32> to vector<16x64xf32>
    %111 = arith.mulf %108, %110 : vector<16x64xf32>
    %112 = arith.addf %106, %111 : vector<16x64xf32>
    %c1_68 = arith.constant 1 : index
    %c1_69 = arith.constant 1 : index
    %c0_70 = arith.constant 0 : index
    %113 = vector.load %arg14[%c1_68, %c1_69, %c0_70] : memref<10x18x64xf32, #tpu.memory_space<vmem>>, vector<1x16x64xf32>
    %114 = vector.shape_cast %113 : vector<1x16x64xf32> to vector<16x64xf32>
    %c1_71 = arith.constant 1 : index
    %c0_72 = arith.constant 0 : index
    %115 = vector.load %arg6[%c1_71, %c0_72] : memref<9x64xf32, #tpu.memory_space<vmem>>, vector<1x64xf32>
    %116 = vector.broadcast %115 : vector<1x64xf32> to vector<16x64xf32>
    %117 = arith.mulf %114, %116 : vector<16x64xf32>
    %118 = arith.addf %112, %117 : vector<16x64xf32>
    %c1_73 = arith.constant 1 : index
    %c2_74 = arith.constant 2 : index
    %c0_75 = arith.constant 0 : index
    %119 = vector.load %arg14[%c1_73, %c2_74, %c0_75] : memref<10x18x64xf32, #tpu.memory_space<vmem>>, vector<1x16x64xf32>
    %120 = vector.shape_cast %119 : vector<1x16x64xf32> to vector<16x64xf32>
    %c2_76 = arith.constant 2 : index
    %c0_77 = arith.constant 0 : index
    %121 = vector.load %arg6[%c2_76, %c0_77] : memref<9x64xf32, #tpu.memory_space<vmem>>, vector<1x64xf32>
    %122 = vector.broadcast %121 : vector<1x64xf32> to vector<16x64xf32>
    %123 = arith.mulf %120, %122 : vector<16x64xf32>
    %124 = arith.addf %118, %123 : vector<16x64xf32>
    %c2_78 = arith.constant 2 : index
    %c0_79 = arith.constant 0 : index
    %c0_80 = arith.constant 0 : index
    %125 = vector.load %arg14[%c2_78, %c0_79, %c0_80] : memref<10x18x64xf32, #tpu.memory_space<vmem>>, vector<1x16x64xf32>
    %126 = vector.shape_cast %125 : vector<1x16x64xf32> to vector<16x64xf32>
    %c3_81 = arith.constant 3 : index
    %c0_82 = arith.constant 0 : index
    %127 = vector.load %arg6[%c3_81, %c0_82] : memref<9x64xf32, #tpu.memory_space<vmem>>, vector<1x64xf32>
    %128 = vector.broadcast %127 : vector<1x64xf32> to vector<16x64xf32>
    %129 = arith.mulf %126, %128 : vector<16x64xf32>
    %130 = arith.addf %124, %129 : vector<16x64xf32>
    %c2_83 = arith.constant 2 : index
    %c1_84 = arith.constant 1 : index
    %c0_85 = arith.constant 0 : index
    %131 = vector.load %arg14[%c2_83, %c1_84, %c0_85] : memref<10x18x64xf32, #tpu.memory_space<vmem>>, vector<1x16x64xf32>
    %132 = vector.shape_cast %131 : vector<1x16x64xf32> to vector<16x64xf32>
    %c4_86 = arith.constant 4 : index
    %c0_87 = arith.constant 0 : index
    %133 = vector.load %arg6[%c4_86, %c0_87] : memref<9x64xf32, #tpu.memory_space<vmem>>, vector<1x64xf32>
    %134 = vector.broadcast %133 : vector<1x64xf32> to vector<16x64xf32>
    %135 = arith.mulf %132, %134 : vector<16x64xf32>
    %136 = arith.addf %130, %135 : vector<16x64xf32>
    %c2_88 = arith.constant 2 : index
    %c2_89 = arith.constant 2 : index
    %c0_90 = arith.constant 0 : index
    %137 = vector.load %arg14[%c2_88, %c2_89, %c0_90] : memref<10x18x64xf32, #tpu.memory_space<vmem>>, vector<1x16x64xf32>
    %138 = vector.shape_cast %137 : vector<1x16x64xf32> to vector<16x64xf32>
    %c5_91 = arith.constant 5 : index
    %c0_92 = arith.constant 0 : index
    %139 = vector.load %arg6[%c5_91, %c0_92] : memref<9x64xf32, #tpu.memory_space<vmem>>, vector<1x64xf32>
    %140 = vector.broadcast %139 : vector<1x64xf32> to vector<16x64xf32>
    %141 = arith.mulf %138, %140 : vector<16x64xf32>
    %142 = arith.addf %136, %141 : vector<16x64xf32>
    %c3_93 = arith.constant 3 : index
    %c0_94 = arith.constant 0 : index
    %c0_95 = arith.constant 0 : index
    %143 = vector.load %arg14[%c3_93, %c0_94, %c0_95] : memref<10x18x64xf32, #tpu.memory_space<vmem>>, vector<1x16x64xf32>
    %144 = vector.shape_cast %143 : vector<1x16x64xf32> to vector<16x64xf32>
    %c6_96 = arith.constant 6 : index
    %c0_97 = arith.constant 0 : index
    %145 = vector.load %arg6[%c6_96, %c0_97] : memref<9x64xf32, #tpu.memory_space<vmem>>, vector<1x64xf32>
    %146 = vector.broadcast %145 : vector<1x64xf32> to vector<16x64xf32>
    %147 = arith.mulf %144, %146 : vector<16x64xf32>
    %148 = arith.addf %142, %147 : vector<16x64xf32>
    %c3_98 = arith.constant 3 : index
    %c1_99 = arith.constant 1 : index
    %c0_100 = arith.constant 0 : index
    %149 = vector.load %arg14[%c3_98, %c1_99, %c0_100] : memref<10x18x64xf32, #tpu.memory_space<vmem>>, vector<1x16x64xf32>
    %150 = vector.shape_cast %149 : vector<1x16x64xf32> to vector<16x64xf32>
    %c7_101 = arith.constant 7 : index
    %c0_102 = arith.constant 0 : index
    %151 = vector.load %arg6[%c7_101, %c0_102] : memref<9x64xf32, #tpu.memory_space<vmem>>, vector<1x64xf32>
    %152 = vector.broadcast %151 : vector<1x64xf32> to vector<16x64xf32>
    %153 = arith.mulf %150, %152 : vector<16x64xf32>
    %154 = arith.addf %148, %153 : vector<16x64xf32>
    %c3_103 = arith.constant 3 : index
    %c2_104 = arith.constant 2 : index
    %c0_105 = arith.constant 0 : index
    %155 = vector.load %arg14[%c3_103, %c2_104, %c0_105] : memref<10x18x64xf32, #tpu.memory_space<vmem>>, vector<1x16x64xf32>
    %156 = vector.shape_cast %155 : vector<1x16x64xf32> to vector<16x64xf32>
    %c8_106 = arith.constant 8 : index
    %c0_107 = arith.constant 0 : index
    %157 = vector.load %arg6[%c8_106, %c0_107] : memref<9x64xf32, #tpu.memory_space<vmem>>, vector<1x64xf32>
    %158 = vector.broadcast %157 : vector<1x64xf32> to vector<16x64xf32>
    %159 = arith.mulf %156, %158 : vector<16x64xf32>
    %160 = arith.addf %154, %159 : vector<16x64xf32>
    %c0_108 = arith.constant 0 : index
    %c0_109 = arith.constant 0 : index
    %161 = vector.load %arg7[%c0_108, %c0_109] : memref<1x64xf32, #tpu.memory_space<vmem>>, vector<1x64xf32>
    %162 = vector.broadcast %161 : vector<1x64xf32> to vector<16x64xf32>
    %163 = arith.mulf %160, %162 : vector<16x64xf32>
    %c0_110 = arith.constant 0 : index
    %c0_111 = arith.constant 0 : index
    %164 = vector.load %arg8[%c0_110, %c0_111] : memref<1x64xf32, #tpu.memory_space<vmem>>, vector<1x64xf32>
    %165 = vector.broadcast %164 : vector<1x64xf32> to vector<16x64xf32>
    %166 = arith.addf %163, %165 : vector<16x64xf32>
    %167 = arith.negf %166 : vector<16x64xf32>
    %168 = math.exp %167 : vector<16x64xf32>
    %cst_112 = arith.constant 1.000000e+00 : f32
    %169 = vector.broadcast %cst_112 : f32 to vector<16x64xf32>
    %170 = arith.addf %169, %168 : vector<16x64xf32>
    %171 = arith.divf %169, %170 : vector<16x64xf32>
    %172 = arith.mulf %166, %171 : vector<16x64xf32>
    %c16 = arith.constant 16 : index
    %c0_113 = arith.constant 0 : index
    %173 = vector.load %arg15[%c16, %c0_113] : memref<128x64xf32, #tpu.memory_space<vmem>>, vector<16x64xf32>
    tpu.vector_store %arg15[%c16, %c0_113], %172 {strides = array<i32>} : memref<128x64xf32, #tpu.memory_space<vmem>>, vector<16x64xf32>,
    %cst_114 = arith.constant 0.000000e+00 : f32
    %174 = vector.broadcast %cst_114 : f32 to vector<16x64xf32>
    %c2_115 = arith.constant 2 : index
    %c0_116 = arith.constant 0 : index
    %c0_117 = arith.constant 0 : index
    %175 = vector.load %arg14[%c2_115, %c0_116, %c0_117] : memref<10x18x64xf32, #tpu.memory_space<vmem>>, vector<1x16x64xf32>
    %176 = vector.shape_cast %175 : vector<1x16x64xf32> to vector<16x64xf32>
    %c0_118 = arith.constant 0 : index
    %c0_119 = arith.constant 0 : index
    %177 = vector.load %arg6[%c0_118, %c0_119] : memref<9x64xf32, #tpu.memory_space<vmem>>, vector<1x64xf32>
    %178 = vector.broadcast %177 : vector<1x64xf32> to vector<16x64xf32>
    %179 = arith.mulf %176, %178 : vector<16x64xf32>
    %180 = arith.addf %174, %179 : vector<16x64xf32>
    %c2_120 = arith.constant 2 : index
    %c1_121 = arith.constant 1 : index
    %c0_122 = arith.constant 0 : index
    %181 = vector.load %arg14[%c2_120, %c1_121, %c0_122] : memref<10x18x64xf32, #tpu.memory_space<vmem>>, vector<1x16x64xf32>
    %182 = vector.shape_cast %181 : vector<1x16x64xf32> to vector<16x64xf32>
    %c1_123 = arith.constant 1 : index
    %c0_124 = arith.constant 0 : index
    %183 = vector.load %arg6[%c1_123, %c0_124] : memref<9x64xf32, #tpu.memory_space<vmem>>, vector<1x64xf32>
    %184 = vector.broadcast %183 : vector<1x64xf32> to vector<16x64xf32>
    %185 = arith.mulf %182, %184 : vector<16x64xf32>
    %186 = arith.addf %180, %185 : vector<16x64xf32>
    %c2_125 = arith.constant 2 : index
    %c2_126 = arith.constant 2 : index
    %c0_127 = arith.constant 0 : index
    %187 = vector.load %arg14[%c2_125, %c2_126, %c0_127] : memref<10x18x64xf32, #tpu.memory_space<vmem>>, vector<1x16x64xf32>
    %188 = vector.shape_cast %187 : vector<1x16x64xf32> to vector<16x64xf32>
    %c2_128 = arith.constant 2 : index
    %c0_129 = arith.constant 0 : index
    %189 = vector.load %arg6[%c2_128, %c0_129] : memref<9x64xf32, #tpu.memory_space<vmem>>, vector<1x64xf32>
    %190 = vector.broadcast %189 : vector<1x64xf32> to vector<16x64xf32>
    %191 = arith.mulf %188, %190 : vector<16x64xf32>
    %192 = arith.addf %186, %191 : vector<16x64xf32>
    %c3_130 = arith.constant 3 : index
    %c0_131 = arith.constant 0 : index
    %c0_132 = arith.constant 0 : index
    %193 = vector.load %arg14[%c3_130, %c0_131, %c0_132] : memref<10x18x64xf32, #tpu.memory_space<vmem>>, vector<1x16x64xf32>
    %194 = vector.shape_cast %193 : vector<1x16x64xf32> to vector<16x64xf32>
    %c3_133 = arith.constant 3 : index
    %c0_134 = arith.constant 0 : index
    %195 = vector.load %arg6[%c3_133, %c0_134] : memref<9x64xf32, #tpu.memory_space<vmem>>, vector<1x64xf32>
    %196 = vector.broadcast %195 : vector<1x64xf32> to vector<16x64xf32>
    %197 = arith.mulf %194, %196 : vector<16x64xf32>
    %198 = arith.addf %192, %197 : vector<16x64xf32>
    %c3_135 = arith.constant 3 : index
    %c1_136 = arith.constant 1 : index
    %c0_137 = arith.constant 0 : index
    %199 = vector.load %arg14[%c3_135, %c1_136, %c0_137] : memref<10x18x64xf32, #tpu.memory_space<vmem>>, vector<1x16x64xf32>
    %200 = vector.shape_cast %199 : vector<1x16x64xf32> to vector<16x64xf32>
    %c4_138 = arith.constant 4 : index
    %c0_139 = arith.constant 0 : index
    %201 = vector.load %arg6[%c4_138, %c0_139] : memref<9x64xf32, #tpu.memory_space<vmem>>, vector<1x64xf32>
    %202 = vector.broadcast %201 : vector<1x64xf32> to vector<16x64xf32>
    %203 = arith.mulf %200, %202 : vector<16x64xf32>
    %204 = arith.addf %198, %203 : vector<16x64xf32>
    %c3_140 = arith.constant 3 : index
    %c2_141 = arith.constant 2 : index
    %c0_142 = arith.constant 0 : index
    %205 = vector.load %arg14[%c3_140, %c2_141, %c0_142] : memref<10x18x64xf32, #tpu.memory_space<vmem>>, vector<1x16x64xf32>
    %206 = vector.shape_cast %205 : vector<1x16x64xf32> to vector<16x64xf32>
    %c5_143 = arith.constant 5 : index
    %c0_144 = arith.constant 0 : index
    %207 = vector.load %arg6[%c5_143, %c0_144] : memref<9x64xf32, #tpu.memory_space<vmem>>, vector<1x64xf32>
    %208 = vector.broadcast %207 : vector<1x64xf32> to vector<16x64xf32>
    %209 = arith.mulf %206, %208 : vector<16x64xf32>
    %210 = arith.addf %204, %209 : vector<16x64xf32>
    %c4_145 = arith.constant 4 : index
    %c0_146 = arith.constant 0 : index
    %c0_147 = arith.constant 0 : index
    %211 = vector.load %arg14[%c4_145, %c0_146, %c0_147] : memref<10x18x64xf32, #tpu.memory_space<vmem>>, vector<1x16x64xf32>
    %212 = vector.shape_cast %211 : vector<1x16x64xf32> to vector<16x64xf32>
    %c6_148 = arith.constant 6 : index
    %c0_149 = arith.constant 0 : index
    %213 = vector.load %arg6[%c6_148, %c0_149] : memref<9x64xf32, #tpu.memory_space<vmem>>, vector<1x64xf32>
    %214 = vector.broadcast %213 : vector<1x64xf32> to vector<16x64xf32>
    %215 = arith.mulf %212, %214 : vector<16x64xf32>
    %216 = arith.addf %210, %215 : vector<16x64xf32>
    %c4_150 = arith.constant 4 : index
    %c1_151 = arith.constant 1 : index
    %c0_152 = arith.constant 0 : index
    %217 = vector.load %arg14[%c4_150, %c1_151, %c0_152] : memref<10x18x64xf32, #tpu.memory_space<vmem>>, vector<1x16x64xf32>
    %218 = vector.shape_cast %217 : vector<1x16x64xf32> to vector<16x64xf32>
    %c7_153 = arith.constant 7 : index
    %c0_154 = arith.constant 0 : index
    %219 = vector.load %arg6[%c7_153, %c0_154] : memref<9x64xf32, #tpu.memory_space<vmem>>, vector<1x64xf32>
    %220 = vector.broadcast %219 : vector<1x64xf32> to vector<16x64xf32>
    %221 = arith.mulf %218, %220 : vector<16x64xf32>
    %222 = arith.addf %216, %221 : vector<16x64xf32>
    %c4_155 = arith.constant 4 : index
    %c2_156 = arith.constant 2 : index
    %c0_157 = arith.constant 0 : index
    %223 = vector.load %arg14[%c4_155, %c2_156, %c0_157] : memref<10x18x64xf32, #tpu.memory_space<vmem>>, vector<1x16x64xf32>
    %224 = vector.shape_cast %223 : vector<1x16x64xf32> to vector<16x64xf32>
    %c8_158 = arith.constant 8 : index
    %c0_159 = arith.constant 0 : index
    %225 = vector.load %arg6[%c8_158, %c0_159] : memref<9x64xf32, #tpu.memory_space<vmem>>, vector<1x64xf32>
    %226 = vector.broadcast %225 : vector<1x64xf32> to vector<16x64xf32>
    %227 = arith.mulf %224, %226 : vector<16x64xf32>
    %228 = arith.addf %222, %227 : vector<16x64xf32>
    %c0_160 = arith.constant 0 : index
    %c0_161 = arith.constant 0 : index
    %229 = vector.load %arg7[%c0_160, %c0_161] : memref<1x64xf32, #tpu.memory_space<vmem>>, vector<1x64xf32>
    %230 = vector.broadcast %229 : vector<1x64xf32> to vector<16x64xf32>
    %231 = arith.mulf %228, %230 : vector<16x64xf32>
    %c0_162 = arith.constant 0 : index
    %c0_163 = arith.constant 0 : index
    %232 = vector.load %arg8[%c0_162, %c0_163] : memref<1x64xf32, #tpu.memory_space<vmem>>, vector<1x64xf32>
    %233 = vector.broadcast %232 : vector<1x64xf32> to vector<16x64xf32>
    %234 = arith.addf %231, %233 : vector<16x64xf32>
    %235 = arith.negf %234 : vector<16x64xf32>
    %236 = math.exp %235 : vector<16x64xf32>
    %cst_164 = arith.constant 1.000000e+00 : f32
    %237 = vector.broadcast %cst_164 : f32 to vector<16x64xf32>
    %238 = arith.addf %237, %236 : vector<16x64xf32>
    %239 = arith.divf %237, %238 : vector<16x64xf32>
    %240 = arith.mulf %234, %239 : vector<16x64xf32>
    %c32 = arith.constant 32 : index
    %c0_165 = arith.constant 0 : index
    %241 = vector.load %arg15[%c32, %c0_165] : memref<128x64xf32, #tpu.memory_space<vmem>>, vector<16x64xf32>
    tpu.vector_store %arg15[%c32, %c0_165], %240 {strides = array<i32>} : memref<128x64xf32, #tpu.memory_space<vmem>>, vector<16x64xf32>,
    %cst_166 = arith.constant 0.000000e+00 : f32
    %242 = vector.broadcast %cst_166 : f32 to vector<16x64xf32>
    %c3_167 = arith.constant 3 : index
    %c0_168 = arith.constant 0 : index
    %c0_169 = arith.constant 0 : index
    %243 = vector.load %arg14[%c3_167, %c0_168, %c0_169] : memref<10x18x64xf32, #tpu.memory_space<vmem>>, vector<1x16x64xf32>
    %244 = vector.shape_cast %243 : vector<1x16x64xf32> to vector<16x64xf32>
    %c0_170 = arith.constant 0 : index
    %c0_171 = arith.constant 0 : index
    %245 = vector.load %arg6[%c0_170, %c0_171] : memref<9x64xf32, #tpu.memory_space<vmem>>, vector<1x64xf32>
    %246 = vector.broadcast %245 : vector<1x64xf32> to vector<16x64xf32>
    %247 = arith.mulf %244, %246 : vector<16x64xf32>
    %248 = arith.addf %242, %247 : vector<16x64xf32>
    %c3_172 = arith.constant 3 : index
    %c1_173 = arith.constant 1 : index
    %c0_174 = arith.constant 0 : index
    %249 = vector.load %arg14[%c3_172, %c1_173, %c0_174] : memref<10x18x64xf32, #tpu.memory_space<vmem>>, vector<1x16x64xf32>
    %250 = vector.shape_cast %249 : vector<1x16x64xf32> to vector<16x64xf32>
    %c1_175 = arith.constant 1 : index
    %c0_176 = arith.constant 0 : index
    %251 = vector.load %arg6[%c1_175, %c0_176] : memref<9x64xf32, #tpu.memory_space<vmem>>, vector<1x64xf32>
    %252 = vector.broadcast %251 : vector<1x64xf32> to vector<16x64xf32>
    %253 = arith.mulf %250, %252 : vector<16x64xf32>
    %254 = arith.addf %248, %253 : vector<16x64xf32>
    %c3_177 = arith.constant 3 : index
    %c2_178 = arith.constant 2 : index
    %c0_179 = arith.constant 0 : index
    %255 = vector.load %arg14[%c3_177, %c2_178, %c0_179] : memref<10x18x64xf32, #tpu.memory_space<vmem>>, vector<1x16x64xf32>
    %256 = vector.shape_cast %255 : vector<1x16x64xf32> to vector<16x64xf32>
    %c2_180 = arith.constant 2 : index
    %c0_181 = arith.constant 0 : index
    %257 = vector.load %arg6[%c2_180, %c0_181] : memref<9x64xf32, #tpu.memory_space<vmem>>, vector<1x64xf32>
    %258 = vector.broadcast %257 : vector<1x64xf32> to vector<16x64xf32>
    %259 = arith.mulf %256, %258 : vector<16x64xf32>
    %260 = arith.addf %254, %259 : vector<16x64xf32>
    %c4_182 = arith.constant 4 : index
    %c0_183 = arith.constant 0 : index
    %c0_184 = arith.constant 0 : index
    %261 = vector.load %arg14[%c4_182, %c0_183, %c0_184] : memref<10x18x64xf32, #tpu.memory_space<vmem>>, vector<1x16x64xf32>
    %262 = vector.shape_cast %261 : vector<1x16x64xf32> to vector<16x64xf32>
    %c3_185 = arith.constant 3 : index
    %c0_186 = arith.constant 0 : index
    %263 = vector.load %arg6[%c3_185, %c0_186] : memref<9x64xf32, #tpu.memory_space<vmem>>, vector<1x64xf32>
    %264 = vector.broadcast %263 : vector<1x64xf32> to vector<16x64xf32>
    %265 = arith.mulf %262, %264 : vector<16x64xf32>
    %266 = arith.addf %260, %265 : vector<16x64xf32>
    %c4_187 = arith.constant 4 : index
    %c1_188 = arith.constant 1 : index
    %c0_189 = arith.constant 0 : index
    %267 = vector.load %arg14[%c4_187, %c1_188, %c0_189] : memref<10x18x64xf32, #tpu.memory_space<vmem>>, vector<1x16x64xf32>
    %268 = vector.shape_cast %267 : vector<1x16x64xf32> to vector<16x64xf32>
    %c4_190 = arith.constant 4 : index
    %c0_191 = arith.constant 0 : index
    %269 = vector.load %arg6[%c4_190, %c0_191] : memref<9x64xf32, #tpu.memory_space<vmem>>, vector<1x64xf32>
    %270 = vector.broadcast %269 : vector<1x64xf32> to vector<16x64xf32>
    %271 = arith.mulf %268, %270 : vector<16x64xf32>
    %272 = arith.addf %266, %271 : vector<16x64xf32>
    %c4_192 = arith.constant 4 : index
    %c2_193 = arith.constant 2 : index
    %c0_194 = arith.constant 0 : index
    %273 = vector.load %arg14[%c4_192, %c2_193, %c0_194] : memref<10x18x64xf32, #tpu.memory_space<vmem>>, vector<1x16x64xf32>
    %274 = vector.shape_cast %273 : vector<1x16x64xf32> to vector<16x64xf32>
    %c5_195 = arith.constant 5 : index
    %c0_196 = arith.constant 0 : index
    %275 = vector.load %arg6[%c5_195, %c0_196] : memref<9x64xf32, #tpu.memory_space<vmem>>, vector<1x64xf32>
    %276 = vector.broadcast %275 : vector<1x64xf32> to vector<16x64xf32>
    %277 = arith.mulf %274, %276 : vector<16x64xf32>
    %278 = arith.addf %272, %277 : vector<16x64xf32>
    %c5_197 = arith.constant 5 : index
    %c0_198 = arith.constant 0 : index
    %c0_199 = arith.constant 0 : index
    %279 = vector.load %arg14[%c5_197, %c0_198, %c0_199] : memref<10x18x64xf32, #tpu.memory_space<vmem>>, vector<1x16x64xf32>
    %280 = vector.shape_cast %279 : vector<1x16x64xf32> to vector<16x64xf32>
    %c6_200 = arith.constant 6 : index
    %c0_201 = arith.constant 0 : index
    %281 = vector.load %arg6[%c6_200, %c0_201] : memref<9x64xf32, #tpu.memory_space<vmem>>, vector<1x64xf32>
    %282 = vector.broadcast %281 : vector<1x64xf32> to vector<16x64xf32>
    %283 = arith.mulf %280, %282 : vector<16x64xf32>
    %284 = arith.addf %278, %283 : vector<16x64xf32>
    %c5_202 = arith.constant 5 : index
    %c1_203 = arith.constant 1 : index
    %c0_204 = arith.constant 0 : index
    %285 = vector.load %arg14[%c5_202, %c1_203, %c0_204] : memref<10x18x64xf32, #tpu.memory_space<vmem>>, vector<1x16x64xf32>
    %286 = vector.shape_cast %285 : vector<1x16x64xf32> to vector<16x64xf32>
    %c7_205 = arith.constant 7 : index
    %c0_206 = arith.constant 0 : index
    %287 = vector.load %arg6[%c7_205, %c0_206] : memref<9x64xf32, #tpu.memory_space<vmem>>, vector<1x64xf32>
    %288 = vector.broadcast %287 : vector<1x64xf32> to vector<16x64xf32>
    %289 = arith.mulf %286, %288 : vector<16x64xf32>
    %290 = arith.addf %284, %289 : vector<16x64xf32>
    %c5_207 = arith.constant 5 : index
    %c2_208 = arith.constant 2 : index
    %c0_209 = arith.constant 0 : index
    %291 = vector.load %arg14[%c5_207, %c2_208, %c0_209] : memref<10x18x64xf32, #tpu.memory_space<vmem>>, vector<1x16x64xf32>
    %292 = vector.shape_cast %291 : vector<1x16x64xf32> to vector<16x64xf32>
    %c8_210 = arith.constant 8 : index
    %c0_211 = arith.constant 0 : index
    %293 = vector.load %arg6[%c8_210, %c0_211] : memref<9x64xf32, #tpu.memory_space<vmem>>, vector<1x64xf32>
    %294 = vector.broadcast %293 : vector<1x64xf32> to vector<16x64xf32>
    %295 = arith.mulf %292, %294 : vector<16x64xf32>
    %296 = arith.addf %290, %295 : vector<16x64xf32>
    %c0_212 = arith.constant 0 : index
    %c0_213 = arith.constant 0 : index
    %297 = vector.load %arg7[%c0_212, %c0_213] : memref<1x64xf32, #tpu.memory_space<vmem>>, vector<1x64xf32>
    %298 = vector.broadcast %297 : vector<1x64xf32> to vector<16x64xf32>
    %299 = arith.mulf %296, %298 : vector<16x64xf32>
    %c0_214 = arith.constant 0 : index
    %c0_215 = arith.constant 0 : index
    %300 = vector.load %arg8[%c0_214, %c0_215] : memref<1x64xf32, #tpu.memory_space<vmem>>, vector<1x64xf32>
    %301 = vector.broadcast %300 : vector<1x64xf32> to vector<16x64xf32>
    %302 = arith.addf %299, %301 : vector<16x64xf32>
    %303 = arith.negf %302 : vector<16x64xf32>
    %304 = math.exp %303 : vector<16x64xf32>
    %cst_216 = arith.constant 1.000000e+00 : f32
    %305 = vector.broadcast %cst_216 : f32 to vector<16x64xf32>
    %306 = arith.addf %305, %304 : vector<16x64xf32>
    %307 = arith.divf %305, %306 : vector<16x64xf32>
    %308 = arith.mulf %302, %307 : vector<16x64xf32>
    %c48 = arith.constant 48 : index
    %c0_217 = arith.constant 0 : index
    %309 = vector.load %arg15[%c48, %c0_217] : memref<128x64xf32, #tpu.memory_space<vmem>>, vector<16x64xf32>
    tpu.vector_store %arg15[%c48, %c0_217], %308 {strides = array<i32>} : memref<128x64xf32, #tpu.memory_space<vmem>>, vector<16x64xf32>,
    %cst_218 = arith.constant 0.000000e+00 : f32
    %310 = vector.broadcast %cst_218 : f32 to vector<16x64xf32>
    %c4_219 = arith.constant 4 : index
    %c0_220 = arith.constant 0 : index
    %c0_221 = arith.constant 0 : index
    %311 = vector.load %arg14[%c4_219, %c0_220, %c0_221] : memref<10x18x64xf32, #tpu.memory_space<vmem>>, vector<1x16x64xf32>
    %312 = vector.shape_cast %311 : vector<1x16x64xf32> to vector<16x64xf32>
    %c0_222 = arith.constant 0 : index
    %c0_223 = arith.constant 0 : index
    %313 = vector.load %arg6[%c0_222, %c0_223] : memref<9x64xf32, #tpu.memory_space<vmem>>, vector<1x64xf32>
    %314 = vector.broadcast %313 : vector<1x64xf32> to vector<16x64xf32>
    %315 = arith.mulf %312, %314 : vector<16x64xf32>
    %316 = arith.addf %310, %315 : vector<16x64xf32>
    %c4_224 = arith.constant 4 : index
    %c1_225 = arith.constant 1 : index
    %c0_226 = arith.constant 0 : index
    %317 = vector.load %arg14[%c4_224, %c1_225, %c0_226] : memref<10x18x64xf32, #tpu.memory_space<vmem>>, vector<1x16x64xf32>
    %318 = vector.shape_cast %317 : vector<1x16x64xf32> to vector<16x64xf32>
    %c1_227 = arith.constant 1 : index
    %c0_228 = arith.constant 0 : index
    %319 = vector.load %arg6[%c1_227, %c0_228] : memref<9x64xf32, #tpu.memory_space<vmem>>, vector<1x64xf32>
    %320 = vector.broadcast %319 : vector<1x64xf32> to vector<16x64xf32>
    %321 = arith.mulf %318, %320 : vector<16x64xf32>
    %322 = arith.addf %316, %321 : vector<16x64xf32>
    %c4_229 = arith.constant 4 : index
    %c2_230 = arith.constant 2 : index
    %c0_231 = arith.constant 0 : index
    %323 = vector.load %arg14[%c4_229, %c2_230, %c0_231] : memref<10x18x64xf32, #tpu.memory_space<vmem>>, vector<1x16x64xf32>
    %324 = vector.shape_cast %323 : vector<1x16x64xf32> to vector<16x64xf32>
    %c2_232 = arith.constant 2 : index
    %c0_233 = arith.constant 0 : index
    %325 = vector.load %arg6[%c2_232, %c0_233] : memref<9x64xf32, #tpu.memory_space<vmem>>, vector<1x64xf32>
    %326 = vector.broadcast %325 : vector<1x64xf32> to vector<16x64xf32>
    %327 = arith.mulf %324, %326 : vector<16x64xf32>
    %328 = arith.addf %322, %327 : vector<16x64xf32>
    %c5_234 = arith.constant 5 : index
    %c0_235 = arith.constant 0 : index
    %c0_236 = arith.constant 0 : index
    %329 = vector.load %arg14[%c5_234, %c0_235, %c0_236] : memref<10x18x64xf32, #tpu.memory_space<vmem>>, vector<1x16x64xf32>
    %330 = vector.shape_cast %329 : vector<1x16x64xf32> to vector<16x64xf32>
    %c3_237 = arith.constant 3 : index
    %c0_238 = arith.constant 0 : index
    %331 = vector.load %arg6[%c3_237, %c0_238] : memref<9x64xf32, #tpu.memory_space<vmem>>, vector<1x64xf32>
    %332 = vector.broadcast %331 : vector<1x64xf32> to vector<16x64xf32>
    %333 = arith.mulf %330, %332 : vector<16x64xf32>
    %334 = arith.addf %328, %333 : vector<16x64xf32>
    %c5_239 = arith.constant 5 : index
    %c1_240 = arith.constant 1 : index
    %c0_241 = arith.constant 0 : index
    %335 = vector.load %arg14[%c5_239, %c1_240, %c0_241] : memref<10x18x64xf32, #tpu.memory_space<vmem>>, vector<1x16x64xf32>
    %336 = vector.shape_cast %335 : vector<1x16x64xf32> to vector<16x64xf32>
    %c4_242 = arith.constant 4 : index
    %c0_243 = arith.constant 0 : index
    %337 = vector.load %arg6[%c4_242, %c0_243] : memref<9x64xf32, #tpu.memory_space<vmem>>, vector<1x64xf32>
    %338 = vector.broadcast %337 : vector<1x64xf32> to vector<16x64xf32>
    %339 = arith.mulf %336, %338 : vector<16x64xf32>
    %340 = arith.addf %334, %339 : vector<16x64xf32>
    %c5_244 = arith.constant 5 : index
    %c2_245 = arith.constant 2 : index
    %c0_246 = arith.constant 0 : index
    %341 = vector.load %arg14[%c5_244, %c2_245, %c0_246] : memref<10x18x64xf32, #tpu.memory_space<vmem>>, vector<1x16x64xf32>
    %342 = vector.shape_cast %341 : vector<1x16x64xf32> to vector<16x64xf32>
    %c5_247 = arith.constant 5 : index
    %c0_248 = arith.constant 0 : index
    %343 = vector.load %arg6[%c5_247, %c0_248] : memref<9x64xf32, #tpu.memory_space<vmem>>, vector<1x64xf32>
    %344 = vector.broadcast %343 : vector<1x64xf32> to vector<16x64xf32>
    %345 = arith.mulf %342, %344 : vector<16x64xf32>
    %346 = arith.addf %340, %345 : vector<16x64xf32>
    %c6_249 = arith.constant 6 : index
    %c0_250 = arith.constant 0 : index
    %c0_251 = arith.constant 0 : index
    %347 = vector.load %arg14[%c6_249, %c0_250, %c0_251] : memref<10x18x64xf32, #tpu.memory_space<vmem>>, vector<1x16x64xf32>
    %348 = vector.shape_cast %347 : vector<1x16x64xf32> to vector<16x64xf32>
    %c6_252 = arith.constant 6 : index
    %c0_253 = arith.constant 0 : index
    %349 = vector.load %arg6[%c6_252, %c0_253] : memref<9x64xf32, #tpu.memory_space<vmem>>, vector<1x64xf32>
    %350 = vector.broadcast %349 : vector<1x64xf32> to vector<16x64xf32>
    %351 = arith.mulf %348, %350 : vector<16x64xf32>
    %352 = arith.addf %346, %351 : vector<16x64xf32>
    %c6_254 = arith.constant 6 : index
    %c1_255 = arith.constant 1 : index
    %c0_256 = arith.constant 0 : index
    %353 = vector.load %arg14[%c6_254, %c1_255, %c0_256] : memref<10x18x64xf32, #tpu.memory_space<vmem>>, vector<1x16x64xf32>
    %354 = vector.shape_cast %353 : vector<1x16x64xf32> to vector<16x64xf32>
    %c7_257 = arith.constant 7 : index
    %c0_258 = arith.constant 0 : index
    %355 = vector.load %arg6[%c7_257, %c0_258] : memref<9x64xf32, #tpu.memory_space<vmem>>, vector<1x64xf32>
    %356 = vector.broadcast %355 : vector<1x64xf32> to vector<16x64xf32>
    %357 = arith.mulf %354, %356 : vector<16x64xf32>
    %358 = arith.addf %352, %357 : vector<16x64xf32>
    %c6_259 = arith.constant 6 : index
    %c2_260 = arith.constant 2 : index
    %c0_261 = arith.constant 0 : index
    %359 = vector.load %arg14[%c6_259, %c2_260, %c0_261] : memref<10x18x64xf32, #tpu.memory_space<vmem>>, vector<1x16x64xf32>
    %360 = vector.shape_cast %359 : vector<1x16x64xf32> to vector<16x64xf32>
    %c8_262 = arith.constant 8 : index
    %c0_263 = arith.constant 0 : index
    %361 = vector.load %arg6[%c8_262, %c0_263] : memref<9x64xf32, #tpu.memory_space<vmem>>, vector<1x64xf32>
    %362 = vector.broadcast %361 : vector<1x64xf32> to vector<16x64xf32>
    %363 = arith.mulf %360, %362 : vector<16x64xf32>
    %364 = arith.addf %358, %363 : vector<16x64xf32>
    %c0_264 = arith.constant 0 : index
    %c0_265 = arith.constant 0 : index
    %365 = vector.load %arg7[%c0_264, %c0_265] : memref<1x64xf32, #tpu.memory_space<vmem>>, vector<1x64xf32>
    %366 = vector.broadcast %365 : vector<1x64xf32> to vector<16x64xf32>
    %367 = arith.mulf %364, %366 : vector<16x64xf32>
    %c0_266 = arith.constant 0 : index
    %c0_267 = arith.constant 0 : index
    %368 = vector.load %arg8[%c0_266, %c0_267] : memref<1x64xf32, #tpu.memory_space<vmem>>, vector<1x64xf32>
    %369 = vector.broadcast %368 : vector<1x64xf32> to vector<16x64xf32>
    %370 = arith.addf %367, %369 : vector<16x64xf32>
    %371 = arith.negf %370 : vector<16x64xf32>
    %372 = math.exp %371 : vector<16x64xf32>
    %cst_268 = arith.constant 1.000000e+00 : f32
    %373 = vector.broadcast %cst_268 : f32 to vector<16x64xf32>
    %374 = arith.addf %373, %372 : vector<16x64xf32>
    %375 = arith.divf %373, %374 : vector<16x64xf32>
    %376 = arith.mulf %370, %375 : vector<16x64xf32>
    %c64 = arith.constant 64 : index
    %c0_269 = arith.constant 0 : index
    %377 = vector.load %arg15[%c64, %c0_269] : memref<128x64xf32, #tpu.memory_space<vmem>>, vector<16x64xf32>
    tpu.vector_store %arg15[%c64, %c0_269], %376 {strides = array<i32>} : memref<128x64xf32, #tpu.memory_space<vmem>>, vector<16x64xf32>,
    %cst_270 = arith.constant 0.000000e+00 : f32
    %378 = vector.broadcast %cst_270 : f32 to vector<16x64xf32>
    %c5_271 = arith.constant 5 : index
    %c0_272 = arith.constant 0 : index
    %c0_273 = arith.constant 0 : index
    %379 = vector.load %arg14[%c5_271, %c0_272, %c0_273] : memref<10x18x64xf32, #tpu.memory_space<vmem>>, vector<1x16x64xf32>
    %380 = vector.shape_cast %379 : vector<1x16x64xf32> to vector<16x64xf32>
    %c0_274 = arith.constant 0 : index
    %c0_275 = arith.constant 0 : index
    %381 = vector.load %arg6[%c0_274, %c0_275] : memref<9x64xf32, #tpu.memory_space<vmem>>, vector<1x64xf32>
    %382 = vector.broadcast %381 : vector<1x64xf32> to vector<16x64xf32>
    %383 = arith.mulf %380, %382 : vector<16x64xf32>
    %384 = arith.addf %378, %383 : vector<16x64xf32>
    %c5_276 = arith.constant 5 : index
    %c1_277 = arith.constant 1 : index
    %c0_278 = arith.constant 0 : index
    %385 = vector.load %arg14[%c5_276, %c1_277, %c0_278] : memref<10x18x64xf32, #tpu.memory_space<vmem>>, vector<1x16x64xf32>
    %386 = vector.shape_cast %385 : vector<1x16x64xf32> to vector<16x64xf32>
    %c1_279 = arith.constant 1 : index
    %c0_280 = arith.constant 0 : index
    %387 = vector.load %arg6[%c1_279, %c0_280] : memref<9x64xf32, #tpu.memory_space<vmem>>, vector<1x64xf32>
    %388 = vector.broadcast %387 : vector<1x64xf32> to vector<16x64xf32>
    %389 = arith.mulf %386, %388 : vector<16x64xf32>
    %390 = arith.addf %384, %389 : vector<16x64xf32>
    %c5_281 = arith.constant 5 : index
    %c2_282 = arith.constant 2 : index
    %c0_283 = arith.constant 0 : index
    %391 = vector.load %arg14[%c5_281, %c2_282, %c0_283] : memref<10x18x64xf32, #tpu.memory_space<vmem>>, vector<1x16x64xf32>
    %392 = vector.shape_cast %391 : vector<1x16x64xf32> to vector<16x64xf32>
    %c2_284 = arith.constant 2 : index
    %c0_285 = arith.constant 0 : index
    %393 = vector.load %arg6[%c2_284, %c0_285] : memref<9x64xf32, #tpu.memory_space<vmem>>, vector<1x64xf32>
    %394 = vector.broadcast %393 : vector<1x64xf32> to vector<16x64xf32>
    %395 = arith.mulf %392, %394 : vector<16x64xf32>
    %396 = arith.addf %390, %395 : vector<16x64xf32>
    %c6_286 = arith.constant 6 : index
    %c0_287 = arith.constant 0 : index
    %c0_288 = arith.constant 0 : index
    %397 = vector.load %arg14[%c6_286, %c0_287, %c0_288] : memref<10x18x64xf32, #tpu.memory_space<vmem>>, vector<1x16x64xf32>
    %398 = vector.shape_cast %397 : vector<1x16x64xf32> to vector<16x64xf32>
    %c3_289 = arith.constant 3 : index
    %c0_290 = arith.constant 0 : index
    %399 = vector.load %arg6[%c3_289, %c0_290] : memref<9x64xf32, #tpu.memory_space<vmem>>, vector<1x64xf32>
    %400 = vector.broadcast %399 : vector<1x64xf32> to vector<16x64xf32>
    %401 = arith.mulf %398, %400 : vector<16x64xf32>
    %402 = arith.addf %396, %401 : vector<16x64xf32>
    %c6_291 = arith.constant 6 : index
    %c1_292 = arith.constant 1 : index
    %c0_293 = arith.constant 0 : index
    %403 = vector.load %arg14[%c6_291, %c1_292, %c0_293] : memref<10x18x64xf32, #tpu.memory_space<vmem>>, vector<1x16x64xf32>
    %404 = vector.shape_cast %403 : vector<1x16x64xf32> to vector<16x64xf32>
    %c4_294 = arith.constant 4 : index
    %c0_295 = arith.constant 0 : index
    %405 = vector.load %arg6[%c4_294, %c0_295] : memref<9x64xf32, #tpu.memory_space<vmem>>, vector<1x64xf32>
    %406 = vector.broadcast %405 : vector<1x64xf32> to vector<16x64xf32>
    %407 = arith.mulf %404, %406 : vector<16x64xf32>
    %408 = arith.addf %402, %407 : vector<16x64xf32>
    %c6_296 = arith.constant 6 : index
    %c2_297 = arith.constant 2 : index
    %c0_298 = arith.constant 0 : index
    %409 = vector.load %arg14[%c6_296, %c2_297, %c0_298] : memref<10x18x64xf32, #tpu.memory_space<vmem>>, vector<1x16x64xf32>
    %410 = vector.shape_cast %409 : vector<1x16x64xf32> to vector<16x64xf32>
    %c5_299 = arith.constant 5 : index
    %c0_300 = arith.constant 0 : index
    %411 = vector.load %arg6[%c5_299, %c0_300] : memref<9x64xf32, #tpu.memory_space<vmem>>, vector<1x64xf32>
    %412 = vector.broadcast %411 : vector<1x64xf32> to vector<16x64xf32>
    %413 = arith.mulf %410, %412 : vector<16x64xf32>
    %414 = arith.addf %408, %413 : vector<16x64xf32>
    %c7_301 = arith.constant 7 : index
    %c0_302 = arith.constant 0 : index
    %c0_303 = arith.constant 0 : index
    %415 = vector.load %arg14[%c7_301, %c0_302, %c0_303] : memref<10x18x64xf32, #tpu.memory_space<vmem>>, vector<1x16x64xf32>
    %416 = vector.shape_cast %415 : vector<1x16x64xf32> to vector<16x64xf32>
    %c6_304 = arith.constant 6 : index
    %c0_305 = arith.constant 0 : index
    %417 = vector.load %arg6[%c6_304, %c0_305] : memref<9x64xf32, #tpu.memory_space<vmem>>, vector<1x64xf32>
    %418 = vector.broadcast %417 : vector<1x64xf32> to vector<16x64xf32>
    %419 = arith.mulf %416, %418 : vector<16x64xf32>
    %420 = arith.addf %414, %419 : vector<16x64xf32>
    %c7_306 = arith.constant 7 : index
    %c1_307 = arith.constant 1 : index
    %c0_308 = arith.constant 0 : index
    %421 = vector.load %arg14[%c7_306, %c1_307, %c0_308] : memref<10x18x64xf32, #tpu.memory_space<vmem>>, vector<1x16x64xf32>
    %422 = vector.shape_cast %421 : vector<1x16x64xf32> to vector<16x64xf32>
    %c7_309 = arith.constant 7 : index
    %c0_310 = arith.constant 0 : index
    %423 = vector.load %arg6[%c7_309, %c0_310] : memref<9x64xf32, #tpu.memory_space<vmem>>, vector<1x64xf32>
    %424 = vector.broadcast %423 : vector<1x64xf32> to vector<16x64xf32>
    %425 = arith.mulf %422, %424 : vector<16x64xf32>
    %426 = arith.addf %420, %425 : vector<16x64xf32>
    %c7_311 = arith.constant 7 : index
    %c2_312 = arith.constant 2 : index
    %c0_313 = arith.constant 0 : index
    %427 = vector.load %arg14[%c7_311, %c2_312, %c0_313] : memref<10x18x64xf32, #tpu.memory_space<vmem>>, vector<1x16x64xf32>
    %428 = vector.shape_cast %427 : vector<1x16x64xf32> to vector<16x64xf32>
    %c8_314 = arith.constant 8 : index
    %c0_315 = arith.constant 0 : index
    %429 = vector.load %arg6[%c8_314, %c0_315] : memref<9x64xf32, #tpu.memory_space<vmem>>, vector<1x64xf32>
    %430 = vector.broadcast %429 : vector<1x64xf32> to vector<16x64xf32>
    %431 = arith.mulf %428, %430 : vector<16x64xf32>
    %432 = arith.addf %426, %431 : vector<16x64xf32>
    %c0_316 = arith.constant 0 : index
    %c0_317 = arith.constant 0 : index
    %433 = vector.load %arg7[%c0_316, %c0_317] : memref<1x64xf32, #tpu.memory_space<vmem>>, vector<1x64xf32>
    %434 = vector.broadcast %433 : vector<1x64xf32> to vector<16x64xf32>
    %435 = arith.mulf %432, %434 : vector<16x64xf32>
    %c0_318 = arith.constant 0 : index
    %c0_319 = arith.constant 0 : index
    %436 = vector.load %arg8[%c0_318, %c0_319] : memref<1x64xf32, #tpu.memory_space<vmem>>, vector<1x64xf32>
    %437 = vector.broadcast %436 : vector<1x64xf32> to vector<16x64xf32>
    %438 = arith.addf %435, %437 : vector<16x64xf32>
    %439 = arith.negf %438 : vector<16x64xf32>
    %440 = math.exp %439 : vector<16x64xf32>
    %cst_320 = arith.constant 1.000000e+00 : f32
    %441 = vector.broadcast %cst_320 : f32 to vector<16x64xf32>
    %442 = arith.addf %441, %440 : vector<16x64xf32>
    %443 = arith.divf %441, %442 : vector<16x64xf32>
    %444 = arith.mulf %438, %443 : vector<16x64xf32>
    %c80 = arith.constant 80 : index
    %c0_321 = arith.constant 0 : index
    %445 = vector.load %arg15[%c80, %c0_321] : memref<128x64xf32, #tpu.memory_space<vmem>>, vector<16x64xf32>
    tpu.vector_store %arg15[%c80, %c0_321], %444 {strides = array<i32>} : memref<128x64xf32, #tpu.memory_space<vmem>>, vector<16x64xf32>,
    %cst_322 = arith.constant 0.000000e+00 : f32
    %446 = vector.broadcast %cst_322 : f32 to vector<16x64xf32>
    %c6_323 = arith.constant 6 : index
    %c0_324 = arith.constant 0 : index
    %c0_325 = arith.constant 0 : index
    %447 = vector.load %arg14[%c6_323, %c0_324, %c0_325] : memref<10x18x64xf32, #tpu.memory_space<vmem>>, vector<1x16x64xf32>
    %448 = vector.shape_cast %447 : vector<1x16x64xf32> to vector<16x64xf32>
    %c0_326 = arith.constant 0 : index
    %c0_327 = arith.constant 0 : index
    %449 = vector.load %arg6[%c0_326, %c0_327] : memref<9x64xf32, #tpu.memory_space<vmem>>, vector<1x64xf32>
    %450 = vector.broadcast %449 : vector<1x64xf32> to vector<16x64xf32>
    %451 = arith.mulf %448, %450 : vector<16x64xf32>
    %452 = arith.addf %446, %451 : vector<16x64xf32>
    %c6_328 = arith.constant 6 : index
    %c1_329 = arith.constant 1 : index
    %c0_330 = arith.constant 0 : index
    %453 = vector.load %arg14[%c6_328, %c1_329, %c0_330] : memref<10x18x64xf32, #tpu.memory_space<vmem>>, vector<1x16x64xf32>
    %454 = vector.shape_cast %453 : vector<1x16x64xf32> to vector<16x64xf32>
    %c1_331 = arith.constant 1 : index
    %c0_332 = arith.constant 0 : index
    %455 = vector.load %arg6[%c1_331, %c0_332] : memref<9x64xf32, #tpu.memory_space<vmem>>, vector<1x64xf32>
    %456 = vector.broadcast %455 : vector<1x64xf32> to vector<16x64xf32>
    %457 = arith.mulf %454, %456 : vector<16x64xf32>
    %458 = arith.addf %452, %457 : vector<16x64xf32>
    %c6_333 = arith.constant 6 : index
    %c2_334 = arith.constant 2 : index
    %c0_335 = arith.constant 0 : index
    %459 = vector.load %arg14[%c6_333, %c2_334, %c0_335] : memref<10x18x64xf32, #tpu.memory_space<vmem>>, vector<1x16x64xf32>
    %460 = vector.shape_cast %459 : vector<1x16x64xf32> to vector<16x64xf32>
    %c2_336 = arith.constant 2 : index
    %c0_337 = arith.constant 0 : index
    %461 = vector.load %arg6[%c2_336, %c0_337] : memref<9x64xf32, #tpu.memory_space<vmem>>, vector<1x64xf32>
    %462 = vector.broadcast %461 : vector<1x64xf32> to vector<16x64xf32>
    %463 = arith.mulf %460, %462 : vector<16x64xf32>
    %464 = arith.addf %458, %463 : vector<16x64xf32>
    %c7_338 = arith.constant 7 : index
    %c0_339 = arith.constant 0 : index
    %c0_340 = arith.constant 0 : index
    %465 = vector.load %arg14[%c7_338, %c0_339, %c0_340] : memref<10x18x64xf32, #tpu.memory_space<vmem>>, vector<1x16x64xf32>
    %466 = vector.shape_cast %465 : vector<1x16x64xf32> to vector<16x64xf32>
    %c3_341 = arith.constant 3 : index
    %c0_342 = arith.constant 0 : index
    %467 = vector.load %arg6[%c3_341, %c0_342] : memref<9x64xf32, #tpu.memory_space<vmem>>, vector<1x64xf32>
    %468 = vector.broadcast %467 : vector<1x64xf32> to vector<16x64xf32>
    %469 = arith.mulf %466, %468 : vector<16x64xf32>
    %470 = arith.addf %464, %469 : vector<16x64xf32>
    %c7_343 = arith.constant 7 : index
    %c1_344 = arith.constant 1 : index
    %c0_345 = arith.constant 0 : index
    %471 = vector.load %arg14[%c7_343, %c1_344, %c0_345] : memref<10x18x64xf32, #tpu.memory_space<vmem>>, vector<1x16x64xf32>
    %472 = vector.shape_cast %471 : vector<1x16x64xf32> to vector<16x64xf32>
    %c4_346 = arith.constant 4 : index
    %c0_347 = arith.constant 0 : index
    %473 = vector.load %arg6[%c4_346, %c0_347] : memref<9x64xf32, #tpu.memory_space<vmem>>, vector<1x64xf32>
    %474 = vector.broadcast %473 : vector<1x64xf32> to vector<16x64xf32>
    %475 = arith.mulf %472, %474 : vector<16x64xf32>
    %476 = arith.addf %470, %475 : vector<16x64xf32>
    %c7_348 = arith.constant 7 : index
    %c2_349 = arith.constant 2 : index
    %c0_350 = arith.constant 0 : index
    %477 = vector.load %arg14[%c7_348, %c2_349, %c0_350] : memref<10x18x64xf32, #tpu.memory_space<vmem>>, vector<1x16x64xf32>
    %478 = vector.shape_cast %477 : vector<1x16x64xf32> to vector<16x64xf32>
    %c5_351 = arith.constant 5 : index
    %c0_352 = arith.constant 0 : index
    %479 = vector.load %arg6[%c5_351, %c0_352] : memref<9x64xf32, #tpu.memory_space<vmem>>, vector<1x64xf32>
    %480 = vector.broadcast %479 : vector<1x64xf32> to vector<16x64xf32>
    %481 = arith.mulf %478, %480 : vector<16x64xf32>
    %482 = arith.addf %476, %481 : vector<16x64xf32>
    %c8_353 = arith.constant 8 : index
    %c0_354 = arith.constant 0 : index
    %c0_355 = arith.constant 0 : index
    %483 = vector.load %arg14[%c8_353, %c0_354, %c0_355] : memref<10x18x64xf32, #tpu.memory_space<vmem>>, vector<1x16x64xf32>
    %484 = vector.shape_cast %483 : vector<1x16x64xf32> to vector<16x64xf32>
    %c6_356 = arith.constant 6 : index
    %c0_357 = arith.constant 0 : index
    %485 = vector.load %arg6[%c6_356, %c0_357] : memref<9x64xf32, #tpu.memory_space<vmem>>, vector<1x64xf32>
    %486 = vector.broadcast %485 : vector<1x64xf32> to vector<16x64xf32>
    %487 = arith.mulf %484, %486 : vector<16x64xf32>
    %488 = arith.addf %482, %487 : vector<16x64xf32>
    %c8_358 = arith.constant 8 : index
    %c1_359 = arith.constant 1 : index
    %c0_360 = arith.constant 0 : index
    %489 = vector.load %arg14[%c8_358, %c1_359, %c0_360] : memref<10x18x64xf32, #tpu.memory_space<vmem>>, vector<1x16x64xf32>
    %490 = vector.shape_cast %489 : vector<1x16x64xf32> to vector<16x64xf32>
    %c7_361 = arith.constant 7 : index
    %c0_362 = arith.constant 0 : index
    %491 = vector.load %arg6[%c7_361, %c0_362] : memref<9x64xf32, #tpu.memory_space<vmem>>, vector<1x64xf32>
    %492 = vector.broadcast %491 : vector<1x64xf32> to vector<16x64xf32>
    %493 = arith.mulf %490, %492 : vector<16x64xf32>
    %494 = arith.addf %488, %493 : vector<16x64xf32>
    %c8_363 = arith.constant 8 : index
    %c2_364 = arith.constant 2 : index
    %c0_365 = arith.constant 0 : index
    %495 = vector.load %arg14[%c8_363, %c2_364, %c0_365] : memref<10x18x64xf32, #tpu.memory_space<vmem>>, vector<1x16x64xf32>
    %496 = vector.shape_cast %495 : vector<1x16x64xf32> to vector<16x64xf32>
    %c8_366 = arith.constant 8 : index
    %c0_367 = arith.constant 0 : index
    %497 = vector.load %arg6[%c8_366, %c0_367] : memref<9x64xf32, #tpu.memory_space<vmem>>, vector<1x64xf32>
    %498 = vector.broadcast %497 : vector<1x64xf32> to vector<16x64xf32>
    %499 = arith.mulf %496, %498 : vector<16x64xf32>
    %500 = arith.addf %494, %499 : vector<16x64xf32>
    %c0_368 = arith.constant 0 : index
    %c0_369 = arith.constant 0 : index
    %501 = vector.load %arg7[%c0_368, %c0_369] : memref<1x64xf32, #tpu.memory_space<vmem>>, vector<1x64xf32>
    %502 = vector.broadcast %501 : vector<1x64xf32> to vector<16x64xf32>
    %503 = arith.mulf %500, %502 : vector<16x64xf32>
    %c0_370 = arith.constant 0 : index
    %c0_371 = arith.constant 0 : index
    %504 = vector.load %arg8[%c0_370, %c0_371] : memref<1x64xf32, #tpu.memory_space<vmem>>, vector<1x64xf32>
    %505 = vector.broadcast %504 : vector<1x64xf32> to vector<16x64xf32>
    %506 = arith.addf %503, %505 : vector<16x64xf32>
    %507 = arith.negf %506 : vector<16x64xf32>
    %508 = math.exp %507 : vector<16x64xf32>
    %cst_372 = arith.constant 1.000000e+00 : f32
    %509 = vector.broadcast %cst_372 : f32 to vector<16x64xf32>
    %510 = arith.addf %509, %508 : vector<16x64xf32>
    %511 = arith.divf %509, %510 : vector<16x64xf32>
    %512 = arith.mulf %506, %511 : vector<16x64xf32>
    %c96 = arith.constant 96 : index
    %c0_373 = arith.constant 0 : index
    %513 = vector.load %arg15[%c96, %c0_373] : memref<128x64xf32, #tpu.memory_space<vmem>>, vector<16x64xf32>
    tpu.vector_store %arg15[%c96, %c0_373], %512 {strides = array<i32>} : memref<128x64xf32, #tpu.memory_space<vmem>>, vector<16x64xf32>,
    %cst_374 = arith.constant 0.000000e+00 : f32
    %514 = vector.broadcast %cst_374 : f32 to vector<16x64xf32>
    %c7_375 = arith.constant 7 : index
    %c0_376 = arith.constant 0 : index
    %c0_377 = arith.constant 0 : index
    %515 = vector.load %arg14[%c7_375, %c0_376, %c0_377] : memref<10x18x64xf32, #tpu.memory_space<vmem>>, vector<1x16x64xf32>
    %516 = vector.shape_cast %515 : vector<1x16x64xf32> to vector<16x64xf32>
    %c0_378 = arith.constant 0 : index
    %c0_379 = arith.constant 0 : index
    %517 = vector.load %arg6[%c0_378, %c0_379] : memref<9x64xf32, #tpu.memory_space<vmem>>, vector<1x64xf32>
    %518 = vector.broadcast %517 : vector<1x64xf32> to vector<16x64xf32>
    %519 = arith.mulf %516, %518 : vector<16x64xf32>
    %520 = arith.addf %514, %519 : vector<16x64xf32>
    %c7_380 = arith.constant 7 : index
    %c1_381 = arith.constant 1 : index
    %c0_382 = arith.constant 0 : index
    %521 = vector.load %arg14[%c7_380, %c1_381, %c0_382] : memref<10x18x64xf32, #tpu.memory_space<vmem>>, vector<1x16x64xf32>
    %522 = vector.shape_cast %521 : vector<1x16x64xf32> to vector<16x64xf32>
    %c1_383 = arith.constant 1 : index
    %c0_384 = arith.constant 0 : index
    %523 = vector.load %arg6[%c1_383, %c0_384] : memref<9x64xf32, #tpu.memory_space<vmem>>, vector<1x64xf32>
    %524 = vector.broadcast %523 : vector<1x64xf32> to vector<16x64xf32>
    %525 = arith.mulf %522, %524 : vector<16x64xf32>
    %526 = arith.addf %520, %525 : vector<16x64xf32>
    %c7_385 = arith.constant 7 : index
    %c2_386 = arith.constant 2 : index
    %c0_387 = arith.constant 0 : index
    %527 = vector.load %arg14[%c7_385, %c2_386, %c0_387] : memref<10x18x64xf32, #tpu.memory_space<vmem>>, vector<1x16x64xf32>
    %528 = vector.shape_cast %527 : vector<1x16x64xf32> to vector<16x64xf32>
    %c2_388 = arith.constant 2 : index
    %c0_389 = arith.constant 0 : index
    %529 = vector.load %arg6[%c2_388, %c0_389] : memref<9x64xf32, #tpu.memory_space<vmem>>, vector<1x64xf32>
    %530 = vector.broadcast %529 : vector<1x64xf32> to vector<16x64xf32>
    %531 = arith.mulf %528, %530 : vector<16x64xf32>
    %532 = arith.addf %526, %531 : vector<16x64xf32>
    %c8_390 = arith.constant 8 : index
    %c0_391 = arith.constant 0 : index
    %c0_392 = arith.constant 0 : index
    %533 = vector.load %arg14[%c8_390, %c0_391, %c0_392] : memref<10x18x64xf32, #tpu.memory_space<vmem>>, vector<1x16x64xf32>
    %534 = vector.shape_cast %533 : vector<1x16x64xf32> to vector<16x64xf32>
    %c3_393 = arith.constant 3 : index
    %c0_394 = arith.constant 0 : index
    %535 = vector.load %arg6[%c3_393, %c0_394] : memref<9x64xf32, #tpu.memory_space<vmem>>, vector<1x64xf32>
    %536 = vector.broadcast %535 : vector<1x64xf32> to vector<16x64xf32>
    %537 = arith.mulf %534, %536 : vector<16x64xf32>
    %538 = arith.addf %532, %537 : vector<16x64xf32>
    %c8_395 = arith.constant 8 : index
    %c1_396 = arith.constant 1 : index
    %c0_397 = arith.constant 0 : index
    %539 = vector.load %arg14[%c8_395, %c1_396, %c0_397] : memref<10x18x64xf32, #tpu.memory_space<vmem>>, vector<1x16x64xf32>
    %540 = vector.shape_cast %539 : vector<1x16x64xf32> to vector<16x64xf32>
    %c4_398 = arith.constant 4 : index
    %c0_399 = arith.constant 0 : index
    %541 = vector.load %arg6[%c4_398, %c0_399] : memref<9x64xf32, #tpu.memory_space<vmem>>, vector<1x64xf32>
    %542 = vector.broadcast %541 : vector<1x64xf32> to vector<16x64xf32>
    %543 = arith.mulf %540, %542 : vector<16x64xf32>
    %544 = arith.addf %538, %543 : vector<16x64xf32>
    %c8_400 = arith.constant 8 : index
    %c2_401 = arith.constant 2 : index
    %c0_402 = arith.constant 0 : index
    %545 = vector.load %arg14[%c8_400, %c2_401, %c0_402] : memref<10x18x64xf32, #tpu.memory_space<vmem>>, vector<1x16x64xf32>
    %546 = vector.shape_cast %545 : vector<1x16x64xf32> to vector<16x64xf32>
    %c5_403 = arith.constant 5 : index
    %c0_404 = arith.constant 0 : index
    %547 = vector.load %arg6[%c5_403, %c0_404] : memref<9x64xf32, #tpu.memory_space<vmem>>, vector<1x64xf32>
    %548 = vector.broadcast %547 : vector<1x64xf32> to vector<16x64xf32>
    %549 = arith.mulf %546, %548 : vector<16x64xf32>
    %550 = arith.addf %544, %549 : vector<16x64xf32>
    %c9 = arith.constant 9 : index
    %c0_405 = arith.constant 0 : index
    %c0_406 = arith.constant 0 : index
    %551 = vector.load %arg14[%c9, %c0_405, %c0_406] : memref<10x18x64xf32, #tpu.memory_space<vmem>>, vector<1x16x64xf32>
    %552 = vector.shape_cast %551 : vector<1x16x64xf32> to vector<16x64xf32>
    %c6_407 = arith.constant 6 : index
    %c0_408 = arith.constant 0 : index
    %553 = vector.load %arg6[%c6_407, %c0_408] : memref<9x64xf32, #tpu.memory_space<vmem>>, vector<1x64xf32>
    %554 = vector.broadcast %553 : vector<1x64xf32> to vector<16x64xf32>
    %555 = arith.mulf %552, %554 : vector<16x64xf32>
    %556 = arith.addf %550, %555 : vector<16x64xf32>
    %c9_409 = arith.constant 9 : index
    %c1_410 = arith.constant 1 : index
    %c0_411 = arith.constant 0 : index
    %557 = vector.load %arg14[%c9_409, %c1_410, %c0_411] : memref<10x18x64xf32, #tpu.memory_space<vmem>>, vector<1x16x64xf32>
    %558 = vector.shape_cast %557 : vector<1x16x64xf32> to vector<16x64xf32>
    %c7_412 = arith.constant 7 : index
    %c0_413 = arith.constant 0 : index
    %559 = vector.load %arg6[%c7_412, %c0_413] : memref<9x64xf32, #tpu.memory_space<vmem>>, vector<1x64xf32>
    %560 = vector.broadcast %559 : vector<1x64xf32> to vector<16x64xf32>
    %561 = arith.mulf %558, %560 : vector<16x64xf32>
    %562 = arith.addf %556, %561 : vector<16x64xf32>
    %c9_414 = arith.constant 9 : index
    %c2_415 = arith.constant 2 : index
    %c0_416 = arith.constant 0 : index
    %563 = vector.load %arg14[%c9_414, %c2_415, %c0_416] : memref<10x18x64xf32, #tpu.memory_space<vmem>>, vector<1x16x64xf32>
    %564 = vector.shape_cast %563 : vector<1x16x64xf32> to vector<16x64xf32>
    %c8_417 = arith.constant 8 : index
    %c0_418 = arith.constant 0 : index
    %565 = vector.load %arg6[%c8_417, %c0_418] : memref<9x64xf32, #tpu.memory_space<vmem>>, vector<1x64xf32>
    %566 = vector.broadcast %565 : vector<1x64xf32> to vector<16x64xf32>
    %567 = arith.mulf %564, %566 : vector<16x64xf32>
    %568 = arith.addf %562, %567 : vector<16x64xf32>
    %c0_419 = arith.constant 0 : index
    %c0_420 = arith.constant 0 : index
    %569 = vector.load %arg7[%c0_419, %c0_420] : memref<1x64xf32, #tpu.memory_space<vmem>>, vector<1x64xf32>
    %570 = vector.broadcast %569 : vector<1x64xf32> to vector<16x64xf32>
    %571 = arith.mulf %568, %570 : vector<16x64xf32>
    %c0_421 = arith.constant 0 : index
    %c0_422 = arith.constant 0 : index
    %572 = vector.load %arg8[%c0_421, %c0_422] : memref<1x64xf32, #tpu.memory_space<vmem>>, vector<1x64xf32>
    %573 = vector.broadcast %572 : vector<1x64xf32> to vector<16x64xf32>
    %574 = arith.addf %571, %573 : vector<16x64xf32>
    %575 = arith.negf %574 : vector<16x64xf32>
    %576 = math.exp %575 : vector<16x64xf32>
    %cst_423 = arith.constant 1.000000e+00 : f32
    %577 = vector.broadcast %cst_423 : f32 to vector<16x64xf32>
    %578 = arith.addf %577, %576 : vector<16x64xf32>
    %579 = arith.divf %577, %578 : vector<16x64xf32>
    %580 = arith.mulf %574, %579 : vector<16x64xf32>
    %c112 = arith.constant 112 : index
    %c0_424 = arith.constant 0 : index
    %581 = vector.load %arg15[%c112, %c0_424] : memref<128x64xf32, #tpu.memory_space<vmem>>, vector<16x64xf32>
    tpu.vector_store %arg15[%c112, %c0_424], %580 {strides = array<i32>} : memref<128x64xf32, #tpu.memory_space<vmem>>, vector<16x64xf32>,
    %c0_425 = arith.constant 0 : index
    %c0_426 = arith.constant 0 : index
    %582 = vector.load %arg15[%c0_425, %c0_426] : memref<128x64xf32, #tpu.memory_space<vmem>>, vector<128x64xf32>
    %583 = arith.truncf %582 : vector<128x64xf32> to vector<128x64xbf16>
    %c0_427 = arith.constant 0 : index
    %c0_428 = arith.constant 0 : index
    %584 = vector.load %arg9[%c0_427, %c0_428] : memref<64x16xbf16, #tpu.memory_space<vmem>>, vector<64x16xbf16>
    %cst_429 = arith.constant dense<0.000000e+00> : vector<128x16xf32>
    %585 = tpu.matmul %583, %584, %cst_429 {dimension_numbers = #tpu.dot_dimension_numbers<[1], [0], [0], [1], [0, 0, 1, 1], [], []>} : vector<128x64xbf16>, vector<64x16xbf16>, vector<128x16xf32> -> vector<128x16xf32>
    %c0_430 = arith.constant 0 : index
    %c0_431 = arith.constant 0 : index
    %586 = vector.load %arg10[%c0_430, %c0_431] : memref<1x16xf32, #tpu.memory_space<vmem>>, vector<1x16xf32>
    %587 = vector.broadcast %586 : vector<1x16xf32> to vector<128x16xf32>
    %588 = arith.mulf %585, %587 : vector<128x16xf32>
    %c0_432 = arith.constant 0 : index
    %c0_433 = arith.constant 0 : index
    %589 = vector.load %arg11[%c0_432, %c0_433] : memref<1x16xf32, #tpu.memory_space<vmem>>, vector<1x16xf32>
    %590 = vector.broadcast %589 : vector<1x16xf32> to vector<128x16xf32>
    %591 = arith.addf %588, %590 : vector<128x16xf32>
    %592 = vector.shape_cast %591 : vector<128x16xf32> to vector<8x16x16xf32>
    %c0_434 = arith.constant 0 : index
    %c0_435 = arith.constant 0 : index
    %c0_436 = arith.constant 0 : index
    %c0_437 = arith.constant 0 : index
    %593 = vector.load %arg12[%c0_434, %c0_435, %c0_436, %c0_437] : memref<1x8x16x16xf32, #tpu.memory_space<vmem>>, vector<1x8x16x16xf32>
    %594 = vector.shape_cast %593 : vector<1x8x16x16xf32> to vector<8x16x16xf32>
    %595 = arith.addf %592, %594 : vector<8x16x16xf32>
    %c0_438 = arith.constant 0 : index
    %c0_439 = arith.constant 0 : index
    %c0_440 = arith.constant 0 : index
    %c0_441 = arith.constant 0 : index
    %596 = vector.load %arg13[%c0_438, %c0_439, %c0_440, %c0_441] : memref<1x8x16x16xf32, #tpu.memory_space<vmem>>, vector<1x8x16x16xf32>
    %597 = vector.shape_cast %596 : vector<1x8x16x16xf32> to vector<8x16x16xf32>
    %598 = vector.shape_cast %595 : vector<8x16x16xf32> to vector<1x8x16x16xf32>
    tpu.vector_store %arg13[%c0_438, %c0_439, %c0_440, %c0_441], %598 {strides = array<i32>} : memref<1x8x16x16xf32, #tpu.memory_space<vmem>>, vector<1x8x16x16xf32>,
    return
  }
  func.func @transform_0(%arg0: i32, %arg1: i32) -> (i32, i32, i32, i32, i32) {
    %c0_i32 = arith.constant 0 : i32
    %c0_i32_0 = arith.constant 0 : i32
    %c0_i32_1 = arith.constant 0 : i32
    %c0_i32_2 = arith.constant 0 : i32
    return %arg0, %arg1, %c0_i32, %c0_i32_0, %c0_i32_1 : i32, i32, i32, i32, i32
  }
  func.func @transform_1(%arg0: i32, %arg1: i32) -> (i32, i32) {
    %c0_i32 = arith.constant 0 : i32
    %c0_i32_0 = arith.constant 0 : i32
    %c0_i32_1 = arith.constant 0 : i32
    return %c0_i32, %c0_i32_0 : i32, i32
  }
  func.func @transform_2(%arg0: i32, %arg1: i32) -> (i32, i32) {
    %c0_i32 = arith.constant 0 : i32
    %c0_i32_0 = arith.constant 0 : i32
    %c0_i32_1 = arith.constant 0 : i32
    return %c0_i32, %c0_i32_0 : i32, i32
  }
  func.func @transform_3(%arg0: i32, %arg1: i32) -> (i32, i32) {
    %c0_i32 = arith.constant 0 : i32
    %c0_i32_0 = arith.constant 0 : i32
    %c0_i32_1 = arith.constant 0 : i32
    return %c0_i32, %c0_i32_0 : i32, i32
  }
  func.func @transform_4(%arg0: i32, %arg1: i32) -> (i32, i32) {
    %c0_i32 = arith.constant 0 : i32
    %c0_i32_0 = arith.constant 0 : i32
    %c0_i32_1 = arith.constant 0 : i32
    return %c0_i32, %c0_i32_0 : i32, i32
  }
  func.func @transform_5(%arg0: i32, %arg1: i32) -> (i32, i32) {
    %c0_i32 = arith.constant 0 : i32
    %c0_i32_0 = arith.constant 0 : i32
    %c0_i32_1 = arith.constant 0 : i32
    return %c0_i32, %c0_i32_0 : i32, i32
  }
  func.func @transform_6(%arg0: i32, %arg1: i32) -> (i32, i32) {
    %c0_i32 = arith.constant 0 : i32
    %c0_i32_0 = arith.constant 0 : i32
    %c0_i32_1 = arith.constant 0 : i32
    return %c0_i32, %c0_i32_0 : i32, i32
  }
  func.func @transform_7(%arg0: i32, %arg1: i32) -> (i32, i32) {
    %c0_i32 = arith.constant 0 : i32
    %c0_i32_0 = arith.constant 0 : i32
    %c0_i32_1 = arith.constant 0 : i32
    return %c0_i32, %c0_i32_0 : i32, i32
  }
  func.func @transform_8(%arg0: i32, %arg1: i32) -> (i32, i32) {
    %c0_i32 = arith.constant 0 : i32
    %c0_i32_0 = arith.constant 0 : i32
    %c0_i32_1 = arith.constant 0 : i32
    return %c0_i32, %c0_i32_0 : i32, i32
  }
  func.func @transform_9(%arg0: i32, %arg1: i32) -> (i32, i32) {
    %c0_i32 = arith.constant 0 : i32
    %c0_i32_0 = arith.constant 0 : i32
    %c0_i32_1 = arith.constant 0 : i32
    return %c0_i32, %c0_i32_0 : i32, i32
  }
  func.func @transform_10(%arg0: i32, %arg1: i32) -> (i32, i32, i32, i32) {
    %c0_i32 = arith.constant 0 : i32
    %c0_i32_0 = arith.constant 0 : i32
    %c0_i32_1 = arith.constant 0 : i32
    return %arg0, %arg1, %c0_i32, %c0_i32_0 : i32, i32, i32, i32
  }
  func.func @transform_11(%arg0: i32, %arg1: i32) -> (i32, i32, i32, i32) {
    %c0_i32 = arith.constant 0 : i32
    %c0_i32_0 = arith.constant 0 : i32
    %c0_i32_1 = arith.constant 0 : i32
    return %arg0, %arg1, %c0_i32, %c0_i32_0 : i32, i32, i32, i32
  }
}

</mosaic_0001>

<bundles_post_ra>
// kernel: mv2_block_forward.1
= control target key start
LH: loop header
LB: loop body
LE: loop exit
PB: predicated region body
PF: predicated region fallthrough
CT: control target
= control target key end

     0   :  { %s4821_s17 = smov 0   ;;  %s4823_s18 = smov 0   ;;  %s6537_s0 = inlined_call_operand.vmem [shape: f32[2,2,10,18,16], index: 0, kind: input, shape index: {}]   ;;  %s6538_s1 = inlined_call_operand.vmem [shape: bf16[16,64], index: 1, kind: input, shape index: {}]   ;;  %s6539_s2 = inlined_call_operand.vmem [shape: f32[1,64], index: 2, kind: input, shape index: {}]   ;;  %s6540_s3 = inlined_call_operand.vmem [shape: f32[1,64], index: 3, kind: input, shape index: {}]   ;;  %s6541_s4 = inlined_call_operand.vmem [shape: f32[9,64], index: 4, kind: input, shape index: {}]   ;;  %s6542_s5 = inlined_call_operand.vmem [shape: f32[1,64], index: 5, kind: input, shape index: {}]   ;;  %s6543_s6 = inlined_call_operand.vmem [shape: f32[1,64], index: 6, kind: input, shape index: {}]   ;;  %s6544_s7 = inlined_call_operand.vmem [shape: bf16[64,16], index: 7, kind: input, shape index: {}]   ;;  %s6545_s8 = inlined_call_operand.vmem [shape: f32[1,16], index: 8, kind: input, shape index: {}]   ;;  %s6546_s9 = inlined_call_operand.vmem [shape: f32[1,16], index: 9, kind: input, shape index: {}]   ;;  %s6547_s10 = inlined_call_operand.vmem [shape: f32[2,16,16,16], index: 10, kind: input, shape index: {}]   ;;  %s6548_s11 = inlined_call_operand.vmem [shape: f32[2,16,16,16], index: 11, kind: output, shape index: {}]  }
   0x1   :  { %s4825_s19 = smov 0   ;;  %s4827_s20 = smov 0  }
   0x2   :  { %s4829_s21 = smov 0  }
   0x3 LB: > { %s30_s22 = sadd.s32 1, %s4750_s19  ;;  %s33_s23 = sadd.s32 1, %s4754_s20  ;;  %s4758_s21 = sphi %s4829_s21, %s21_s21   ;;  %s4754_s20 = sphi %s4827_s20, %s6674_s20   ;;  %s4750_s19 = sphi %s4825_s19, %s6673_s19   ;;  %s4746_s18 = sphi %s4823_s18, %s6672_s18   ;;  %s4742_s17 = sphi %s4821_s17, %s6671_s17  }
   0x4   : > { %p31_p0 = scmp.ge.s32.totalorder %s30_s22, 2  ;;  %p4233_p1 = scmp.ge.s32.totalorder %s4758_s21, 1 }
   0x5   : > { %p375_p2 = scmp.lt.s32.totalorder %s4758_s21, 5 }
   0x6   : > { %s6676_s22 = smov (%p31_p0, %s30_s22), 0  ;;  %s6678_s23 = smov (!%p31_p0, %s33_s23), %s4754_s20 }
   0x7   : > { %p376_p3 = pnand %p4233_p1, %p375_p2  ;;  %p35_p4 = scmp.ge.s32.totalorder %s6678_s23, 2 }
   0x9   : > { %s6680_s23 = smov (%p35_p4, %s6678_s23), 0  ;;  %379 = sbr.rel (%p376_p3) target bundleno = 734 (0x2de), region = 64 }
  0x10   : > { %v4530_v0 = vld [vmem:[%s6538_s1] sm:$0xff]   ;;  %p434_p5 = scmp.lt.s32.totalorder %s4746_s18, 1  ;;  %v530_v1 = vlaneseq  ;;  %p436_p6 = scmp.lt.s32.totalorder %s4742_s17, 1  ;;  %v4760_v2 = vmov 1983009808   ;;  %vm1361_vm0 = vcmask 130048  }
  0x11   : > { %4437 = vmatprep.subr.bf16.mxu0 %v4530_v0  ;;  %v528_v3 = vunpack.c.l.s4 %v4760_v2  ;;  %vm2736_vm4 = vcmask 517120   ;;  %vm2733_vm12 = vcmask 523264  }
  0x12   : > { %s6682_s18 = smov (!%p434_p5, %s4746_s18), 1  ;;  %4438 = vmatpush3.bf16.msra.mxu0 %v4530_v0  ;;  %v4860_v4 = vshrl.u32 %v530_v1, 7 }
  0x13   : > { %s437_s26 = scalar_select %p436_p6, %s4742_s17, 1  ;;  %v529_v5 = vunpack.c.0.s8 %v528_v3 }
  0x14   : > { %s4488_s27 = smul.u32 60, %s6682_s18  ;;  %vm2197_vm6 = vcmp.ge.s32.totalorder %v4860_v4, 1 }
  0x15   : > { %s4487_s28 = smul.u32 30, %s437_s26  ;;  %v4864_v6 = vsub.s32 %v529_v5, %v4860_v4  ;;  %s5047_s26 = sshll.u32 %s4742_s17, 3 }
  0x16   : > { %p446_p7 = scmp.lt.s32.totalorder %s5047_s26, 15 }
  0x17   : > { %s440_s29 = sadd.s32 %s4488_s27, %s4487_s28 }
  0x18   : > { %s4234_s30 = sshll.u32 %s440_s29, 3 }
  0x19   : > { %s4869_s14 = scalar_lea.vmem %s6537_s0, %s4234_s30 }
  0x1a   : > { %v466_v7 = vld [vmem:[%s4869_s14] sm:$0xff]  ;;  %v467_v8 = vld [vmem:[%s4869_s14 + $0x8] sm:$0xff]  ;;  %v469_v13 = vld [vmem:[%s4869_s14 + $0x18] sm:$0xff] }
  0x1b   : > { %v526_v9 = vcombine.high %v466_v7, %v466_v7  ;;  %v533_v10 = vrot.slane %v466_v7, %v4864_v6  ;;  %v543_v11 = vcombine.high %v467_v8, %v467_v8  ;;  %v550_v12 = vrot.slane %v467_v8, %v4864_v6  ;;  %v470_v14 = vld [vmem:[%s4869_s14 + $0x20] sm:$0xff]  ;;  %v4243_v23 = vld.sshfl [vmem:[%s4869_s14 + $0x10] sm:$0x3 pattern:$0x76325410]  ;;  %v473_v41 = vld [vmem:[%s4869_s14 + $0x38] sm:$0xff] }
  0x1c   : > { %v567_v15 = vcombine.high %v469_v13, %v469_v13  ;;  %v574_v16 = vrot.slane %v469_v13, %v4864_v6  ;;  %v584_v17 = vcombine.high %v470_v14, %v470_v14  ;;  %v591_v18 = vrot.slane %v470_v14, %v4864_v6  ;;  %v472_v36 = vld [vmem:[%s4869_s14 + $0x30] sm:$0xff]  ;;  %v4244_v46 = vld.sshfl [vmem:[%s4869_s14 + $0x28] sm:$0x3 pattern:$0x76325410] }
  0x1d   : > { %v540_v19 = vrot.slane %v526_v9, %v4864_v6  ;;  %v541_v20 = vcombine.high %v533_v10, %v533_v10  ;;  %v557_v21 = vrot.slane %v543_v11, %v4864_v6  ;;  %v558_v22 = vcombine.high %v550_v12, %v550_v12  ;;  %v475_v55 = vld [vmem:[%s4869_s14 + $0x48] sm:$0xff]  ;;  %v476_v63 = vld [vmem:[%s4869_s14 + $0x50] sm:$0xff] }
  0x1e   : > { %v581_v24 = vrot.slane %v567_v15, %v4864_v6  ;;  %v582_v25 = vcombine.high %v574_v16, %v574_v16  ;;  %v598_v26 = vrot.slane %v584_v17, %v4864_v6  ;;  %v599_v27 = vcombine.high %v591_v18, %v591_v18 }
  0x1f   : > { %v542_v28 = vcombine.high %v540_v19, %v540_v19  ;;  %v559_v29 = vcombine.high %v557_v21, %v557_v21  ;;  %v936_v30 = vcombine.low %v533_v10, %v541_v20  ;;  %v953_v31 = vcombine.low %v550_v12, %v558_v22  ;;  %v4245_v10 = vld.sshfl [vmem:[%s4869_s14 + $0x40] sm:$0x3 pattern:$0x76325410] }
  0x20   : > { %v583_v32 = vcombine.high %v581_v24, %v581_v24  ;;  %v970_v33 = vcombine.low %v4243_v23, %v574_v16  ;;  %v971_v34 = vcombine.low %v582_v25, %v581_v24  ;;  %v988_v35 = vcombine.low %v599_v27, %v598_v26  ;;  %v478_v24 = vld [vmem:[%s4869_s14 + $0x60] sm:$0xff] }
  0x21   : > { %v937_v37 = vcombine.low %v540_v19, %v542_v28  ;;  %v944_v38 = vrot.slane %v936_v30, %v4864_v6  ;;  %v954_v39 = vcombine.low %v557_v21, %v559_v29  ;;  %v961_v40 = vrot.slane %v953_v31, %v4864_v6 }
  0x22   : > { %v978_v42 = vrot.slane %v970_v33, %v4864_v6  ;;  %v985_v43 = vrot.slane %v971_v34, %v4864_v6  ;;  %v987_v44 = vcombine.low %v583_v32, %v591_v18  ;;  %v1002_v45 = vrot.slane %v988_v35, %v4864_v6  ;;  %v4246_v33 = vld.sshfl [vmem:[%s4869_s14 + $0x58] sm:$0x3 pattern:$0x76325410] }
  0x23   : > { %v951_v47 = vrot.slane %v937_v37, %v4864_v6  ;;  %v968_v48 = vrot.slane %v954_v39, %v4864_v6  ;;  %v600_v49 = vcombine.high %v598_v26, %v598_v26  ;;  %v608_v50 = vcombine.high %v472_v36, %v472_v36 }
  0x24   : > { %v986_v51 = vcombine.low %v978_v42, %v985_v43  ;;  %v995_v52 = vrot.slane %v987_v44, %v4864_v6  ;;  %v615_v53 = vrot.slane %v472_v36, %v4864_v6  ;;  %v632_v54 = vrot.slane %v473_v41, %v4864_v6  ;;  %v481_v43 = vld [vmem:[%s4869_s14 + $0x78] sm:$0xff] }
  0x25   : > { %v952_v56 = vcombine.low %v944_v38, %v951_v47  ;;  %v969_v57 = vcombine.low %v961_v40, %v968_v48  ;;  %v622_v58 = vrot.slane %v608_v50, %v4864_v6  ;;  %v1004_v59 = vcombine.low %v600_v49, %v4244_v46  ;;  %v479_v38 = vld [vmem:[%s4869_s14 + $0x68] sm:$0xff] }
  0x26   : > { %v1003_v60 = vcombine.low %v995_v52, %v1002_v45  ;;  %v623_v61 = vcombine.high %v615_v53, %v615_v53  ;;  %v640_v62 = vcombine.high %v632_v54, %v632_v54  ;;  %v625_v0 = vcombine.high %v473_v41, %v473_v41 }
  0x27   : > { %v1341_v1 = vpack.c.bf16 %v969_v57, %v952_v56  ;;  %v624_v2 = vcombine.high %v622_v58, %v622_v58  ;;  %v1012_v3 = vrot.slane %v1004_v59, %v4864_v6  ;;  %v649_v5 = vcombine.high %v475_v55, %v475_v55 }
  0x28   : > { %v1342_v7 = vpack.c.bf16 %v1003_v60, %v986_v51  ;;  %v1005_v8 = vcombine.low %v615_v53, %v623_v61  ;;  %v1022_v9 = vcombine.low %v632_v54, %v640_v62  ;;  %v639_v11 = vrot.slane %v625_v0, %v4864_v6  ;;  %v482_v61 = vld [vmem:[%s4869_s14 + $0x80] sm:$0xff] }
  0x29   : > { %4439 = vmatprep.mubr.msk.bf16.mxu0 %vm1361_vm0, %v1341_v1  ;;  %v1021_v12 = vcombine.low %v622_v58, %v624_v2  ;;  %v656_v13 = vrot.slane %v475_v55, %v4864_v6  ;;  %v663_v14 = vrot.slane %v649_v5, %v4864_v6  ;;  %v673_v15 = vrot.slane %v476_v63, %v4864_v6  ;;  %v4247_v55 = vld.sshfl [vmem:[%s4869_s14 + $0x70] sm:$0x3 pattern:$0x76325410] }
  0x2a   : > { %4440 = vmatmul.mubr.msk.bf16.vlgmr.msra.gmra.mrb[0].mxu0 %vm1361_vm0, %v1342_v7  ;;  %v1019_v16 = vrot.slane %v1005_v8, %v4864_v6  ;;  %v1036_v17 = vrot.slane %v1022_v9, %v4864_v6  ;;  %v641_v18 = vcombine.high %v639_v11, %v639_v11  ;;  %v666_v19 = vcombine.high %v476_v63, %v476_v63  ;;  %v484_v8 = vld [vmem:[%s4869_s14 + $0x90] sm:$0xff] }
  0x2b   : > { %v1029_v20 = vrot.slane %v1021_v12, %v4864_v6  ;;  %v664_v21 = vcombine.high %v656_v13, %v656_v13  ;;  %v665_v22 = vcombine.high %v663_v14, %v663_v14  ;;  %v1039_v23 = vcombine.low %v4245_v10, %v656_v13 }
  0x2c   : > { %v1020_v25 = vcombine.low %v1012_v3, %v1019_v16  ;;  %v1038_v26 = vcombine.low %v639_v11, %v641_v18  ;;  %v680_v27 = vrot.slane %v666_v19, %v4864_v6  ;;  %v681_v28 = vcombine.high %v673_v15, %v673_v15 }
  0x2d   : > { %v1037_v29 = vcombine.low %v1029_v20, %v1036_v17  ;;  %v1053_v30 = vrot.slane %v1039_v23, %v4864_v6  ;;  %v1055_v31 = vcombine.low %v664_v21, %v663_v14  ;;  %v1056_v32 = vcombine.low %v665_v22, %v673_v15  ;;  %v4248_v23 = vld.sshfl [vmem:[%s4869_s14 + $0x88] sm:$0x3 pattern:$0x76325410] }
  0x2e   : > { %v1046_v34 = vrot.slane %v1038_v26, %v4864_v6  ;;  %v682_v35 = vcombine.high %v680_v27, %v680_v27  ;;  %v690_v36 = vcombine.high %v478_v24, %v478_v24  ;;  %v697_v37 = vrot.slane %v478_v24, %v4864_v6 }
  0x2f   : > { %v1343_v39 = vpack.c.bf16 %v1037_v29, %v1020_v25  ;;  %v1063_v40 = vrot.slane %v1055_v31, %v4864_v6  ;;  %v1070_v41 = vrot.slane %v1056_v32, %v4864_v6  ;;  %v1072_v42 = vcombine.low %v681_v28, %v680_v27  ;;  %v485_v25 = vld [vmem:[%s4869_s14 + $0x98] sm:$0xff]  ;;  %v487_v31 = vld [vmem:[%s4869_s14 + $0xa8] sm:$0xff] }
  0x30   : > { %v1054_v44 = vcombine.low %v1046_v34, %v1053_v30  ;;  %v704_v45 = vrot.slane %v690_v36, %v4864_v6  ;;  %v705_v46 = vcombine.high %v697_v37, %v697_v37  ;;  %v1073_v47 = vcombine.low %v682_v35, %v4246_v33 }
  0x31   : > { %4443 = vmatprep.mubr.msk.bf16.mxu0 %vm1361_vm0, %v1343_v39  ;;  %v1071_v48 = vcombine.low %v1063_v40, %v1070_v41  ;;  %v1080_v49 = vrot.slane %v1072_v42, %v4864_v6  ;;  %v707_v50 = vcombine.high %v479_v38, %v479_v38  ;;  %v714_v51 = vrot.slane %v479_v38, %v4864_v6  ;;  %v4249_v39 = vld.sshfl [vmem:[%s4869_s14 + $0xa0] sm:$0x3 pattern:$0x76325410] }
  0x32   : > { %v706_v52 = vcombine.high %v704_v45, %v704_v45  ;;  %v1087_v53 = vrot.slane %v1073_v47, %v4864_v6  ;;  %v1089_v54 = vcombine.low %v697_v37, %v705_v46  ;;  %v731_v56 = vcombine.high %v481_v43, %v481_v43 }
  0x33   : > { %v1344_v57 = vpack.c.bf16 %v1071_v48, %v1054_v44  ;;  %v721_v58 = vrot.slane %v707_v50, %v4864_v6  ;;  %v722_v59 = vcombine.high %v714_v51, %v714_v51  ;;  %v738_v60 = vrot.slane %v481_v43, %v4864_v6 }
  0x34   : > { %v1088_v62 = vcombine.low %v1080_v49, %v1087_v53  ;;  %v1090_v63 = vcombine.low %v704_v45, %v706_v52  ;;  %v1097_v0 = vrot.slane %v1089_v54, %v4864_v6  ;;  %v745_v1 = vrot.slane %v731_v56, %v4864_v6  ;;  %v488_v45 = vld [vmem:[%s4869_s14 + $0xb0] sm:$0xff] }
  0x35   : > { %4444 = vmatmul.mubr.msk.bf16.gmra.mrb[4].mxu0 %vm1361_vm0, %v1344_v57  ;;  %v723_v2 = vcombine.high %v721_v58, %v721_v58  ;;  %v746_v3 = vcombine.high %v738_v60, %v738_v60  ;;  %v1106_v5 = vcombine.low %v714_v51, %v722_v59  ;;  %v1123_v7 = vcombine.low %v4247_v55, %v738_v60 }
  0x36   : > { %v1104_v9 = vrot.slane %v1090_v63, %v4864_v6  ;;  %v747_v10 = vcombine.high %v745_v1, %v745_v1  ;;  %v748_v11 = vcombine.high %v482_v61, %v482_v61  ;;  %v755_v12 = vrot.slane %v482_v61, %v4864_v6 }
  0x37   : > { %v1107_v13 = vcombine.low %v721_v58, %v723_v2  ;;  %v1114_v14 = vrot.slane %v1106_v5, %v4864_v6  ;;  %v1124_v15 = vcombine.low %v746_v3, %v745_v1  ;;  %v1131_v16 = vrot.slane %v1123_v7, %v4864_v6  ;;  %v490_v58 = vld [vmem:[%s4869_s14 + $0xc0] sm:$0xff]  ;;  %v4250_v5 = vld.sshfl [vmem:[%s4869_s14 + $0xb8] sm:$0x3 pattern:$0x76325410] }
  0x38   : > { %v1105_v17 = vcombine.low %v1097_v0, %v1104_v9  ;;  %v762_v18 = vrot.slane %v748_v11, %v4864_v6  ;;  %v763_v19 = vcombine.high %v755_v12, %v755_v12  ;;  %v779_v20 = vrot.slane %v484_v8, %v4864_v6 }
  0x39   : > { %v1121_v21 = vrot.slane %v1107_v13, %v4864_v6  ;;  %v1138_v22 = vrot.slane %v1124_v15, %v4864_v6  ;;  %v1140_v24 = vcombine.low %v747_v10, %v755_v12  ;;  %v772_v26 = vcombine.high %v484_v8, %v484_v8  ;;  %v491_v13 = vld [vmem:[%s4869_s14 + $0xc8] sm:$0xff] }
  0x3a   : > { %v1345_v27 = vpack.c.bf16 %v1105_v17, %v1088_v62  ;;  %v764_v28 = vcombine.high %v762_v18, %v762_v18  ;;  %v787_v29 = vcombine.high %v779_v20, %v779_v20  ;;  %v1141_v30 = vcombine.low %v763_v19, %v762_v18 }
  0x3b   : > { %v1122_v32 = vcombine.low %v1114_v14, %v1121_v21  ;;  %v1139_v33 = vcombine.low %v1131_v16, %v1138_v22  ;;  %v1148_v34 = vrot.slane %v1140_v24, %v4864_v6  ;;  %v786_v35 = vrot.slane %v772_v26, %v4864_v6 }
  0x3c   : > { %4447 = vmatprep.mubr.msk.bf16.mxu0 %vm1361_vm0, %v1345_v27  ;;  %v1155_v36 = vrot.slane %v1141_v30, %v4864_v6  ;;  %v1157_v37 = vcombine.low %v764_v28, %v4248_v23  ;;  %v1158_v38 = vcombine.low %v779_v20, %v787_v29  ;;  %v789_v40 = vcombine.high %v485_v25, %v485_v25  ;;  %v493_v27 = vld [vmem:[%s4869_s14 + $0xd8] sm:$0xff] }
  0x3d   : > { %v1346_v41 = vpack.c.bf16 %v1139_v33, %v1122_v32  ;;  %v788_v42 = vcombine.high %v786_v35, %v786_v35  ;;  %v796_v43 = vrot.slane %v485_v25, %v4864_v6  ;;  %v820_v44 = vrot.slane %v487_v31, %v4864_v6  ;;  %v494_v32 = vld [vmem:[%s4869_s14 + $0xe0] sm:$0xff] }
  0x3e   : > { %v1156_v46 = vcombine.low %v1148_v34, %v1155_v36  ;;  %v1165_v47 = vrot.slane %v1157_v37, %v4864_v6  ;;  %v1172_v48 = vrot.slane %v1158_v38, %v4864_v6  ;;  %v803_v49 = vrot.slane %v789_v40, %v4864_v6 }
  0x3f   : > { %4448 = vmatmul.mubr.msk.bf16.gmra.mrb[8].mxu0 %vm1361_vm0, %v1346_v41  ;;  %v804_v50 = vcombine.high %v796_v43, %v796_v43  ;;  %v1174_v51 = vcombine.low %v786_v35, %v788_v42  ;;  %v1192_v52 = vcombine.low %v4249_v39, %v820_v44  ;;  %v813_v53 = vcombine.high %v487_v31, %v487_v31 }
  0x40   : > { %v1173_v54 = vcombine.low %v1165_v47, %v1172_v48  ;;  %v805_v55 = vcombine.high %v803_v49, %v803_v49  ;;  %v828_v56 = vcombine.high %v820_v44, %v820_v44  ;;  %v830_v57 = vcombine.high %v488_v45, %v488_v45  ;;  %v4251_v44 = vld.sshfl [vmem:[%s4869_s14 + $0xd0] sm:$0x3 pattern:$0x76325410] }
  0x41   : > { %v1175_v59 = vcombine.low %v796_v43, %v804_v50  ;;  %v1182_v60 = vrot.slane %v1174_v51, %v4864_v6  ;;  %v1206_v61 = vrot.slane %v1192_v52, %v4864_v6  ;;  %v827_v62 = vrot.slane %v813_v53, %v4864_v6 }
  0x42   : > { %v1347_v63 = vpack.c.bf16 %v1173_v54, %v1156_v46  ;;  %v1191_v0 = vcombine.low %v803_v49, %v805_v55  ;;  %v837_v1 = vrot.slane %v488_v45, %v4864_v6  ;;  %v844_v2 = vrot.slane %v830_v57, %v4864_v6  ;;  %v4252_v57 = vld.sshfl [vmem:[%s4869_s14 + $0xe8] sm:$0x3 pattern:$0x76325410]  ;;  %s4237_s14 = sshll.u32 %s6682_s18, 5 }
  0x43   : > { %v1189_v3 = vrot.slane %v1175_v59, %v4864_v6  ;;  %v829_v7 = vcombine.high %v827_v62, %v827_v62  ;;  %v1208_v8 = vcombine.low %v828_v56, %v827_v62  ;;  %v854_v9 = vcombine.high %v490_v58, %v490_v58 }
  0x44   : > { %4451 = vmatprep.mubr.msk.bf16.mxu0 %vm1361_vm0, %v1347_v63  ;;  %v1199_v10 = vrot.slane %v1191_v0, %v4864_v6  ;;  %v845_v11 = vcombine.high %v837_v1, %v837_v1  ;;  %v846_v12 = vcombine.high %v844_v2, %v844_v2  ;;  %v861_v14 = vrot.slane %v490_v58, %v4864_v6 }
  0x45   : > { %v1190_v15 = vcombine.low %v1182_v60, %v1189_v3  ;;  %v1209_v16 = vcombine.low %v829_v7, %v837_v1  ;;  %v1216_v17 = vrot.slane %v1208_v8, %v4864_v6  ;;  %v868_v18 = vrot.slane %v854_v9, %v4864_v6 }
  0x46   : > { %v1207_v19 = vcombine.low %v1199_v10, %v1206_v61  ;;  %v1225_v20 = vcombine.low %v845_v11, %v844_v2  ;;  %v1226_v21 = vcombine.low %v846_v12, %v4250_v5  ;;  %v869_v22 = vcombine.high %v861_v14, %v861_v14 }
  0x47   : > { %v1223_v23 = vrot.slane %v1209_v16, %v4864_v6  ;;  %v870_v24 = vcombine.high %v868_v18, %v868_v18  ;;  %v871_v25 = vcombine.high %v491_v13, %v491_v13  ;;  %v878_v26 = vrot.slane %v491_v13, %v4864_v6  ;;  %v5001_v13 = vld [vmem:[%s6539_s2] ss:$0 sm:$0xff] }
  0x48   : > { %v1348_v28 = vpack.c.bf16 %v1207_v19, %v1190_v15  ;;  %v1233_v29 = vrot.slane %v1225_v20, %v4864_v6  ;;  %v1240_v30 = vrot.slane %v1226_v21, %v4864_v6  ;;  %v1242_v31 = vcombine.low %v861_v14, %v869_v22  ;;  %v5006_v15 = vld [vmem:[%s6540_s3] ss:$0 sm:$0xff] }
  0x49   : > { %v1224_v33 = vcombine.low %v1216_v17, %v1223_v23  ;;  %v885_v34 = vrot.slane %v871_v25, %v4864_v6  ;;  %v886_v35 = vcombine.high %v878_v26, %v878_v26  ;;  %v1243_v36 = vcombine.low %v868_v18, %v870_v24 }
  0x4a   : > { %4452 = vmatmul.mubr.msk.bf16.gmra.mrb[12].mxu0 %vm1361_vm0, %v1348_v28  ;;  %v1241_v37 = vcombine.low %v1233_v29, %v1240_v30  ;;  %v1250_v38 = vrot.slane %v1242_v31, %v4864_v6  ;;  %v895_v39 = vcombine.high %v493_v27, %v493_v27  ;;  %v902_v40 = vrot.slane %v493_v27, %v4864_v6 }
  0x4b   : > { %v887_v41 = vcombine.high %v885_v34, %v885_v34  ;;  %v1257_v42 = vrot.slane %v1243_v36, %v4864_v6  ;;  %v1259_v43 = vcombine.low %v878_v26, %v886_v35  ;;  %v912_v45 = vcombine.high %v494_v32, %v494_v32 }
  0x4c   : > { %v1349_v46 = vpack.c.bf16 %v1241_v37, %v1224_v33  ;;  %v909_v47 = vrot.slane %v895_v39, %v4864_v6  ;;  %v910_v48 = vcombine.high %v902_v40, %v902_v40  ;;  %v919_v49 = vrot.slane %v494_v32, %v4864_v6 }
  0x4d   : > { %v1260_v50 = vcombine.low %v885_v34, %v887_v41  ;;  %v1267_v51 = vrot.slane %v1259_v43, %v4864_v6  ;;  %v926_v52 = vrot.slane %v912_v45, %v4864_v6  ;;  %v1276_v55 = vcombine.low %v4251_v44, %v902_v40 }
  0x4e   : > { %4455 = vmatprep.mubr.msk.bf16.mxu0 %vm1361_vm0, %v1349_v46  ;;  %v911_v53 = vcombine.high %v909_v47, %v909_v47  ;;  %v927_v54 = vcombine.high %v919_v49, %v919_v49  ;;  %v1277_v56 = vcombine.low %v910_v48, %v909_v47  ;;  %v1258_v58 = vcombine.low %v1250_v38, %v1257_v42 }
  0x4f   : > { %v1274_v59 = vrot.slane %v1260_v50, %v4864_v6  ;;  %v928_v60 = vcombine.high %v926_v52, %v926_v52  ;;  %v1284_v61 = vrot.slane %v1276_v55, %v4864_v6 }
  0x50   : > { %v1291_v62 = vrot.slane %v1277_v56, %v4864_v6  ;;  %v1293_v63 = vcombine.low %v911_v53, %v919_v49  ;;  %v1294_v0 = vcombine.low %v927_v54, %v926_v52 }
  0x51   : > { %v1275_v1 = vcombine.low %v1267_v51, %v1274_v59  ;;  %v1310_v2 = vcombine.low %v928_v60, %v4252_v57  ;;  %v5053_v59 = vadd.s32 16, %v4860_v4 }
  0x52   : > { %v1292_v3 = vcombine.low %v1284_v61, %v1291_v62  ;;  %v1301_v5 = vrot.slane %v1293_v63, %v4864_v6  ;;  %v1308_v7 = vrot.slane %v1294_v0, %v4864_v6  ;;  %v5061_v0 = vstv %s5047_s26  ;;  %s6684_s26 = smov (!%p446_p7, %s5047_s26), 15 }
  0x53   : > { %v1350_v8 = vpack.c.bf16 %v1275_v1, %v1258_v58  ;;  %v1317_v10 = vrot.slane %v1310_v2, %v4864_v6  ;;  %vm2167_vm1 = vcmp.ge.s32.totalorder %v5061_v0, 1  ;;  %vm2177_vm2 = vcmp.le.s32.totalorder %v5061_v0, 16  ;;  %s4236_s13 = sshll.u32 %s6684_s26, 1 }
  0x54   : > { %v1309_v9 = vcombine.low %v1301_v5, %v1308_v7  ;;  %v5072_v7 = vadd.s32 1, %v5061_v0  ;;  %vm2232_vm3 = vcmp.le.s32.totalorder %v5053_v59, 16  ;;  %vm5090_vm5 = vmand %vm2167_vm1, %vm2177_vm2  ;;  %s450_s15 = sadd.s32 %s4237_s14, %s4236_s13 }
  0x55   : > { %4456 = vmatmul.mubr.msk.bf16.gmra.mrb[16].mxu0 %vm1361_vm0, %v1350_v8  ;;  %v1352_v12 = vpack.c.bf16 %v1317_v10, %v1317_v10  ;;  %vm5114_vm11 = vmand %vm5090_vm5, %vm2232_vm3  ;;  %s4238_s16 = sshll.u32 %s450_s15, 3 }
  0x56   : > { %v1351_v11 = vpack.c.bf16 %v1309_v9, %v1292_v3  ;;  %vm2168_vm7 = vcmp.ge.s32.totalorder %v5072_v7, 1  ;;  %vm2178_vm8 = vcmp.le.s32.totalorder %v5072_v7, 16  ;;  %vm5159_vm15 = vmand %vm5090_vm5, %vm2197_vm6  ;;  %s6430_s28 = scalar_lea.vmem %s6547_s10, %s4238_s16  ;;  %s6446_s12 = scalar_lea.vmem %s6548_s11, %s4238_s16 }
  0x57   : > { %vm5138_vm13 = vmand %vm2168_vm7, %vm2178_vm8 }
  0x58   : > { %4459 = vmatprep.mubr.msk.bf16.mxu0 %vm1361_vm0, %v1351_v11  ;;  %vm5150_vm14 = vmand %vm5138_vm13, %vm2197_vm6 }
  0x59   : > { %vm5209_vm7 = vmand %vm5138_vm13, %vm2232_vm3 }
  0x5d   : > { %4460 = vmatmul.mubr.msk.bf16.gmra.mrb[20].mxu0 %vm1361_vm0, %v1352_v12  ;;  %v5079_v12 = vadd.s32 2, %v5061_v0 }
  0x5f   : > { %vm2169_vm9 = vcmp.ge.s32.totalorder %v5079_v12, 1  ;;  %vm2179_vm10 = vcmp.le.s32.totalorder %v5079_v12, 16 }
  0x60   : > { %vm5172_vm1 = vmand %vm2169_vm9, %vm2179_vm10 }
  0x61   : > { %vm5197_vm2 = vmand %vm5172_vm1, %vm2232_vm3 }
  0xfd   : > { %v4441_v14 = vpop.f32.mrb[0].mxu0 }
  0xfe   : > { %v1535_v16 = vmul.f32 %v4441_v14, %v5001_v13  ;;  %v1432_v17 = vpop.f32.mrb[1].mxu0 }
  0xff   : > { %v1533_v18 = vmul.f32 %v5001_v13, %v1432_v17  ;;  %v4442_v19 = vpop.f32.mrb[2].mxu0 }
 0x100   : > { %v5011_v20 = vadd.f32 %v5006_v15, %v1535_v16  ;;  %v1536_v21 = vmul.f32 %v4442_v19, %v5001_v13  ;;  %v1435_v22 = vpop.f32.mrb[3].mxu0 }
 0x101   : > { %v5015_v23 = vadd.f32 %v5006_v15, %v1533_v18  ;;  %v1534_v24 = vmul.f32 %v5001_v13, %v1435_v22  ;;  %v5232_v22 = vld [vmem:[%s6541_s4 + $0x3] ss:$0 sm:$0xff] }
 0x102   : > { %v4270_v25 = vmul.f32 -1.442695, %v5011_v20  ;;  %v5020_v26 = vadd.f32 %v5006_v15, %v1536_v21 }
 0x103   : > { %v4268_v27 = vmul.f32 -1.442695, %v5015_v23  ;;  %v5024_v28 = vadd.f32 %v5006_v15, %v1534_v24 }
 0x104   : > { %4555 = vpow2.f32 %v4270_v25  ;;  %v4271_v29 = vmul.f32 -1.442695, %v5020_v26 }
 0x105   : > { %4557 = vpow2.f32 %v4268_v27  ;;  %v4269_v30 = vmul.f32 -1.442695, %v5024_v28 }
 0x106   : > { %4559 = vpow2.f32 %v4271_v29 }
 0x107   : > { %4561 = vpow2.f32 %v4269_v30 }
 0x108   : > { %v4445_v31 = vpop.f32.mrb[4].mxu0 }
 0x109   : > { %v1539_v32 = vmul.f32 %v4445_v31, %v5001_v13  ;;  %v1448_v33 = vpop.f32.mrb[5].mxu0 }
 0x10a   : > { %v1537_v34 = vmul.f32 %v5001_v13, %v1448_v33  ;;  %v4446_v35 = vpop.f32.mrb[6].mxu0 }
 0x10b   : > { %v5031_v36 = vadd.f32 %v5006_v15, %v1539_v32  ;;  %v1451_v37 = vpop.f32.mrb[7].mxu0  ;;  %v1540_v39 = vmul.f32 %v4446_v35, %v5001_v13 }
 0x10c   : > { %v5034_v38 = vadd.f32 %v5006_v15, %v1537_v34  ;;  %v1538_v41 = vmul.f32 %v5001_v13, %v1451_v37  ;;  %v5248_v34 = vadd.s32 5, %v5061_v0 }
 0x10d   : > { %v4274_v40 = vmul.f32 -1.442695, %v5031_v36  ;;  %v5041_v48 = vadd.f32 %v5006_v15, %v1540_v39 }
 0x10e   : > { %v4556_v42 = vpop.eup %4555  ;;  %v4272_v43 = vmul.f32 -1.442695, %v5034_v38  ;;  %v5044_v51 = vadd.f32 %v5006_v15, %v1538_v41 }
 0x10f   : > { %v4558_v44 = vpop.eup %4557  ;;  %v1657_v45 = vadd.f32 1.0, %v4556_v42  ;;  %4563 = vpow2.f32 %v4274_v40  ;;  %v4275_v56 = vmul.f32 -1.442695, %v5041_v48 }
 0x110   : > { %v4560_v46 = vpop.eup %4559  ;;  %v1655_v47 = vadd.f32 1.0, %v4558_v44  ;;  %4565 = vpow2.f32 %v4272_v43  ;;  %v4273_v60 = vmul.f32 -1.442695, %v5044_v51 }
 0x111   : > { %v4562_v49 = vpop.eup %4561  ;;  %4567 = vrcp.f32 %v1657_v45  ;;  %v1658_v50 = vadd.f32 1.0, %v4560_v46 }
 0x112   : > { %4569 = vrcp.f32 %v1655_v47  ;;  %v1656_v52 = vadd.f32 1.0, %v4562_v49  ;;  %v4449_v53 = vpop.f32.mrb[8].mxu0 }
 0x113   : > { %4571 = vrcp.f32 %v1658_v50  ;;  %v1543_v54 = vmul.f32 %v4449_v53, %v5001_v13  ;;  %v1464_v55 = vpop.f32.mrb[9].mxu0 }
 0x114   : > { %4573 = vrcp.f32 %v1656_v52  ;;  %v1541_v57 = vmul.f32 %v5001_v13, %v1464_v55  ;;  %v4450_v58 = vpop.f32.mrb[10].mxu0 }
 0x115   : > { %v5057_v61 = vadd.f32 %v5006_v15, %v1543_v54  ;;  %v1544_v62 = vmul.f32 %v4450_v58, %v5001_v13  ;;  %v1467_v63 = vpop.f32.mrb[11].mxu0  ;;  %4575 = vpow2.f32 %v4275_v56 }
 0x116   : > { %v5064_v1 = vadd.f32 %v5006_v15, %v1541_v57  ;;  %v1542_v2 = vmul.f32 %v5001_v13, %v1467_v63  ;;  %4577 = vpow2.f32 %v4273_v60 }
 0x117   : > { %v4278_v3 = vmul.f32 -1.442695, %v5057_v61  ;;  %v5069_v5 = vadd.f32 %v5006_v15, %v1544_v62 }
 0x118   : > { %v4276_v8 = vmul.f32 -1.442695, %v5064_v1  ;;  %v5082_v14 = vadd.f32 %v5006_v15, %v1542_v2 }
 0x119   : > { %v4564_v9 = vpop.eup %4563  ;;  %4579 = vpow2.f32 %v4278_v3  ;;  %v4279_v18 = vmul.f32 -1.442695, %v5069_v5 }
 0x11a   : > { %v4566_v10 = vpop.eup %4565  ;;  %v1661_v11 = vadd.f32 1.0, %v4564_v9  ;;  %4581 = vpow2.f32 %v4276_v8 }
 0x11b   : > { %v4568_v16 = vpop.eup %4567  ;;  %v1659_v17 = vadd.f32 1.0, %v4566_v10 }
 0x11c   : > { %v4570_v19 = vpop.eup %4569  ;;  %v1726_v21 = vmul.f32 %v4568_v16, %v5011_v20  ;;  %4583 = vrcp.f32 %v1661_v11  ;;  %v5099_v20 = vadd.s32 3, %v5061_v0 }
 0x11d   : > { %v4572_v24 = vpop.eup %4571  ;;  %v1724_v25 = vmul.f32 %v4570_v19, %v5015_v23  ;;  %4585 = vrcp.f32 %v1659_v17  ;;  %v5101_v27 = vpop.f32.mrb[12].mxu0  ;;  %v4277_v23 = vmul.f32 -1.442695, %v5082_v14 }
 0x11e   : > { %v4574_v29 = vpop.eup %4573  ;;  %v1804_v30 = vcombine.high %v1726_v21, %v1726_v21  ;;  %v1811_v31 = vrot.slane %v1726_v21, %v4864_v6  ;;  %v1727_v32 = vmul.f32 %v4572_v24, %v5020_v26  ;;  %v5108_v33 = vpop.f32.mrb[13].mxu0  ;;  %4587 = vpow2.f32 %v4279_v18 }
 0x11f   : > { %v1770_v35 = vcombine.high %v1724_v25, %v1724_v25  ;;  %v1777_v37 = vrot.slane %v1724_v25, %v4864_v6  ;;  %v1725_v26 = vmul.f32 %v4574_v29, %v5024_v28  ;;  %v5120_v39 = vpop.f32.mrb[14].mxu0  ;;  %v4576_v50 = vpop.eup %4575  ;;  %4589 = vpow2.f32 %v4277_v23 }
 0x120   : > { %v1818_v40 = vrot.slane %v1804_v30, %v4864_v6  ;;  %v1819_v41 = vcombine.high %v1811_v31, %v1811_v31  ;;  %v2303_v42 = vrot.slane %v1811_v31, %v4864_v6  ;;  %v1821_v43 = vcombine.high %v1727_v32, %v1727_v32  ;;  %v5124_v44 = vpop.f32.mrb[15].mxu0  ;;  %v4578_v55 = vpop.eup %4577 }
 0x121   : > { %v1784_v45 = vrot.slane %v1770_v35, %v4864_v6  ;;  %v1785_v46 = vcombine.high %v1777_v37, %v1777_v37  ;;  %v1828_v47 = vrot.slane %v1727_v32, %v4864_v6  ;;  %v1787_v49 = vcombine.high %v1725_v26, %v1725_v26 }
 0x122   : > { %v2304_v28 = vcombine.low %v1819_v41, %v1818_v40  ;;  %v2705_v52 = vsel %vm5114_vm11, %v2303_v42, 0.0  ;;  %v1820_v53 = vcombine.high %v1818_v40, %v1818_v40  ;;  %v1835_v54 = vrot.slane %v1821_v43, %v4864_v6 }
 0x123   : > { %2737 = vst.msk [vmem:[#allocation2 + $0x10] sm:$0x3] %vm2736_vm4, %v2705_v52  ;;  %v1786_v56 = vcombine.high %v1784_v45, %v1784_v45  ;;  %v2263_v57 = vcombine.low %v1777_v37, %v1785_v46  ;;  %v1836_v58 = vcombine.high %v1828_v47, %v1828_v47  ;;  %v1794_v60 = vrot.slane %v1725_v26, %v4864_v6  ;;  %v4580_v62 = vpop.eup %4579 }
 0x124   : > { %v2312_v63 = vrot.slane %v2304_v28, %v4864_v6  ;;  %v2305_v3 = vcombine.low %v1820_v53, %v1828_v47  ;;  %v1801_v8 = vrot.slane %v1787_v49, %v4864_v6  ;;  %v4582_v9 = vpop.eup %4581  ;;  %v1837_v17 = vcombine.high %v1835_v54, %v1835_v54 }
 0x125   : > { %v2264_v10 = vcombine.low %v1784_v45, %v1786_v56  ;;  %v2271_v11 = vrot.slane %v2263_v57, %v4864_v6  ;;  %v1802_v16 = vcombine.high %v1794_v60, %v1794_v60  ;;  %v2321_v21 = vcombine.low %v1836_v58, %v1835_v54 }
 0x126   : > { %v4584_v18 = vpop.eup %4583  ;;  %v2319_v19 = vrot.slane %v2305_v3, %v4864_v6  ;;  %v1803_v24 = vcombine.high %v1801_v8, %v1801_v8  ;;  %v1662_v7 = vadd.f32 1.0, %v4576_v50  ;;  %v1660_v23 = vadd.f32 1.0, %v4578_v55 }
 0x127   : > { %v4586_v25 = vpop.eup %4585  ;;  %v2278_v29 = vrot.slane %v2264_v10, %v4864_v6  ;;  %v2280_v31 = vcombine.low %v1794_v60, %v1802_v16  ;;  %v1730_v32 = vmul.f32 %v4584_v18, %v5031_v36  ;;  %v2329_v3 = vrot.slane %v2321_v21, %v4864_v6 }
 0x128   : > { %v2320_v35 = vcombine.low %v2312_v63, %v2319_v19  ;;  %v2281_v37 = vcombine.low %v1801_v8, %v1803_v24  ;;  %v1728_v26 = vmul.f32 %v4586_v25, %v5034_v38  ;;  %4591 = vrcp.f32 %v1662_v7  ;;  %v5164_v40 = vpop.f32.mrb[16].mxu0  ;;  %v4588_v41 = vpop.eup %4587 }
 0x129   : > { %v2279_v42 = vcombine.low %v2271_v11, %v2278_v29  ;;  %v2288_v36 = vrot.slane %v2280_v31, %v4864_v6  ;;  %v1872_v43 = vcombine.high %v1730_v32, %v1730_v32  ;;  %v1879_v45 = vrot.slane %v1730_v32, %v4864_v6  ;;  %v5176_v47 = vpop.f32.mrb[17].mxu0  ;;  %v4590_v18 = vpop.eup %4589 }
 0x12a   : > { %v2706_v38 = vsel %vm5150_vm14, %v2320_v35, 0.0  ;;  %v2295_v49 = vrot.slane %v2281_v37, %v4864_v6  ;;  %v1838_v50 = vcombine.high %v1728_v26, %v1728_v26  ;;  %v1845_v28 = vrot.slane %v1728_v26, %v4864_v6  ;;  %v5182_v52 = vpop.f32.mrb[18].mxu0  ;;  %vm5394_vm14 = vmand %vm5172_vm1, %vm2197_vm6 }
 0x12b   : > { %v2703_v53 = vsel %vm5159_vm15, %v2279_v42, 0.0  ;;  %2738 = vst.msk [vmem:[#allocation2 + $0x18] sm:$0xff] %vm2733_vm12, %v2706_v38  ;;  %v5188_v12 = vrot.slane %v1872_v43, %v4864_v6  ;;  %v1887_v54 = vcombine.high %v1879_v45, %v1879_v45  ;;  %4593 = vrcp.f32 %v1660_v23  ;;  %v5190_v55 = vpop.f32.mrb[19].mxu0 }
 0x12c   : > { %2734 = vst.msk [vmem:[#allocation2] sm:$0xff] %vm2733_vm12, %v2703_v53  ;;  %v2296_v56 = vcombine.low %v2288_v36, %v2295_v49  ;;  %v1852_v58 = vrot.slane %v1838_v50, %v4864_v6  ;;  %v1853_v60 = vcombine.high %v1845_v28, %v1845_v28  ;;  %v2322_v63 = vcombine.low %v1837_v17, %v1845_v28 }
 0x12d   : > { %v2385_v8 = vrot.slane %v5188_v12, %v4864_v6  ;;  %v1665_v11 = vadd.f32 1.0, %v4580_v62  ;;  %v1547_v16 = vmul.f32 %v5101_v27, %v5001_v13  ;;  %v5220_v7 = vcombine.low %v1879_v45, %v1887_v54  ;;  %v5227_v27 = vld [vmem:[%s6541_s4] ss:$0 sm:$0xff]  ;;  %v5274_v54 = vld [vmem:[%s6541_s4 + $0x1] ss:$0 sm:$0xff] }
 0x12e   : > { %v2704_v17 = vsel %vm5090_vm5, %v2296_v56, 0.0  ;;  %v1854_v19 = vcombine.high %v1852_v58, %v1852_v58  ;;  %v2336_v21 = vrot.slane %v2322_v63, %v4864_v6  ;;  %v2344_v24 = vrot.slane %v1853_v60, %v4864_v6  ;;  %v5291_v63 = vld [vmem:[%s6541_s4 + $0x2] ss:$0 sm:$0xff] }
 0x12f   : > { %2735 = vst.msk [vmem:[#allocation2 + $0x8] sm:$0xff] %vm2733_vm12, %v2704_v17  ;;  %v2711_v25 = vsel %vm5197_vm2, %v2385_v8, 0.0  ;;  %4595 = vrcp.f32 %v1665_v11  ;;  %v1663_v62 = vadd.f32 1.0, %v4582_v9  ;;  %v1666_v32 = vadd.f32 1.0, %v4588_v41 }
 0x130   : > { %2743 = vst.msk [vmem:[#allocation2 + $0x40] sm:$0x3] %vm2736_vm4, %v2711_v25  ;;  %v2337_v29 = vcombine.low %v2329_v3, %v2336_v21  ;;  %v5235_v30 = vcombine.low %v1852_v58, %v1854_v19  ;;  %v2708_v31 = vsel %vm5209_vm7, %v2344_v24, 0.0  ;;  %v5239_v9 = vpop.f32.mrb[20].mxu0  ;;  %vm2170_vm5 = vcmp.ge.s32.totalorder %v5099_v20, 1 }
 0x131   : > { %2740 = vst.msk [vmem:[#allocation2 + $0x28] sm:$0x3] %vm2736_vm4, %v2708_v31  ;;  %vm2180_vm8 = vcmp.le.s32.totalorder %v5099_v20, 16  ;;  %v5245_v23 = vadd.s32 4, %v5061_v0  ;;  %v5251_v35 = vadd.s32 6, %v5061_v0  ;;  %v5253_v37 = vpop.f32.mrb[21].mxu0  ;;  %v5258_v43 = vadd.f32 %v5006_v15, %v1547_v16 }
 0x132   : > { %v4592_v26 = vpop.eup %4591  ;;  %v2799_v41 = vld [vmem:[#allocation2 + $0x18] sm:$0xff]  ;;  %v2707_v42 = vsel %vm5138_vm13, %v2337_v29, 0.0  ;;  %v1664_v36 = vadd.f32 1.0, %v4590_v18  ;;  %v5261_v45 = vadd.s32 7, %v5061_v0  ;;  %v4462_v38 = vpop.f32.mrb[22].mxu0  ;;  %v1888_v2 = vcombine.high %v5188_v12, %v5188_v12  ;;  %vm5340_vm11 = vmand %vm2170_vm5, %vm2180_vm8 }
 0x133   : > { %v2765_v49 = vld [vmem:[#allocation2] sm:$0xff]  ;;  %2739 = vst.msk [vmem:[#allocation2 + $0x20] sm:$0xff] %vm2733_vm12, %v2707_v42  ;;  %v1731_v28 = vmul.f32 %v4592_v26, %v5041_v48  ;;  %4597 = vrcp.f32 %v1663_v62  ;;  %v5269_v53 = vpop.f32.mrb[23].mxu0  ;;  %v1545_v57 = vmul.f32 %v5001_v13, %v5108_v33  ;;  %v1548_v48 = vmul.f32 %v5120_v39, %v5001_v13  ;;  %vm5377_vm13 = vmand %vm5340_vm11, %vm2197_vm6 }
 0x134   : > { %6574 = vst [vmem:[#allocation4_spill] sm:$0xff] %v5261_v45  ;;  %6575 = vst [vmem:[#allocation5_spill] sm:$0xff] %v5269_v53  ;;  %4599 = vrcp.f32 %v1666_v32  ;;  %v5283_v12 = vmul.f32 %v5232_v22, %v2799_v41  ;;  %v5286_v60 = vmul.f32 %v5227_v27, %v2799_v41  ;;  %v2772_v33 = vmul.f32 %v5227_v27, %v2765_v49 }
 0x135   : > { %v4594_v58 = vpop.eup %4593  ;;  %v1889_v3 = vcombine.high %v1731_v28, %v1731_v28  ;;  %v1896_v8 = vrot.slane %v1731_v28, %v4864_v6  ;;  %4601 = vrcp.f32 %v1664_v36  ;;  %v4282_v18 = vmul.f32 -1.442695, %v5258_v43  ;;  %vm5428_vm2 = vmand %vm5340_vm11, %vm2232_vm3 }
 0x136   : > { %6576 = vst [vmem:[#allocation6_spill] sm:$0xff] %v5283_v12  ;;  %v2766_v10 = vld [vmem:[#allocation2 + $0x8] sm:$0xff]  ;;  %v1729_v16 = vmul.f32 %v4594_v58, %v5044_v51  ;;  %v5304_v32 = vadd.f32 %v5006_v15, %v1545_v57  ;;  %v5307_v51 = vadd.f32 %v5006_v15, %v1548_v48  ;;  %v5312_v38 = vmul.f32 %v5001_v13, %v5124_v44 }
 0x137   : > { %v2776_v11 = vld [vmem:[#allocation2 + $0x1] sm:$0xff]  ;;  %v2777_v39 = vld [vmem:[#allocation2 + $0x9] sm:$0xff]  ;;  %v2773_v17 = vmul.f32 %v5227_v27, %v2766_v10  ;;  %v5301_v25 = vrot.slane %v1889_v3, %v4864_v6  ;;  %v1904_v29 = vcombine.high %v1896_v8, %v1896_v8  ;;  %v2386_v31 = vcombine.low %v1888_v2, %v1896_v8 }
 0x138   : > { %v2783_v19 = vmul.f32 %v5274_v54, %v2776_v11  ;;  %v2784_v21 = vmul.f32 %v5274_v54, %v2777_v39  ;;  %v2788_v24 = vld [vmem:[#allocation2 + $0xa] sm:$0xff]  ;;  %v2787_v62 = vld [vmem:[#allocation2 + $0x2] sm:$0xff]  ;;  %v1855_v48 = vcombine.high %v1729_v16, %v1729_v16  ;;  %v1862_v58 = vrot.slane %v1729_v16, %v4864_v6 }
 0x139   : > { %v4596_v26 = vpop.eup %4595  ;;  %v2795_v36 = vmul.f32 %v5291_v63, %v2788_v24  ;;  %v5317_v2 = vld [vmem:[%s6541_s4 + $0x4] ss:$0 sm:$0xff]  ;;  %v2387_v57 = vcombine.low %v1904_v29, %v5301_v25  ;;  %v5323_v3 = vmul.f32 %v5164_v40, %v5001_v13  ;;  %v2794_v8 = vmul.f32 %v5291_v63, %v2787_v62  ;;  %v5334_v39 = vld [vmem:[%s6541_s4 + $0x5] ss:$0 sm:$0xff] }
 0x13a   : > { %v2785_v41 = vadd.f32 %v2783_v19, %v2772_v33  ;;  %v2786_v42 = vadd.f32 %v2784_v21, %v2773_v17  ;;  %v2800_v49 = vld [vmem:[#allocation2 + $0x20] sm:$0xff]  ;;  %v1734_v10 = vmul.f32 %v4596_v26, %v5057_v61  ;;  %vm2171_vm9 = vcmp.ge.s32.totalorder %v5245_v23, 1 }
 0x13b   : > { %v2810_v28 = vld [vmem:[#allocation2 + $0x19] sm:$0xff]  ;;  %v2811_v33 = vld [vmem:[#allocation2 + $0x21] sm:$0xff]  ;;  %vm2181_vm10 = vcmp.le.s32.totalorder %v5245_v23, 16  ;;  %4603 = vpow2.f32 %v4282_v18  ;;  %v2394_v61 = vrot.slane %v2386_v31, %v4864_v6  ;;  %v1905_v16 = vcombine.high %v5301_v25, %v5301_v25 }
 0x13c   : > { %v2797_v44 = vadd.f32 %v2795_v36, %v2786_v42  ;;  %v5329_v11 = vld [vmem:[#allocation2 + $0x1a] sm:$0xff]  ;;  %v5348_v18 = vmul.f32 -1.442695, %v5304_v32  ;;  %v5352_v17 = vmul.f32 %v5001_v13, %v5176_v47  ;;  %v5354_v21 = vadd.f32 %v2794_v8, %v2785_v41  ;;  %vm5415_vm15 = vmand %vm2171_vm9, %vm2181_vm10 }
 0x13d   : > { %v4598_v19 = vpop.eup %4597  ;;  %v2807_v20 = vmul.f32 %v5232_v22, %v2800_v49  ;;  %v5358_v24 = vmul.f32 %v5317_v2, %v2810_v28  ;;  %v2918_v62 = vmul.f32 %v5274_v54, %v2810_v28  ;;  %v5362_v25 = vmul.f32 %v5317_v2, %v2811_v33  ;;  %vm5584_vm7 = vmand %vm5415_vm15, %vm2197_vm6 }
 0x13e   : > { %6579 = vst [vmem:[#allocation7_spill] sm:$0xff] %v5354_v21  ;;  %v4600_v29 = vpop.eup %4599  ;;  %v2401_v31 = vrot.slane %v2387_v57, %v4864_v6  ;;  %v1869_v26 = vrot.slane %v1855_v48, %v4864_v6  ;;  %v1870_v47 = vcombine.high %v1862_v58, %v1862_v58  ;;  %v5370_v41 = vmul.f32 %v5334_v39, %v5329_v11 }
 0x13f   : > { %6580 = vst [vmem:[#allocation8_spill] sm:$0xff] %v5358_v24  ;;  %v5366_v42 = vadd.f32 %v2807_v20, %v2797_v44  ;;  %v2908_v36 = vmul.f32 %v5227_v27, %v2800_v49  ;;  %v1940_v57 = vcombine.high %v1734_v10, %v1734_v10  ;;  %v4602_v8 = vpop.eup %4601  ;;  %v1947_v20 = vrot.slane %v1734_v10, %v4864_v6 }
 0x140   : > { %6581 = vst [vmem:[#allocation9_spill] sm:$0xff] %v5370_v41  ;;  %v2402_v48 = vcombine.low %v2394_v61, %v2401_v31  ;;  %v1871_v50 = vcombine.high %v1869_v26, %v1869_v26  ;;  %v2346_v44 = vcombine.low %v1862_v58, %v1870_v47  ;;  %v2919_v56 = vmul.f32 %v5274_v54, %v2811_v33 }
 0x141   : > { %v2920_v45 = vadd.f32 %v2918_v62, %v5286_v60  ;;  %v1954_v49 = vrot.slane %v1940_v57, %v4864_v6  ;;  %v1732_v41 = vmul.f32 %v4598_v19, %v5064_v1  ;;  %v1955_v53 = vcombine.high %v1947_v20, %v1947_v20 }
 0x142   : > { %v2712_v24 = vsel %vm5377_vm13, %v2402_v48, 0.0  ;;  %v2360_v12 = vrot.slane %v2346_v44, %v4864_v6  ;;  %v2362_v21 = vcombine.low %v1869_v26, %v1871_v50  ;;  %v1735_v10 = vmul.f32 %v4600_v29, %v5069_v5 }
 0x143   : > { %2744 = vst.msk [vmem:[#allocation2 + $0x48] sm:$0xff] %vm2733_vm12, %v2712_v24  ;;  %v1956_v60 = vcombine.high %v1954_v49, %v1954_v49  ;;  %v1906_v33 = vcombine.high %v1732_v41, %v1732_v41  ;;  %v1913_v1 = vrot.slane %v1732_v41, %v4864_v6  ;;  %v6586_v50 = vrot.slane %v5235_v30, %v4864_v6 }
 0x144   : > { %v2370_v19 = vrot.slane %v2362_v21, %v4864_v6  ;;  %v2444_v24 = vcombine.low %v1947_v20, %v1955_v53  ;;  %v1733_v62 = vmul.f32 %v4602_v8, %v5082_v14  ;;  %v2921_v48 = vadd.f32 %v2919_v56, %v2908_v36  ;;  %v2822_v21 = vld [vmem:[#allocation2 + $0x22] sm:$0xff] }
 0x145   : > { %v2361_v61 = vcombine.low %v6586_v50, %v2360_v12  ;;  %v4604_v31 = vpop.eup %4603  ;;  %v2445_v26 = vcombine.low %v1954_v49, %v1956_v60  ;;  %v1920_v47 = vrot.slane %v1906_v33, %v4864_v6  ;;  %v1921_v28 = vcombine.high %v1913_v1, %v1913_v1 }
 0x146   : > { %v2403_v57 = vcombine.low %v1905_v16, %v1913_v1  ;;  %v6587_v41 = vrot.slane %v5220_v7, %v4864_v6  ;;  %v1957_v12 = vcombine.high %v1735_v10, %v1735_v10  ;;  %v2452_v53 = vrot.slane %v2444_v24, %v4864_v6  ;;  %v5453_v24 = vld [vmem:[%s6541_s4 + $0x6] ss:$0 sm:$0xff] }
 0x147   : > { %v2709_v30 = vsel %vm5394_vm14, %v2361_v61, 0.0  ;;  %v2459_v56 = vrot.slane %v2445_v26, %v4864_v6  ;;  %v1922_v7 = vcombine.high %v1920_v47, %v1920_v47  ;;  %v2404_v16 = vcombine.low %v1921_v28, %v1920_v47 }
 0x148   : > { %v2378_v5 = vcombine.low %v2370_v19, %v6587_v41  ;;  %2741 = vst.msk [vmem:[#allocation2 + $0x30] sm:$0xff] %vm2733_vm12, %v2709_v30  ;;  %v1964_v36 = vrot.slane %v1735_v10, %v4864_v6  ;;  %v5434_v8 = vrot.slane %v1957_v12, %v4864_v6  ;;  %v1923_v44 = vcombine.high %v1733_v62, %v1733_v62  ;;  %v4551_v41 = vld [vmem:[%s6544_s7] sm:$0xff]  }
 0x149   : > { %v2460_v20 = vcombine.low %v2452_v53, %v2459_v56  ;;  %v2411_v46 = vrot.slane %v2403_v57, %v4864_v6  ;;  %v2418_v49 = vrot.slane %v2404_v16, %v4864_v6  ;;  %v2426_v58 = vrot.slane %v1922_v7, %v4864_v6  ;;  %4463 = vmatprep.subr.bf16.mxu1 %v4551_v41 }
 0x14a   : > { %v2710_v29 = vsel %vm5172_vm1, %v2378_v5, 0.0  ;;  %vm2247_vm1 = vmand %vm5415_vm15, %vm2232_vm3  ;;  %v1972_v60 = vcombine.high %v1964_v36, %v1964_v36  ;;  %v2467_v33 = vrot.slane %v1964_v36, %v4864_v6  ;;  %v1930_v1 = vrot.slane %v1733_v62, %v4864_v6  ;;  %v2967_v19 = vld [vmem:[#allocation2 + $0x48] sm:$0xff]  ;;  %4464 = vmatpush3.bf16.msra.mxu1 %v4551_v41 }
 0x14b   : > { %2742 = vst.msk [vmem:[#allocation2 + $0x38] sm:$0xff] %vm2733_vm12, %v2710_v29  ;;  %v1937_v10 = vrot.slane %v1923_v44, %v4864_v6  ;;  %v2929_v50 = vmul.f32 %v5291_v63, %v5329_v11  ;;  %v2930_v61 = vmul.f32 %v5291_v63, %v2822_v21  ;;  %v2419_v26 = vcombine.low %v2411_v46, %v2418_v49  ;;  %v4552_v5 = vld [vmem:[%s6544_s7 + $0x8] sm:$0xff]  }
 0x14c   : > { %v1669_v47 = vadd.f32 1.0, %v4604_v31  ;;  %v2714_v28 = vsel %vm5428_vm2, %v2426_v58, 0.0  ;;  %v5458_v62 = vcombine.low %v1972_v60, %v5434_v8  ;;  %v2716_v57 = vsel %vm5415_vm15, %v2460_v20, 0.0  ;;  %4465 = vmatprep.subr.bf16.mxu1 %v4552_v5 }
 0x14d   : > { %v2717_v11 = vsel %vm2247_vm1, %v2467_v33, 0.0  ;;  %v5470_v31 = vadd.f32 %v5362_v25, %v5366_v42  ;;  %v5473_v30 = vmul.f32 %v5334_v39, %v2822_v21  ;;  %v2931_v12 = vadd.f32 %v2929_v50, %v2920_v45  ;;  %2746 = vst.msk [vmem:[#allocation2 + $0x58] sm:$0x3] %vm2736_vm4, %v2714_v28 }
 0x14e   : > { %v2713_v53 = vsel %vm5340_vm11, %v2419_v26, 0.0  ;;  %2748 = vst.msk [vmem:[#allocation2 + $0x68] sm:$0xff] %vm2733_vm12, %v2716_v57  ;;  %v2932_v56 = vadd.f32 %v2930_v61, %v2921_v48  ;;  %v5481_v7 = vmul.f32 %v5453_v24, %v2967_v19  ;;  %v1938_v25 = vcombine.high %v1930_v1, %v1930_v1  ;;  %v4553_v48 = vld [vmem:[%s6544_s7 + $0x10] sm:$0xff]   ;;  %4466 = vmatpush3.bf16.msra.mxu1 %v4552_v5 }
 0x14f   : > { %2749 = vst.msk [vmem:[#allocation2 + $0x70] sm:$0x3] %vm2736_vm4, %v2717_v11  ;;  %v5483_v16 = vld [vmem:[#allocation2 + $0x30] sm:$0xff]  ;;  %v1939_v42 = vcombine.high %v1937_v10, %v1937_v10  ;;  %v5487_v45 = vmul.f32 %v5232_v22, %v2967_v19  ;;  %4605 = vrcp.f32 %v1669_v47  ;;  %v4283_v21 = vmul.f32 -1.442695, %v5307_v51  ;;  %4467 = vmatprep.subr.bf16.mxu1 %v4553_v48 }
 0x150   : > { %6592 = vst [vmem:[#allocation10_spill] sm:$0xff] %v5481_v7  ;;  %6593 = vst [vmem:[#allocation11_spill] sm:$0xff] %v5483_v16  ;;  %v2940_v40 = vmul.f32 %v5232_v22, %v5483_v16  ;;  %v5496_v29 = vmul.f32 %v5227_v27, %v2967_v19  ;;  %4607 = vpow2.f32 %v5348_v18  ;;  %v3041_v50 = vmul.f32 %v5227_v27, %v5483_v16 }
 0x151   : > { %2745 = vst.msk [vmem:[#allocation2 + $0x50] sm:$0xff] %vm2733_vm12, %v2713_v53  ;;  %v5509_v47 = vcombine.low %v1930_v1, %v1938_v25  ;;  %v5511_v18 = vcombine.low %v1937_v10, %v1939_v42  ;;  %4609 = vpow2.f32 %v4283_v21  ;;  %v4554_v1 = vld [vmem:[%s6544_s7 + $0x18] sm:$0xff]   ;;  %vm2173_vm5 = vcmp.ge.s32.totalorder %v5251_v35, 1 }
 0x152   : > { %v2934_v23 = vld [vmem:[#allocation2 + $0x38] sm:$0xff]  ;;  %v2942_v58 = vadd.f32 %v2940_v40, %v2931_v12  ;;  %v5518_v40 = vadd.f32 %v5006_v15, %v5312_v38  ;;  %v5529_v38 = vld [vmem:[%s6541_s4 + $0x7] ss:$0 sm:$0xff]  ;;  %4468 = vmatpush3.bf16.msra.mxu1 %v4553_v48  ;;  %vm2183_vm8 = vcmp.le.s32.totalorder %v5251_v35, 16  ;;  %vm2172_vm9 = vcmp.ge.s32.totalorder %v5248_v34, 1 }
 0x153   : > { %v2944_v36 = vld [vmem:[#allocation2 + $0x31] sm:$0xff]  ;;  %v2945_v44 = vld [vmem:[#allocation2 + $0x39] sm:$0xff]  ;;  %v2941_v49 = vmul.f32 %v5232_v22, %v2934_v23  ;;  %v3042_v19 = vmul.f32 %v5227_v27, %v2934_v23  ;;  %4469 = vmatprep.subr.bf16.mxu1 %v4554_v1  ;;  %vm2182_vm10 = vcmp.le.s32.totalorder %v5248_v34, 16  ;;  %vm5674_vm11 = vmand %vm2173_vm5, %vm2183_vm8  ;;  %v6607_v35 = vcombine.high %v5434_v8, %v5434_v8 }
 0x154   : > { %v2951_v60 = vmul.f32 %v5317_v2, %v2944_v36  ;;  %v2955_v33 = vld [vmem:[#allocation2 + $0x32] sm:$0xff]  ;;  %v2956_v61 = vld [vmem:[#allocation2 + $0x3a] sm:$0xff]  ;;  %v3052_v26 = vmul.f32 %v5274_v54, %v2944_v36  ;;  %v2952_v57 = vmul.f32 %v5317_v2, %v2945_v44  ;;  %v3053_v11 = vmul.f32 %v5274_v54, %v2945_v44  ;;  %vm5683_vm13 = vmand %vm2172_vm9, %vm2182_vm10 }
 0x155   : > { %v2943_v28 = vadd.f32 %v2941_v49, %v2932_v56  ;;  %v3063_v53 = vmul.f32 %v5291_v63, %v2955_v33  ;;  %v2963_v56 = vmul.f32 %v5334_v39, %v2956_v61  ;;  %v3064_v42 = vmul.f32 %v5291_v63, %v2956_v61  ;;  %v3102_v21 = vld [vmem:[#allocation2 + $0x68] sm:$0xff]  ;;  %vm2253_vm14 = vmand %vm5674_vm11, %vm2232_vm3 }
 0x156   : > { %v2953_v41 = vadd.f32 %v2951_v60, %v2942_v58  ;;  %v3054_v12 = vadd.f32 %v3052_v26, %v3041_v50  ;;  %v3055_v25 = vadd.f32 %v3053_v11, %v3042_v19  ;;  %v2962_v23 = vmul.f32 %v5334_v39, %v2955_v33  ;;  %v5542_v33 = vld [vmem:[%s6541_s4 + $0x8] ss:$0 sm:$0xff]  ;;  %v3113_v20 = vld [vmem:[#allocation2 + $0x69] sm:$0xff]  ;;  %4470 = vmatpush3.bf16.msra.mxu1 %v4554_v1  ;;  %vm5707_vm15 = vmand %vm5683_vm13, %vm2197_vm6 }
 0x157   : > { %v2954_v10 = vadd.f32 %v2952_v57, %v2943_v28  ;;  %v5533_v58 = vadd.f32 %v5006_v15, %v5323_v3  ;;  %v5537_v60 = vadd.f32 %v5006_v15, %v5352_v17  ;;  %v2435_v26 = vrot.slane %v5509_v47, %v4864_v6  ;;  %vm5868_vm8 = vmand %vm5683_vm13, %vm2232_vm3 }
 0x158   : > { %v2968_v5 = vld [vmem:[#allocation2 + $0x50] sm:$0xff]  ;;  %v3065_v36 = vadd.f32 %v3063_v53, %v3054_v12  ;;  %v3066_v19 = vadd.f32 %v3064_v42, %v3055_v25  ;;  %v2442_v28 = vrot.slane %v5511_v18, %v4864_v6  ;;  %v5548_v3 = vadd.f32 %v2962_v23, %v2953_v41  ;;  %vm5906_vm10 = vmand %vm5674_vm11, %vm2197_vm6 }
 0x159   : > { %v2978_v44 = vld [vmem:[#allocation2 + $0x49] sm:$0xff]  ;;  %v2979_v49 = vld [vmem:[#allocation2 + $0x51] sm:$0xff]  ;;  %v2965_v50 = vadd.f32 %v2963_v56, %v2954_v10  ;;  %v2975_v17 = vmul.f32 %v5453_v24, %v2968_v5  ;;  %v3075_v11 = vmul.f32 %v5232_v22, %v2968_v5  ;;  %v3109_v12 = vmul.f32 %v5453_v24, %v3102_v21  ;;  %v4606_v53 = vpop.eup %4605 }
 0x15a   : > { %v2989_v61 = vld [vmem:[#allocation2 + $0x4a] sm:$0xff]  ;;  %6594 = vst [vmem:[#allocation12_spill] sm:$0xff] %v5548_v3  ;;  %v2990_v57 = vld [vmem:[#allocation2 + $0x52] sm:$0xff]  ;;  %v5554_v10 = vmul.f32 %v5529_v38, %v2978_v44  ;;  %v5557_v47 = vmul.f32 %v5529_v38, %v2979_v49  ;;  %v3076_v18 = vadd.f32 %v5487_v45, %v3065_v36  ;;  %v3176_v48 = vmul.f32 %v5227_v27, %v2968_v5  ;;  %v4608_v41 = vpop.eup %4607 }
 0x15b   : > { %v5562_v56 = vmul.f32 %v5542_v33, %v2989_v61  ;;  %v3077_v25 = vadd.f32 %v3075_v11, %v3066_v19  ;;  %v3086_v42 = vmul.f32 %v5317_v2, %v2979_v49  ;;  %v3187_v23 = vmul.f32 %v5274_v54, %v2979_v49  ;;  %v3124_v5 = vld [vmem:[#allocation2 + $0x6a] sm:$0xff]  ;;  %v4610_v7 = vpop.eup %4609 }
 0x15c   : > { %6595 = vst [vmem:[#allocation13_spill] sm:$0xff] %v5554_v10  ;;  %6596 = vst [vmem:[#allocation14_spill] sm:$0xff] %v5557_v47  ;;  %v5566_v46 = vadd.f32 %v2975_v17, %v2965_v50  ;;  %v5569_v10 = vmul.f32 %v5542_v33, %v2990_v57  ;;  %v3085_v47 = vmul.f32 %v5317_v2, %v2978_v44 }
 0x15d   : > { %6597 = vst [vmem:[#allocation15_spill] sm:$0xff] %v5562_v56  ;;  %v3096_v45 = vmul.f32 %v5334_v39, %v2989_v61  ;;  %v3088_v36 = vadd.f32 %v3086_v42, %v3077_v25  ;;  %v3097_v56 = vmul.f32 %v5334_v39, %v2990_v57  ;;  %v3189_v19 = vadd.f32 %v3187_v23, %v3176_v48 }
 0x15e   : > { %6598 = vst [vmem:[#allocation16_spill] sm:$0xff] %v5566_v46  ;;  %6599 = vst [vmem:[#allocation17_spill] sm:$0xff] %v5569_v10  ;;  %v3198_v11 = vmul.f32 %v5291_v63, %v2990_v57  ;;  %v3087_v49 = vadd.f32 %v3085_v47, %v3076_v18  ;;  %v3186_v50 = vmul.f32 %v5274_v54, %v2978_v44  ;;  %v1667_v18 = vadd.f32 1.0, %v4608_v41 }
 0x15f   : > { %v3197_v17 = vmul.f32 %v5291_v63, %v2989_v61  ;;  %v3120_v10 = vmul.f32 %v5529_v38, %v3113_v20  ;;  %v3099_v46 = vadd.f32 %v3097_v56, %v3088_v36  ;;  %v3131_v3 = vmul.f32 %v5542_v33, %v3124_v5 }
 0x160   : > { %v3200_v16 = vadd.f32 %v3198_v11, %v3189_v19  ;;  %v3209_v1 = vmul.f32 %v5232_v22, %v3102_v21  ;;  %v3310_v44 = vmul.f32 %v5227_v27, %v3102_v21  ;;  %v2443_v47 = vcombine.low %v2435_v26, %v2442_v28 }
 0x161   : > { %v1738_v61 = vmul.f32 %v4606_v53, %v5258_v43  ;;  %v3111_v48 = vadd.f32 %v3109_v12, %v3099_v46  ;;  %v3321_v25 = vmul.f32 %v5274_v54, %v3113_v20  ;;  %v1670_v42 = vadd.f32 1.0, %v4610_v7 }
 0x162   : > { %v3211_v56 = vadd.f32 %v3209_v1, %v3200_v16  ;;  %v2715_v23 = vsel %vm5584_vm7, %v2443_v47, 0.0  ;;  %4611 = vrcp.f32 %v1667_v18  ;;  %v3188_v19 = vadd.f32 %v3186_v50, %v5496_v29 }
 0x163   : > { %v2008_v36 = vcombine.high %v1738_v61, %v1738_v61  ;;  %v2015_v14 = vrot.slane %v1738_v61, %v4864_v6  ;;  %v3220_v21 = vmul.f32 %v5317_v2, %v3113_v20  ;;  %v3332_v26 = vmul.f32 %v5291_v63, %v3124_v5  ;;  %2747 = vst.msk [vmem:[#allocation2 + $0x60] sm:$0xff] %vm2733_vm12, %v2715_v23 }
 0x164   : > { %4613 = vrcp.f32 %v1670_v42  ;;  %v4281_v7 = vmul.f32 -1.442695, %v5518_v40  ;;  %v4286_v46 = vmul.f32 -1.442695, %v5533_v58  ;;  %v3122_v28 = vadd.f32 %v3120_v10, %v3111_v48 }
 0x165   : > { %v2022_v43 = vrot.slane %v2008_v36, %v4864_v6  ;;  %v2023_v16 = vcombine.high %v2015_v14, %v2015_v14  ;;  %v3323_v12 = vadd.f32 %v3321_v25, %v3310_v44  ;;  %v4284_v29 = vmul.f32 -1.442695, %v5537_v60 }
 0x166   : > { %v1552_v20 = vmul.f32 %v5182_v52, %v5001_v13  ;;  %v3222_v53 = vadd.f32 %v3220_v21, %v3211_v56  ;;  %4615 = vpow2.f32 %v4281_v7  ;;  %v1550_v10 = vmul.f32 %v5001_v13, %v5190_v55 }
 0x167   : > { %v2024_v41 = vcombine.high %v2022_v43, %v2022_v43  ;;  %v5610_v11 = vcombine.low %v2015_v14, %v2023_v16  ;;  %4617 = vpow2.f32 %v4286_v46  ;;  %v1555_v1 = vmul.f32 %v5239_v9, %v5001_v13  ;;  %v5633_v9 = vld [vmem:[%s6540_s3] ss:$0 sm:$0xff] }
 0x168   : > { %v5613_v50 = vadd.f32 %v5006_v15, %v1552_v20  ;;  %v3231_v52 = vmul.f32 %v5334_v39, %v3124_v5  ;;  %4619 = vpow2.f32 %v4284_v29  ;;  %v5621_v44 = vadd.f32 %v5006_v15, %v1550_v10 }
 0x169   : > { %v5618_v57 = vcombine.low %v2022_v43, %v2024_v41  ;;  %v3098_v47 = vadd.f32 %v3096_v45, %v3087_v49  ;;  %v3199_v61 = vadd.f32 %v3197_v17, %v3188_v19  ;;  %v5623_v55 = vadd.f32 %v3131_v3, %v3122_v28  ;;  %v4712_v19 = vld [vmem:[%s6539_s2] ss:$0 sm:$0xff] }
 0x16a   : > { %v5625_v18 = vadd.f32 %v3332_v26, %v3323_v12  ;;  %v5627_v48 = vadd.f32 %v3231_v52, %v3222_v53  ;;  %v3101_v56 = vld [vmem:[#allocation2 + $0x60] sm:$0xff]  ;;  %v4287_v13 = vmul.f32 -1.442695, %v5613_v50  ;;  %v5636_v15 = vadd.f32 %v5633_v9, %v1555_v1 }
 0x16b   : > { %v3112_v25 = vld [vmem:[#allocation2 + $0x61] sm:$0xff]  ;;  %v5639_v45 = vadd.s32 9, %v5061_v0  ;;  %v3208_v5 = vmul.f32 %v5232_v22, %v3101_v56  ;;  %v2534_v17 = vrot.slane %v5618_v57, %v4864_v6  ;;  %v4285_v42 = vmul.f32 -1.442695, %v5621_v44 }
 0x16c   : > { %v3123_v3 = vld [vmem:[#allocation2 + $0x62] sm:$0xff]  ;;  %v4612_v23 = vpop.eup %4611  ;;  %v3108_v36 = vmul.f32 %v5453_v24, %v3101_v56  ;;  %v5649_v14 = vmul.f32 %v5529_v38, %v3112_v25  ;;  %v1553_v21 = vmul.f32 %v4712_v19, %v5253_v37  ;;  %v5656_v26 = vadd.s32 8, %v5061_v0 }
 0x16d   : > { %v3210_v16 = vadd.f32 %v3208_v5, %v3199_v61  ;;  %v3309_v7 = vmul.f32 %v5227_v27, %v3101_v56  ;;  %v3320_v46 = vmul.f32 %v5274_v54, %v3112_v25  ;;  %v1736_v28 = vmul.f32 %v4612_v23, %v5304_v32 }
 0x16e   : > { %v4614_v43 = vpop.eup %4613  ;;  %v5662_v12 = vmul.f32 %v5542_v33, %v3123_v3  ;;  %4621 = vpow2.f32 %v4287_v13  ;;  %v4290_v20 = vmul.f32 -1.442695, %v5636_v15  ;;  %v3219_v37 = vmul.f32 %v5317_v2, %v3112_v25 }
 0x16f   : > { %v1739_v29 = vmul.f32 %v4614_v43, %v5307_v51  ;;  %v1974_v0 = vcombine.high %v1736_v28, %v1736_v28  ;;  %v1981_v53 = vrot.slane %v1736_v28, %v4864_v6  ;;  %4623 = vpow2.f32 %v4285_v42 }
 0x170   : > { %6602 = vst [vmem:[#allocation18_spill] sm:$0xff] %v5662_v12  ;;  %v4616_v41 = vpop.eup %4615  ;;  %v3230_v10 = vmul.f32 %v5334_v39, %v3123_v3  ;;  %4625 = vpow2.f32 %v4290_v20  ;;  %v3221_v61 = vadd.f32 %v3219_v37, %v3210_v16  ;;  %v3322_v56 = vadd.f32 %v3320_v46, %v3309_v7 }
 0x171   : > { %v2025_v1 = vcombine.high %v1739_v29, %v1739_v29  ;;  %v2032_v32 = vrot.slane %v1739_v29, %v4864_v6  ;;  %v4618_v52 = vpop.eup %4617  ;;  %v3331_v25 = vmul.f32 %v5291_v63, %v3123_v3  ;;  %v2469_v5 = vcombine.low %v6607_v35, %v1981_v53 }
 0x172   : > { %v4620_v42 = vpop.eup %4619  ;;  %v1668_v16 = vadd.f32 1.0, %v4616_v41  ;;  %v1673_v7 = vadd.f32 1.0, %v4618_v52  ;;  %v5694_v3 = vrot.slane %v1974_v0, %v4864_v6  ;;  %v1989_v46 = vcombine.high %v1981_v53, %v1981_v53 }
 0x173   : > { %v5691_v23 = vrot.slane %v2025_v1, %v4864_v6  ;;  %v2040_v43 = vcombine.high %v2032_v32, %v2032_v32  ;;  %v2483_v34 = vrot.slane %v2469_v5, %v4864_v6  ;;  %v1671_v8 = vadd.f32 1.0, %v4620_v42  ;;  %v5741_v42 = vld [vmem:[%s6541_s4 + $0x6] ss:$0 sm:$0xff] }
 0x174   : > { %v5701_v28 = vadd.f32 %v3108_v36, %v3098_v47  ;;  %4627 = vrcp.f32 %v1668_v16  ;;  %v5713_v0 = vadd.f32 %v3331_v25, %v3322_v56  ;;  %v6610_v53 = vrot.slane %v5458_v62, %v4864_v6  ;;  %v6611_v25 = vld [vmem:[#allocation5_spill] sm:$0xff]  ;;  %v6613_v16 = vld [vmem:[#allocation6_spill] sm:$0xff] }
 0x175   : > { %v2527_v20 = vcombine.low %v2032_v32, %v2040_v43  ;;  %v2549_v37 = vrot.slane %v5691_v23, %v4864_v6  ;;  %4629 = vrcp.f32 %v1673_v7  ;;  %v5719_v36 = vadd.f32 %v5633_v9, %v1553_v21  ;;  %v2834_v32 = vld [vmem:[#allocation2 + $0x38] sm:$0xff]  ;;  %v6612_v43 = vld [vmem:[#allocation7_spill] sm:$0xff] }
 0x176   : > { %v2484_v47 = vcombine.low %v6610_v53, %v2483_v34  ;;  %v5721_v41 = vadd.f32 %v3230_v10, %v3221_v61  ;;  %4631 = vrcp.f32 %v1671_v8  ;;  %v5725_v35 = vcombine.low %v1989_v46, %v5694_v3  ;;  %v6617_v53 = vld [vmem:[#allocation8_spill] sm:$0xff] }
 0x177   : > { %v2541_v1 = vrot.slane %v2527_v20, %v4864_v6  ;;  %v2723_v52 = vsel %vm2253_vm14, %v2549_v37, 0.0  ;;  %v4288_v62 = vmul.f32 -1.442695, %v5719_v36  ;;  %v1554_v21 = vmul.f32 %v4712_v19, %v6611_v25  ;;  %v2855_v25 = vld [vmem:[#allocation2 + $0x32] sm:$0xff] }
 0x178   : > { %v2718_v56 = vsel %vm5707_vm15, %v2484_v47, 0.0  ;;  %2755 = vst.msk [vmem:[#allocation2 + $0xa0] sm:$0x3] %vm2736_vm4, %v2723_v52  ;;  %v4622_v5 = vpop.eup %4621  ;;  %v1990_v61 = vcombine.high %v5694_v3, %v5694_v3  ;;  %v2808_v7 = vadd.f32 %v6613_v16, %v6612_v43  ;;  %v2831_v19 = vadd.f32 %v5473_v30, %v5470_v31  ;;  %v5763_v30 = vld [vmem:[%s6541_s4 + $0x8] ss:$0 sm:$0xff] }
 0x179   : > { %2750 = vst.msk [vmem:[#allocation2 + $0x78] sm:$0xff] %vm2733_vm12, %v2718_v56  ;;  %v2542_v10 = vcombine.low %v2534_v17, %v2541_v1  ;;  %v4624_v46 = vpop.eup %4623  ;;  %v1674_v57 = vadd.f32 1.0, %v4622_v5  ;;  %v5752_v17 = vld [vmem:[%s6541_s4 + $0x7] ss:$0 sm:$0xff]  ;;  %v5755_v8 = vadd.f32 %v5633_v9, %v1554_v21  ;;  %v2841_v29 = vmul.f32 %v5741_v42, %v2834_v32  ;;  %6616 = vst [vmem:[#allocation6_spill] sm:$0xff] %v5763_v30  ;;  %v2845_v1 = vld [vmem:[#allocation2 + $0x39] sm:$0xff] }
 0x17a   : > { %6614 = vst [vmem:[#allocation5_spill] sm:$0xff] %v5752_v17  ;;  %v4626_v20 = vpop.eup %4625  ;;  %v1672_v31 = vadd.f32 1.0, %v4624_v46  ;;  %4633 = vpow2.f32 %v4288_v62  ;;  %v2819_v47 = vadd.f32 %v6617_v53, %v2808_v7  ;;  %v2844_v56 = vld [vmem:[#allocation2 + $0x31] sm:$0xff]  ;;  %v2856_v21 = vld [vmem:[#allocation2 + $0x3a] sm:$0xff]  ;;  %v6619_v43 = vld [vmem:[#allocation11_spill] sm:$0xff]  ;;  %v2852_v7 = vmul.f32 %v5752_v17, %v2845_v1 }
 0x17b   : > { %6615 = vst [vmem:[#allocation7_spill] sm:$0xff] %v5755_v8  ;;  %v2722_v37 = vsel %vm5674_vm11, %v2542_v10, 0.0  ;;  %4635 = vrcp.f32 %v1674_v57  ;;  %v1677_v9 = vadd.f32 1.0, %v4626_v20  ;;  %v4289_v52 = vmul.f32 -1.442695, %v5755_v8  ;;  %v6618_v5 = vld [vmem:[#allocation9_spill] sm:$0xff] }
 0x17c   : > { %2754 = vst.msk [vmem:[#allocation2 + $0x98] sm:$0xff] %vm2733_vm12, %v2722_v37  ;;  %v2843_v32 = vadd.f32 %v2841_v29, %v2831_v19  ;;  %4637 = vrcp.f32 %v1672_v31  ;;  %v2830_v10 = vadd.f32 %v6618_v5, %v2819_v47  ;;  %v2840_v16 = vmul.f32 %v5741_v42, %v6619_v43  ;;  %v6620_v46 = vld [vmem:[#allocation12_spill] sm:$0xff]  ;;  %v6621_v57 = vld [vmem:[#allocation10_spill] sm:$0xff] }
 0x17d   : > { %4639 = vrcp.f32 %v1677_v9  ;;  %v2976_v20 = vadd.f32 %v6621_v57, %v6620_v46  ;;  %v6622_v37 = vld [vmem:[#allocation16_spill] sm:$0xff]  ;;  %v6623_v19 = vld [vmem:[#allocation14_spill] sm:$0xff]  ;;  %v2851_v49 = vmul.f32 %v5752_v17, %v2844_v56  ;;  %v5780_v31 = vmul.f32 %v5763_v30, %v2855_v25 }
 0x17e   : > { %v2988_v29 = vadd.f32 %v6623_v19, %v6622_v37  ;;  %v4628_v53 = vpop.eup %4627  ;;  %4641 = vpow2.f32 %v4289_v52  ;;  %v5783_v47 = vmul.f32 %v5763_v30, %v2856_v21  ;;  %v2842_v43 = vadd.f32 %v2840_v16, %v2830_v10  ;;  %v5791_v46 = vld [vmem:[%s6542_s5] ss:$0 sm:$0xff]  ;;  %v6626_v21 = vld [vmem:[#allocation4_spill] sm:$0xff] }
 0x17f   : > { %v4630_v5 = vpop.eup %4629  ;;  %v1737_v1 = vmul.f32 %v4628_v53, %v5518_v40  ;;  %v5786_v34 = vadd.f32 %v2852_v7, %v2843_v32  ;;  %6624 = vst [vmem:[#allocation8_spill] sm:$0xff] %v5791_v46  ;;  %v5795_v52 = vadd.f32 %v5649_v14, %v5701_v28  ;;  %vm2174_vm2 = vcmp.ge.s32.totalorder %v6626_v21, 1  ;;  %v6627_v40 = vld [vmem:[#allocation13_spill] sm:$0xff] }
 0x180   : > { %v3235_v9 = vld [vmem:[#allocation2 + $0x78] sm:$0xff]  ;;  %v4632_v56 = vpop.eup %4631  ;;  %v1742_v25 = vmul.f32 %v4630_v5, %v5533_v58  ;;  %vm2184_vm1 = vcmp.le.s32.totalorder %v6626_v21, 16  ;;  %v5801_v10 = vadd.f32 %v6627_v40, %v2976_v20  ;;  %v5808_v7 = vmul.f32 %v5791_v46, %v5623_v55  ;;  %v5815_v58 = vld [vmem:[%s6541_s4] ss:$0 sm:$0xff] }
 0x181   : > { %6625 = vst [vmem:[#allocation9_spill] sm:$0xff] %v5795_v52  ;;  %v6628_v32 = vld [vmem:[#allocation17_spill] sm:$0xff]  ;;  %v3242_v14 = vmul.f32 %v5453_v24, %v3235_v9  ;;  %v3342_v28 = vmul.f32 %v5232_v22, %v3235_v9  ;;  %v1991_v57 = vcombine.high %v1737_v1, %v1737_v1  ;;  %v1998_v20 = vrot.slane %v1737_v1, %v4864_v6  ;;  %vm5897_vm9 = vmand %vm2174_vm2, %vm2184_vm1 }
 0x182   : > { %v5804_v16 = vadd.f32 %v6628_v32, %v2988_v29  ;;  %6630 = vst [vmem:[#allocation12_spill] sm:$0xff] %v5808_v7  ;;  %v5819_v37 = vmul.f32 %v5227_v27, %v3235_v9  ;;  %v2076_v53 = vcombine.high %v1742_v25, %v1742_v25  ;;  %v2083_v5 = vrot.slane %v1742_v25, %v4864_v6  ;;  %vm6047_vm1 = vmand %vm5897_vm9, %vm2232_vm3 }
 0x183   : > { %v3370_v19 = vld [vmem:[#allocation2 + $0x98] sm:$0xff]  ;;  %v1740_v40 = vmul.f32 %v4632_v56, %v5537_v60  ;;  %vm2175_vm7 = vcmp.ge.s32.totalorder %v5656_v26, 1  ;;  %vm2185_vm5 = vcmp.le.s32.totalorder %v5656_v26, 16  ;;  %v5830_v32 = vadd.f32 %v3242_v14, %v5721_v41 }
 0x184   : > { %6629 = vst [vmem:[#allocation11_spill] sm:$0xff] %v5804_v16  ;;  %v5821_v29 = vld [vmem:[#allocation2 + $0x99] sm:$0xff]  ;;  %v5833_v27 = vadd.f32 %v3342_v28, %v5713_v0  ;;  %v5836_v9 = vmul.f32 %v5453_v24, %v3370_v19  ;;  %v5838_v1 = vadd.f32 %v2851_v49, %v2842_v43  ;;  %v5840_v62 = vpop.eup %4633  ;;  %v3578_v41 = vmul.f32 %v5815_v58, %v3370_v19  ;;  %vm5922_vm11 = vmand %vm2175_vm7, %vm2185_vm5 }
 0x185   : > { %v5823_v55 = vld [vmem:[#allocation2 + $0x9a] sm:$0xff]  ;;  %6631 = vst [vmem:[#allocation10_spill] sm:$0xff] %v5830_v32  ;;  %v5844_v60 = vmul.f32 %v5529_v38, %v5821_v29  ;;  %v3589_v0 = vmul.f32 %v5274_v54, %v5821_v29  ;;  %v4636_v25 = vpop.eup %4635  ;;  %v5854_v14 = vmul.f32 %v5232_v22, %v3370_v19  ;;  %v2005_v49 = vrot.slane %v1991_v57, %v4864_v6  ;;  %vm5951_vm2 = vmand %vm5922_vm11, %vm2197_vm6 }
 0x186   : > { %v5848_v56 = vmul.f32 %v5542_v33, %v5823_v55  ;;  %v2006_v43 = vcombine.high %v1998_v20, %v1998_v20  ;;  %v2486_v28 = vcombine.low %v1990_v61, %v1998_v20  ;;  %v2090_v22 = vrot.slane %v2076_v53, %v4864_v6 }
 0x187   : > { %6632 = vst [vmem:[#allocation16_spill] sm:$0xff] %v5844_v60  ;;  %v4638_v60 = vpop.eup %4637  ;;  %v2091_v57 = vcombine.high %v2083_v5, %v2083_v5  ;;  %v2042_v19 = vcombine.high %v1740_v40, %v1740_v40  ;;  %v2007_v3 = vcombine.high %v2005_v49, %v2005_v49  ;;  %v3591_v17 = vadd.f32 %v3589_v0, %v3578_v41 }
 0x188   : > { %6633 = vst [vmem:[#allocation14_spill] sm:$0xff] %v5848_v56  ;;  %v5862_v56 = vmul.f32 %v5291_v63, %v5823_v55  ;;  %v4640_v8 = vpop.eup %4639  ;;  %v2500_v61 = vrot.slane %v2486_v28, %v4864_v6  ;;  %v2508_v20 = vrot.slane %v2006_v43, %v4864_v6  ;;  %v2049_v63 = vrot.slane %v1740_v40, %v4864_v6 }
 0x189   : > { %v5876_v30 = vpop.eup %4641  ;;  %v2092_v32 = vcombine.high %v2090_v22, %v2090_v22  ;;  %v2591_v7 = vcombine.low %v2083_v5, %v2091_v57  ;;  %v2056_v12 = vrot.slane %v2042_v19, %v4864_v6  ;;  %v6636_v53 = vrot.slane %v5725_v35, %v4864_v6 }
 0x18a   : > { %v2509_v46 = vcombine.low %v2005_v49, %v2007_v3  ;;  %v2720_v16 = vsel %vm5868_vm8, %v2508_v20, 0.0  ;;  %v2057_v28 = vcombine.high %v2049_v63, %v2049_v63  ;;  %v6637_v41 = vcombine.high %v5691_v23, %v5691_v23  ;;  %vm2259_vm8 = vmand %vm5922_vm11, %vm2232_vm3 }
 0x18b   : > { %v2501_v52 = vcombine.low %v6636_v53, %v2500_v61  ;;  %2752 = vst.msk [vmem:[#allocation2 + $0x88] sm:$0x3] %vm2736_vm4, %v2720_v16  ;;  %v2592_v43 = vcombine.low %v2090_v22, %v2092_v32  ;;  %v2599_v40 = vrot.slane %v2591_v7, %v4864_v6  ;;  %v1743_v0 = vmul.f32 %v4636_v25, %v5613_v50 }
 0x18c   : > { %v2550_v5 = vcombine.low %v6637_v41, %v2049_v63  ;;  %v2517_v57 = vrot.slane %v2509_v46, %v4864_v6  ;;  %v2551_v7 = vcombine.low %v2057_v28, %v2056_v12  ;;  %v1741_v32 = vmul.f32 %v4638_v60, %v5621_v44 }
 0x18d   : > { %v2719_v35 = vsel %vm5683_vm13, %v2501_v52, 0.0  ;;  %v2606_v13 = vrot.slane %v2592_v43, %v4864_v6  ;;  %v2093_v46 = vcombine.high %v1743_v0, %v1743_v0  ;;  %v2100_v52 = vrot.slane %v1743_v0, %v4864_v6  ;;  %vm5930_vm13 = vmand %vm5897_vm9, %vm2197_vm6 }
 0x18e   : > { %2751 = vst.msk [vmem:[#allocation2 + $0x80] sm:$0xff] %vm2733_vm12, %v2719_v35  ;;  %v2558_v23 = vrot.slane %v2550_v5, %v4864_v6  ;;  %v6642_v44 = vrot.slane %v5610_v11, %v4864_v6  ;;  %v2565_v60 = vrot.slane %v2551_v7, %v4864_v6  ;;  %v2058_v51 = vcombine.high %v2056_v12, %v2056_v12 }
 0x18f   : > { %v2059_v25 = vcombine.high %v1741_v32, %v1741_v32  ;;  %v2607_v54 = vcombine.low %v2599_v40, %v2606_v13  ;;  %v2107_v12 = vrot.slane %v2093_v46, %v4864_v6  ;;  %v2108_v22 = vcombine.high %v2100_v52, %v2100_v52 }
 0x190   : > { %v2525_v21 = vcombine.low %v2517_v57, %v6642_v44  ;;  %v2066_v19 = vrot.slane %v1741_v32, %v4864_v6  ;;  %v2566_v3 = vcombine.low %v2558_v23, %v2565_v60  ;;  %v1746_v20 = vmul.f32 %v4640_v8, %v5636_v15 }
 0x191   : > { %v2073_v61 = vrot.slane %v2059_v25, %v4864_v6  ;;  %v2109_v63 = vcombine.high %v2107_v12, %v2107_v12  ;;  %v5941_v53 = vcombine.low %v2100_v52, %v2108_v22  ;;  %vm2176_vm14 = vcmp.ge.s32.totalorder %v5639_v45, 1  ;;  %v5988_v52 = vld [vmem:[%s6541_s4 + $0x1] ss:$0 sm:$0xff] }
 0x192   : > { %v2721_v26 = vsel %vm5906_vm10, %v2525_v21, 0.0  ;;  %v2074_v28 = vcombine.high %v2066_v19, %v2066_v19  ;;  %v5943_v43 = vcombine.low %v2058_v51, %v2066_v19  ;;  %vm2186_vm15 = vcmp.le.s32.totalorder %v5639_v45, 16 }
 0x193   : > { %2753 = vst.msk [vmem:[#allocation2 + $0x90] sm:$0xff] %vm2733_vm12, %v2721_v26  ;;  %v2724_v15 = vsel %vm5930_vm13, %v2566_v3, 0.0  ;;  %v2075_v8 = vcombine.high %v2073_v61, %v2073_v61  ;;  %v5958_v41 = vrot.slane %v1746_v20, %v4864_v6  ;;  %v1675_v5 = vadd.f32 1.0, %v5840_v62  ;;  %v6010_v3 = vld [vmem:[%s6541_s4 + $0x2] ss:$0 sm:$0xff]  ;;  %vm6059_vm7 = vmand %vm2176_vm14, %vm2186_vm15 }
 0x194   : > { %v5963_v0 = vmul.f32 %v5317_v2, %v5821_v29  ;;  %v5967_v57 = vmul.f32 %v5334_v39, %v5823_v55  ;;  %v5970_v35 = vadd.f32 %v5862_v56, %v3591_v17  ;;  %2756 = vst.msk [vmem:[#allocation2 + $0xa8] sm:$0xff] %vm2733_vm12, %v2724_v15  ;;  %v5973_v7 = vcombine.low %v2107_v12, %v2109_v63  ;;  %v4713_v56 = vld [vmem:[%s6541_s4 + $0x3] ss:$0 sm:$0xff]  ;;  %vm6086_vm5 = vmand %vm6059_vm7, %vm2232_vm3 }
 0x195   : > { %v3236_v32 = vld [vmem:[#allocation2 + $0x80] sm:$0xff]  ;;  %v2616_v62 = vrot.slane %v5941_v53, %v4864_v6  ;;  %v5977_v23 = vcombine.low %v2074_v28, %v2073_v61  ;;  %4643 = vrcp.f32 %v1675_v5  ;;  %v2727_v29 = vsel %vm5951_vm2, %v2607_v54, 0.0  ;;  %vm6290_vm3 = vmand %vm6059_vm7, %vm2197_vm6 }
 0x196   : > { %v3246_v50 = vld [vmem:[#allocation2 + $0x79] sm:$0xff]  ;;  %v3247_v13 = vld [vmem:[#allocation2 + $0x81] sm:$0xff]  ;;  %v3243_v55 = vmul.f32 %v5453_v24, %v3236_v32  ;;  %v3343_v46 = vmul.f32 %v4713_v56, %v3236_v32  ;;  %v2575_v44 = vrot.slane %v5943_v43, %v4864_v6  ;;  %v2590_v21 = vrot.slane %v2075_v8, %v4864_v6  ;;  %2759 = vst.msk [vmem:[#allocation2 + $0xc0] sm:$0xff] %vm2733_vm12, %v2727_v29 }
 0x197   : > { %v3257_v17 = vld [vmem:[#allocation2 + $0x7a] sm:$0xff]  ;;  %v5995_v60 = vmul.f32 %v5529_v38, %v3246_v50  ;;  %v3254_v51 = vmul.f32 %v5529_v38, %v3247_v13  ;;  %v3258_v25 = vld [vmem:[#allocation2 + $0x82] sm:$0xff]  ;;  %v3353_v54 = vmul.f32 %v5317_v2, %v3246_v50  ;;  %v2151_v11 = vcombine.high %v5958_v41, %v5958_v41 }
 0x198   : > { %v3245_v12 = vadd.f32 %v3243_v55, %v5627_v48  ;;  %v6003_v22 = vmul.f32 %v5542_v33, %v3257_v17  ;;  %v3345_v19 = vadd.f32 %v3343_v46, %v5625_v18  ;;  %v3354_v26 = vmul.f32 %v5317_v2, %v3247_v13  ;;  %v4714_v48 = vld [vmem:[%s6541_s4] ss:$0 sm:$0xff] }
 0x199   : > { %v3355_v61 = vadd.f32 %v3353_v54, %v5833_v27  ;;  %v3444_v28 = vmul.f32 %v4714_v48, %v3236_v32  ;;  %v3454_v40 = vmul.f32 %v5988_v52, %v3246_v50  ;;  %v3455_v18 = vmul.f32 %v5988_v52, %v3247_v13 }
 0x19a   : > { %v3369_v20 = vld [vmem:[#allocation2 + $0x90] sm:$0xff]  ;;  %v6019_v2 = vmul.f32 %v5542_v33, %v3258_v25  ;;  %v3356_v15 = vadd.f32 %v3354_v26, %v3345_v19  ;;  %v3364_v8 = vmul.f32 %v5334_v39, %v3257_v17  ;;  %v3365_v5 = vmul.f32 %v5334_v39, %v3258_v25 }
 0x19b   : > { %v3380_v63 = vld [vmem:[#allocation2 + $0x91] sm:$0xff]  ;;  %v6023_v27 = vadd.f32 %v3254_v51, %v3245_v12  ;;  %v3456_v55 = vadd.f32 %v3454_v40, %v5819_v37  ;;  %v3457_v46 = vadd.f32 %v3455_v18, %v3444_v28  ;;  %v3465_v32 = vmul.f32 %v6010_v3, %v3257_v17  ;;  %v3503_v39 = vld [vmem:[#allocation2 + $0xa8] sm:$0xff]  ;;  %v6041_v51 = vld [vmem:[%s6541_s4 + $0x3] ss:$0 sm:$0xff] }
 0x19c   : > { %v6025_v29 = vld [vmem:[#allocation2 + $0x92] sm:$0xff]  ;;  %v6029_v50 = vadd.f32 %v3364_v8, %v3355_v61  ;;  %v6032_v13 = vmul.f32 %v5453_v24, %v3369_v20  ;;  %v6035_v54 = vmul.f32 %v5529_v38, %v3380_v63  ;;  %v3466_v19 = vmul.f32 %v6010_v3, %v3258_v25  ;;  %v4715_v25 = vld [vmem:[%s6541_s4 + $0x1] ss:$0 sm:$0xff]  ;;  %v4717_v40 = vld [vmem:[%s6541_s4 + $0x5] ss:$0 sm:$0xff] }
 0x19d   : > { %v3467_v24 = vadd.f32 %v3465_v32, %v3456_v55  ;;  %v3476_v17 = vmul.f32 %v4713_v56, %v3369_v20  ;;  %v3577_v12 = vmul.f32 %v5815_v58, %v3369_v20  ;;  %v3588_v26 = vmul.f32 %v4715_v25, %v3380_v63  ;;  %v4716_v56 = vld [vmem:[%s6541_s4 + $0x4] ss:$0 sm:$0xff]  ;;  %v4718_v32 = vld [vmem:[%s6541_s4 + $0x2] ss:$0 sm:$0xff] }
 0x19e   : > { %v3367_v48 = vadd.f32 %v3365_v5, %v3356_v15  ;;  %v3468_v28 = vadd.f32 %v3466_v19, %v3457_v46  ;;  %v3487_v20 = vmul.f32 %v4716_v56, %v3380_v63  ;;  %v3498_v18 = vmul.f32 %v4717_v40, %v6025_v29 }
 0x19f   : > { %v4644_v8 = vpop.eup %4643  ;;  %v3478_v55 = vadd.f32 %v3476_v17, %v3467_v24  ;;  %v3590_v45 = vadd.f32 %v3588_v26, %v3577_v12  ;;  %v3599_v15 = vmul.f32 %v4718_v32, %v6025_v29  ;;  %v3610_v5 = vmul.f32 %v6041_v51, %v3503_v39  ;;  %v6656_v32 = vld [vmem:[#allocation11_spill] sm:$0xff] }
 0x1a0   : > { %v3479_v46 = vadd.f32 %v5854_v14, %v3468_v28  ;;  %v2623_v63 = vrot.slane %v5973_v7, %v4864_v6  ;;  %v2582_v19 = vrot.slane %v5977_v23, %v4864_v6  ;;  %v2726_v24 = vsel %vm6047_vm1, %v2590_v21, 0.0  ;;  %v3637_v28 = vld [vmem:[#allocation2 + $0xc0] sm:$0xff] }
 0x1a1   : > { %v3489_v12 = vadd.f32 %v3487_v20, %v3478_v55  ;;  %v3601_v25 = vadd.f32 %v3599_v15, %v3590_v45  ;;  %2758 = vst.msk [vmem:[#allocation2 + $0xb8] sm:$0x3] %vm2736_vm4, %v2726_v24  ;;  %v2672_v14 = vrot.slane %v2151_v11, %v4864_v6  ;;  %v1744_v7 = vmul.f32 %v4644_v8, %v5719_v36  ;;  %v6139_v55 = vld [vmem:[%s6543_s6] ss:$0 sm:$0xff]  ;;  %v6657_v15 = vld [vmem:[#allocation8_spill] sm:$0xff] }
 0x1a2   : > { %v6094_v23 = vadd.f32 %v5836_v9, %v3367_v48  ;;  %v3510_v21 = vmul.f32 %v5741_v42, %v3503_v39  ;;  %v2624_v37 = vcombine.low %v2616_v62, %v2623_v63  ;;  %v2583_v26 = vcombine.low %v2575_v44, %v2582_v19  ;;  %v6658_v63 = vld [vmem:[#allocation9_spill] sm:$0xff]  ;;  %v6660_v24 = vld [vmem:[#allocation12_spill] sm:$0xff] }
 0x1a3   : > { %v3490_v56 = vadd.f32 %v5963_v0, %v3479_v46  ;;  %v3500_v20 = vadd.f32 %v3498_v18, %v3489_v12  ;;  %v2732_v36 = vsel %vm6086_vm5, %v2672_v14, 0.0  ;;  %v2110_v11 = vcombine.high %v1744_v7, %v1744_v7  ;;  %v6164_v12 = vld [vmem:[%s6541_s4 + $0x4] ss:$0 sm:$0xff] }
 0x1a4   : > { %v6107_v9 = vmul.f32 %v5815_v58, %v3503_v39  ;;  %v2725_v48 = vsel %vm5897_vm9, %v2583_v26, 0.0  ;;  %2764 = vst.msk [vmem:[#allocation2 + $0xe8] sm:$0x3] %vm2736_vm4, %v2732_v36  ;;  %v2117_v53 = vrot.slane %v1744_v7, %v4864_v6  ;;  %v2728_v43 = vsel %vm5922_vm11, %v2624_v37, 0.0  ;;  %v6661_v7 = vld [vmem:[#allocation10_spill] sm:$0xff]  ;;  %v6662_v26 = vld [vmem:[#allocation5_spill] sm:$0xff] }
 0x1a5   : > { %v3612_v62 = vadd.f32 %v3610_v5, %v3601_v25  ;;  %2757 = vst.msk [vmem:[#allocation2 + $0xb0] sm:$0xff] %vm2733_vm12, %v2725_v48  ;;  %v6117_v0 = vrot.slane %v2110_v11, %v4864_v6  ;;  %2760 = vst.msk [vmem:[#allocation2 + $0xc8] sm:$0xff] %vm2733_vm12, %v2728_v43  ;;  %v6125_v16 = vmul.f32 %v5741_v42, %v3637_v28  ;;  %v1676_v44 = vadd.f32 1.0, %v5876_v30  ;;  %v6655_v30 = vld [vmem:[#allocation15_spill] sm:$0xff]  ;;  %v6175_v37 = vld [vmem:[%s6541_s4 + $0x5] ss:$0 sm:$0xff] }
 0x1a6   : > { %v2125_v39 = vcombine.high %v2117_v53, %v2117_v53  ;;  %v2631_v40 = vrot.slane %v2117_v53, %v4864_v6  ;;  %v2864_v18 = vadd.f32 %v5780_v31, %v5838_v1  ;;  %v2865_v8 = vadd.f32 %v5783_v47, %v5786_v34 }
 0x1a7   : > { %v6133_v59 = vadd.f32 %v3510_v21, %v3500_v20  ;;  %v3501_v49 = vadd.f32 %v5967_v57, %v3490_v56  ;;  %v2998_v45 = vadd.f32 %v6655_v30, %v5801_v10  ;;  %v3008_v5 = vmul.f32 %v6657_v15, %v6656_v32  ;;  %v6659_v10 = vld [vmem:[#allocation18_spill] sm:$0xff] }
 0x1a8   : > { %v6146_v31 = vcombine.low %v2125_v39, %v6117_v0  ;;  %v2729_v1 = vsel %vm2259_vm8, %v2631_v40, 0.0  ;;  %v2873_v34 = vmul.f32 %v6657_v15, %v2864_v18  ;;  %v2874_v47 = vmul.f32 %v6657_v15, %v2865_v8 }
 0x1a9   : > { %2761 = vst.msk [vmem:[#allocation2 + $0xd0] sm:$0x3] %vm2736_vm4, %v2729_v1  ;;  %v3007_v57 = vmul.f32 %v6657_v15, %v2998_v45  ;;  %v6153_v46 = vadd.f32 %v6139_v55, %v3008_v5  ;;  %v3132_v19 = vadd.f32 %v6659_v10, %v6658_v63  ;;  %v6159_v17 = vadd.f32 %v6139_v55, %v6660_v24 }
 0x1aa   : > { %v3744_v25 = vmul.f32 %v6041_v51, %v3637_v28  ;;  %4645 = vrcp.f32 %v1676_v44  ;;  %v6168_v14 = vadd.f32 %v6139_v55, %v2873_v34  ;;  %v3255_v21 = vadd.f32 %v5995_v60, %v6661_v7 }
 0x1ab   : > { %v6182_v28 = vmul.f32 -1.442695, %v6153_v46  ;;  %v6185_v20 = vmul.f32 -1.442695, %v6159_v17  ;;  %v6188_v48 = vadd.f32 %v6139_v55, %v2874_v47  ;;  %v6192_v43 = vadd.f32 %v6139_v55, %v3007_v57 }
 0x1ac   : > { %v3504_v36 = vld [vmem:[#allocation2 + $0xb0] sm:$0xff]  ;;  %v4303_v53 = vmul.f32 -1.442695, %v6168_v14  ;;  %v6195_v44 = vmul.f32 %v6657_v15, %v3132_v19  ;;  %v6199_v18 = vadd.f32 %v6003_v22, %v3255_v21  ;;  %v6203_v8 = vadd.f32 %v6019_v2, %v6023_v27  ;;  %v3638_v63 = vld [vmem:[#allocation2 + $0xc8] sm:$0xff] }
 0x1ad   : > { %v3514_v11 = vld [vmem:[#allocation2 + $0xa9] sm:$0xff]  ;;  %v3515_v60 = vld [vmem:[#allocation2 + $0xb1] sm:$0xff]  ;;  %v3611_v40 = vmul.f32 %v6041_v51, %v3504_v36  ;;  %v6207_v30 = vadd.f32 %v6032_v13, %v6029_v50  ;;  %v3511_v45 = vmul.f32 %v5741_v42, %v3504_v36  ;;  %v3712_v47 = vmul.f32 %v5815_v58, %v3504_v36  ;;  %v3648_v10 = vld [vmem:[#allocation2 + $0xc1] sm:$0xff] }
 0x1ae   : > { %v3525_v39 = vld [vmem:[#allocation2 + $0xaa] sm:$0xff]  ;;  %v6211_v32 = vmul.f32 %v5529_v38, %v3514_v11  ;;  %v6214_v5 = vmul.f32 %v5529_v38, %v3515_v60  ;;  %v3526_v1 = vld [vmem:[#allocation2 + $0xb2] sm:$0xff]  ;;  %v3621_v22 = vmul.f32 %v6164_v12, %v3514_v11  ;;  %v3622_v27 = vmul.f32 %v6164_v12, %v3515_v60  ;;  %v3659_v36 = vld [vmem:[#allocation2 + $0xc2] sm:$0xff] }
 0x1af   : > { %v6218_v34 = vmul.f32 %v5542_v33, %v3525_v39  ;;  %v3613_v2 = vadd.f32 %v3611_v40, %v5970_v35  ;;  %v3632_v50 = vmul.f32 %v6175_v37, %v3525_v39  ;;  %v3722_v57 = vmul.f32 %v5988_v52, %v3514_v11 }
 0x1b0   : > { %v3623_v13 = vadd.f32 %v3621_v22, %v3612_v62  ;;  %v3723_v38 = vmul.f32 %v5988_v52, %v3515_v60  ;;  %v6227_v19 = vmul.f32 %v5542_v33, %v3526_v1  ;;  %v3633_v7 = vmul.f32 %v6175_v37, %v3526_v1  ;;  %v3649_v21 = vld [vmem:[#allocation2 + $0xc9] sm:$0xff] }
 0x1b1   : > { %v3624_v24 = vadd.f32 %v3622_v27, %v3613_v2  ;;  %v3733_v35 = vmul.f32 %v6010_v3, %v3525_v39  ;;  %v3724_v62 = vadd.f32 %v3722_v57, %v6107_v9  ;;  %v3734_v58 = vmul.f32 %v6010_v3, %v3526_v1  ;;  %v3660_v11 = vld [vmem:[#allocation2 + $0xca] sm:$0xff] }
 0x1b2   : > { %v3634_v40 = vadd.f32 %v3632_v50, %v3623_v13  ;;  %v3725_v22 = vadd.f32 %v3723_v38, %v3712_v47  ;;  %v6233_v52 = vadd.f32 %v3511_v45, %v3501_v49  ;;  %v3645_v33 = vmul.f32 %v5741_v42, %v3638_v63  ;;  %v6663_v47 = vld [vmem:[#allocation6_spill] sm:$0xff] }
 0x1b3   : > { %v3635_v60 = vadd.f32 %v3633_v7, %v3624_v24  ;;  %v3655_v2 = vmul.f32 %v6662_v26, %v3648_v10  ;;  %v3735_v56 = vadd.f32 %v3733_v35, %v3724_v62  ;;  %v3656_v50 = vmul.f32 %v6662_v26, %v3649_v21  ;;  %v6664_v7 = vld [vmem:[#allocation7_spill] sm:$0xff] }
 0x1b4   : > { %v4646_v27 = vpop.eup %4645  ;;  %v3646_v39 = vadd.f32 %v6125_v16, %v3634_v40  ;;  %v3736_v13 = vadd.f32 %v3734_v58, %v3725_v22  ;;  %v6240_v57 = vmul.f32 %v6663_v47, %v3659_v36  ;;  %v3667_v3 = vmul.f32 %v6663_v47, %v3660_v11 }
 0x1b5   : > { %v3647_v9 = vadd.f32 %v3645_v33, %v3635_v60  ;;  %v3745_v49 = vmul.f32 %v6041_v51, %v3638_v63  ;;  %v3746_v45 = vadd.f32 %v3744_v25, %v3735_v56  ;;  %v3755_v1 = vmul.f32 %v6164_v12, %v3648_v10 }
 0x1b6   : > { %v6246_v38 = vmul.f32 %v6164_v12, %v3649_v21  ;;  %v6249_v24 = vmul.f32 %v6175_v37, %v3659_v36  ;;  %v1745_v35 = vmul.f32 %v4646_v27, %v6664_v7  ;;  %4647 = vpow2.f32 %v4303_v53 }
 0x1b7   : > { %v3658_v16 = vadd.f32 %v3656_v50, %v3647_v9  ;;  %v4304_v40 = vmul.f32 -1.442695, %v6188_v48  ;;  %v6253_v62 = vadd.f32 %v3655_v2, %v3646_v39  ;;  %v6255_v22 = vadd.f32 %v3745_v49, %v3736_v13  ;;  %v6670_v9 = vld [vmem:[#allocation14_spill] sm:$0xff] }
 0x1b8   : > { %v4316_v51 = vmul.f32 -1.442695, %v6192_v43  ;;  %4649 = vpow2.f32 %v6182_v28  ;;  %v6260_v12 = vmul.f32 %v6175_v37, %v3660_v11  ;;  %v2127_v25 = vcombine.high %v1745_v35, %v1745_v35 }
 0x1b9   : > { %v2134_v56 = vrot.slane %v1745_v35, %v4864_v6  ;;  %4651 = vpow2.f32 %v4304_v40  ;;  %v6263_v63 = vadd.f32 %v3667_v3, %v3658_v16  ;;  %v6265_v53 = vadd.f32 %v3755_v1, %v3746_v45 }
 0x1ba   : > { %4653 = vpow2.f32 %v4316_v51  ;;  %v6269_v10 = vadd.f32 %v6139_v55, %v6195_v44  ;;  %v2141_v21 = vrot.slane %v2127_v25, %v4864_v6  ;;  %v6665_v37 = vcombine.high %v6117_v0, %v6117_v0  ;;  %v6666_v0 = vld [vmem:[#allocation16_spill] sm:$0xff] }
 0x1bb   : > { %v2142_v58 = vcombine.high %v2134_v56, %v2134_v56  ;;  %4655 = vpow2.f32 %v6185_v20  ;;  %v3275_v11 = vmul.f32 %v6657_v15, %v6199_v18  ;;  %v3276_v60 = vmul.f32 %v6657_v15, %v6203_v8  ;;  %v4719_v8 = vld [vmem:[%s6541_s4 + $0x8] ss:$0 sm:$0xff] }
 0x1bc   : > { %v2633_v28 = vcombine.low %v6665_v37, %v2134_v56  ;;  %v4329_v36 = vmul.f32 -1.442695, %v6269_v10  ;;  %v3389_v44 = vadd.f32 %v6035_v54, %v6207_v30  ;;  %v2143_v33 = vcombine.high %v2141_v21, %v2141_v21 }
 0x1bd   : > { %v2649_v27 = vcombine.low %v2142_v58, %v2141_v21  ;;  %v3390_v39 = vadd.f32 %v6666_v0, %v6094_v23  ;;  %v6295_v18 = vadd.f32 %v6139_v55, %v3275_v11  ;;  %v6298_v54 = vadd.f32 %v6139_v55, %v3276_v60 }
 0x1be   : > { %v2647_v2 = vrot.slane %v2633_v28, %v4864_v6  ;;  %4657 = vpow2.f32 %v4329_v36  ;;  %v3398_v23 = vmul.f32 %v4719_v8, %v6025_v29  ;;  %v6669_v4 = vrot.slane %v6146_v31, %v4864_v6 }
 0x1bf   : > { %v2650_v50 = vcombine.low %v2143_v33, %v5958_v41  ;;  %v2657_v13 = vrot.slane %v2649_v27, %v4864_v6  ;;  %v3401_v3 = vadd.f32 %v6670_v9, %v3390_v39  ;;  %v4342_v49 = vmul.f32 -1.442695, %v6295_v18 }
 0x1c0   : > { %v2648_v30 = vcombine.low %v6669_v4, %v2647_v2  ;;  %v4343_v45 = vmul.f32 -1.442695, %v6298_v54  ;;  %v3400_v1 = vadd.f32 %v3398_v23, %v3389_v44  ;;  %v3523_v16 = vadd.f32 %v6211_v32, %v6133_v59  ;;  %v4648_v7 = vpop.eup %4647 }
 0x1c1   : > { %v2664_v29 = vrot.slane %v2650_v50, %v4864_v6  ;;  %v3410_v41 = vmul.f32 %v6657_v15, %v3401_v3  ;;  %v3524_v35 = vadd.f32 %v6214_v5, %v6233_v52  ;;  %v2890_v51 = vadd.f32 1.0, %v4648_v7 }
 0x1c2   : > { %v2730_v31 = vsel %vm6290_vm3, %v2648_v30, 0.0  ;;  %v4650_v40 = vpop.eup %4649  ;;  %4659 = vpow2.f32 %v4342_v49  ;;  %v3409_v25 = vmul.f32 %v6657_v15, %v3400_v1  ;;  %v3534_v59 = vadd.f32 %v6218_v34, %v3523_v16 }
 0x1c3   : > { %2762 = vst.msk [vmem:[#allocation2 + $0xd8] sm:$0xff] %vm2733_vm12, %v2730_v31  ;;  %v4652_v32 = vpop.eup %4651  ;;  %v2665_v56 = vcombine.low %v2657_v13, %v2664_v29  ;;  %v3025_v6 = vadd.f32 1.0, %v4650_v40  ;;  %4661 = vpow2.f32 %v4343_v45  ;;  %v6324_v21 = vadd.f32 %v6139_v55, %v3410_v41 }
 0x1c4   : > { %v4654_v58 = vpop.eup %4653  ;;  %v2891_v37 = vadd.f32 1.0, %v4652_v32  ;;  %4663 = vrcp.f32 %v2890_v51  ;;  %v6327_v5 = vadd.f32 %v6139_v55, %v3409_v25  ;;  %v3535_v52 = vadd.f32 %v6227_v19, %v3524_v35 }
 0x1c5   : > { %v4656_v28 = vpop.eup %4655  ;;  %v2731_v36 = vsel %vm6059_vm7, %v2665_v56, 0.0  ;;  %v3024_v34 = vadd.f32 1.0, %v4654_v58  ;;  %4665 = vrcp.f32 %v3025_v6  ;;  %v4356_v11 = vmul.f32 -1.442695, %v6324_v21 }
 0x1c6   : > { %2763 = vst.msk [vmem:[#allocation2 + $0xe0] sm:$0xff] %vm2733_vm12, %v2731_v36  ;;  %4667 = vrcp.f32 %v2891_v37  ;;  %v3159_v60 = vadd.f32 1.0, %v4656_v28  ;;  %v4355_v44 = vmul.f32 -1.442695, %v6327_v5  ;;  %v3543_v33 = vmul.f32 %v6657_v15, %v3534_v59 }
 0x1c7   : > { %4669 = vrcp.f32 %v3024_v34  ;;  %v3544_v2 = vmul.f32 %v6657_v15, %v3535_v52  ;;  %v3668_v19 = vadd.f32 %v6240_v57, %v6253_v62  ;;  %v3678_v61 = vmul.f32 %v6657_v15, %v6263_v63 }
 0x1c8   : > { %v4658_v27 = vpop.eup %4657  ;;  %v3758_v0 = vadd.f32 %v6246_v38, %v6255_v22  ;;  %v3768_v39 = vadd.f32 %v6249_v24, %v6265_v53  ;;  %4671 = vrcp.f32 %v3159_v60  ;;  %v6346_v20 = vadd.f32 %v6139_v55, %v3543_v33 }
 0x1c9   : > { %v3158_v23 = vadd.f32 1.0, %v4658_v27  ;;  %4673 = vpow2.f32 %v4355_v44  ;;  %v6349_v4 = vadd.f32 %v6139_v55, %v3544_v2  ;;  %v3677_v57 = vmul.f32 %v6657_v15, %v3668_v19 }
 0x1ca   : > { %v3771_v8 = vld [vmem:[#allocation2 + $0xd8] sm:$0xff]  ;;  %4675 = vpow2.f32 %v4356_v11  ;;  %v4368_v38 = vmul.f32 -1.442695, %v6346_v20  ;;  %v6355_v22 = vadd.f32 %v6139_v55, %v3678_v61  ;;  %v3769_v30 = vadd.f32 %v6260_v12, %v3758_v0 }
 0x1cb   : > { %v3778_v62 = vmul.f32 %v5741_v42, %v3771_v8  ;;  %4677 = vrcp.f32 %v3158_v23  ;;  %v4369_v24 = vmul.f32 -1.442695, %v6349_v4  ;;  %v6359_v63 = vadd.f32 %v6139_v55, %v3677_v57 }
 0x1cc   : > { %v4660_v53 = vpop.eup %4659  ;;  %4679 = vpow2.f32 %v4368_v38  ;;  %v4382_v12 = vmul.f32 -1.442695, %v6355_v22 }
 0x1cd   : > { %v3780_v50 = vadd.f32 %v3778_v62, %v3768_v39  ;;  %v4662_v13 = vpop.eup %4661  ;;  %v3772_v9 = vld [vmem:[#allocation2 + $0xe0] sm:$0xff]  ;;  %v3292_v45 = vadd.f32 1.0, %v4660_v53  ;;  %4681 = vpow2.f32 %v4369_v24  ;;  %v4381_v1 = vmul.f32 -1.442695, %v6359_v63 }
 0x1ce   : > { %v3782_v3 = vld [vmem:[#allocation2 + $0xd9] sm:$0xff]  ;;  %v3783_v49 = vld [vmem:[#allocation2 + $0xe1] sm:$0xff]  ;;  %v4664_v16 = vpop.eup %4663  ;;  %v3779_v7 = vmul.f32 %v5741_v42, %v3772_v9  ;;  %v3293_v35 = vadd.f32 1.0, %v4662_v13 }
 0x1cf   : > { %v3789_v29 = vmul.f32 %v6662_v26, %v3782_v3  ;;  %v3793_v31 = vld [vmem:[#allocation2 + $0xda] sm:$0xff]  ;;  %v3794_v41 = vld [vmem:[#allocation2 + $0xe2] sm:$0xff]  ;;  %v4666_v40 = vpop.eup %4665  ;;  %v3790_v51 = vmul.f32 %v6662_v26, %v3783_v49  ;;  %v2896_v59 = vmul.f32 %v4664_v16, %v6168_v14  ;;  %4683 = vrcp.f32 %v3292_v45 }
 0x1d0   : > { %v3800_v25 = vmul.f32 %v6663_v47, %v3793_v31  ;;  %v4668_v32 = vpop.eup %4667  ;;  %v3031_v56 = vmul.f32 %v4666_v40, %v6153_v46  ;;  %4685 = vrcp.f32 %v3293_v35  ;;  %v3781_v42 = vadd.f32 %v3779_v7, %v3769_v30 }
 0x1d1   : > { %v3791_v6 = vadd.f32 %v3789_v29, %v3780_v50  ;;  %v4670_v58 = vpop.eup %4669  ;;  %v2897_v37 = vmul.f32 %v4668_v32, %v6188_v48  ;;  %2898 = vst.msk [vmem:[#allocation3] sm:$0xff] %vm2733_vm12, %v2896_v59  ;;  %4687 = vpow2.f32 %v4381_v1  ;;  %v3801_v52 = vmul.f32 %v6663_v47, %v3794_v41 }
 0x1d2   : > { %v4672_v26 = vpop.eup %4671  ;;  %v3030_v28 = vmul.f32 %v4670_v58, %v6192_v43  ;;  %3033 = vst.msk [vmem:[#allocation3 + $0x18] sm:$0xff] %vm2733_vm12, %v3031_v56  ;;  %4689 = vpow2.f32 %v4382_v12  ;;  %v3792_v14 = vadd.f32 %v3790_v51, %v3781_v42 }
 0x1d3   : > { %v3802_v36 = vadd.f32 %v3800_v25, %v3791_v6  ;;  %v4674_v46 = vpop.eup %4673  ;;  %2899 = vst.msk [vmem:[#allocation3 + $0x8] sm:$0xff] %vm2733_vm12, %v2897_v37  ;;  %v3165_v34 = vmul.f32 %v4672_v26, %v6159_v17 }
 0x1d4   : > { %v4676_v11 = vpop.eup %4675  ;;  %3032 = vst.msk [vmem:[#allocation3 + $0x10] sm:$0xff] %vm2733_vm12, %v3030_v28  ;;  %v3426_v48 = vadd.f32 1.0, %v4674_v46  ;;  %v3803_v60 = vadd.f32 %v3801_v52, %v3792_v14 }
 0x1d5   : > { %v3811_v47 = vmul.f32 %v6657_v15, %v3802_v36  ;;  %v4678_v44 = vpop.eup %4677  ;;  %3167 = vst.msk [vmem:[#allocation3 + $0x28] sm:$0xff] %vm2733_vm12, %v3165_v34  ;;  %v3427_v43 = vadd.f32 1.0, %v4676_v11 }
 0x1d6   : > { %v4680_v33 = vpop.eup %4679  ;;  %v3164_v2 = vmul.f32 %v4678_v44, %v6269_v10  ;;  %4691 = vrcp.f32 %v3426_v48  ;;  %v3812_v19 = vmul.f32 %v6657_v15, %v3803_v60  ;;  %v6425_v44 = vld [vmem:[%s6545_s8] ss:$0 sm:$0xff] }
 0x1d7   : > { %v6383_v61 = vadd.f32 %v6139_v55, %v3811_v47  ;;  %v4682_v17 = vpop.eup %4681  ;;  %4693 = vrcp.f32 %v3427_v43  ;;  %v3560_v27 = vadd.f32 1.0, %v4680_v33  ;;  %v6435_v33 = vld [vmem:[%s6546_s9] ss:$0 sm:$0xff] }
 0x1d8   : > { %v3838_v0 = vld [vmem:[#allocation3] sm:$0xff]  ;;  %3166 = vst.msk [vmem:[#allocation3 + $0x20] sm:$0xff] %vm2733_vm12, %v3164_v2  ;;  %v3561_v39 = vadd.f32 1.0, %v4682_v17  ;;  %v6387_v8 = vadd.f32 %v6139_v55, %v3812_v19 }
 0x1d9   : > { %v4394_v23 = vmul.f32 -1.442695, %v6383_v61  ;;  %v4684_v57 = vpop.eup %4683  ;;  %v3841_v10 = vld [vmem:[#allocation3 + $0x18] sm:$0xff]  ;;  %4695 = vrcp.f32 %v3560_v27 }
 0x1da   : > { %v4686_v62 = vpop.eup %4685  ;;  %v3839_v15 = vld [vmem:[#allocation3 + $0x8] sm:$0xff]  ;;  %v3298_v38 = vmul.f32 %v4684_v57, %v6295_v18  ;;  %4697 = vrcp.f32 %v3561_v39  ;;  %v4395_v24 = vmul.f32 -1.442695, %v6387_v8  ;;  %v4061_v39 = vld [vmem:[%s6430_s28] sm:$0xff] }
 0x1db   : > { %v4688_v53 = vpop.eup %4687  ;;  %v3854_v30 = vpack.c.bf16 %v3839_v15, %v3838_v0  ;;  %v3840_v50 = vld [vmem:[#allocation3 + $0x10] sm:$0xff]  ;;  %v3299_v13 = vmul.f32 %v4686_v62, %v6298_v54  ;;  %4699 = vpow2.f32 %v4394_v23 }
 0x1dc   : > { %v4690_v55 = vpop.eup %4689  ;;  %v3855_v9 = vpack.c.bf16 %v3841_v10, %v3840_v50  ;;  %3300 = vst.msk [vmem:[#allocation3 + $0x30] sm:$0xff] %vm2733_vm12, %v3298_v38  ;;  %v3694_v3 = vadd.f32 1.0, %v4688_v53  ;;  %4701 = vpow2.f32 %v4395_v24  ;;  %v3843_v49 = vld [vmem:[#allocation3 + $0x28] sm:$0xff]  ;;  %v4062_v24 = vld [vmem:[%s6430_s28 + $0x8] sm:$0xff] }
 0x1dd   : > { %4471 = vmatprep.mubr.msk.bf16.mxu1 %vm2733_vm12, %v3854_v30  ;;  %3301 = vst.msk [vmem:[#allocation3 + $0x38] sm:$0xff] %vm2733_vm12, %v3299_v13  ;;  %v3695_v18 = vadd.f32 1.0, %v4690_v55  ;;  %v4064_v10 = vld [vmem:[%s6430_s28 + $0x18] sm:$0xff] }
 0x1de   : > { %4472 = vmatmul.mubr.msk.bf16.vlgmr.msra.gmra.mrb[0].mxu1 %vm2733_vm12, %v3855_v9  ;;  %4703 = vrcp.f32 %v3694_v3 }
 0x1df   : > { %v3842_v45 = vld [vmem:[#allocation3 + $0x20] sm:$0xff]  ;;  %4705 = vrcp.f32 %v3695_v18 }
 0x1e0   : > { %v4692_v1 = vpop.eup %4691  ;;  %v3856_v54 = vpack.c.bf16 %v3843_v49, %v3842_v45  ;;  %v4067_v49 = vld [vmem:[%s6430_s28 + $0x30] sm:$0xff] }
 0x1e1   : > { %v4694_v16 = vpop.eup %4693  ;;  %v3432_v7 = vmul.f32 %v4692_v1, %v6327_v5 }
 0x1e2   : > { %4475 = vmatprep.mubr.msk.bf16.mxu1 %vm2733_vm12, %v3856_v54  ;;  %v3433_v29 = vmul.f32 %v4694_v16, %v6324_v21  ;;  %v4065_v54 = vld [vmem:[%s6430_s28 + $0x20] sm:$0xff] }
 0x1e3   : > { %v4696_v31 = vpop.eup %4695  ;;  %v3844_v41 = vld [vmem:[#allocation3 + $0x30] sm:$0xff]  ;;  %3434 = vst.msk [vmem:[#allocation3 + $0x40] sm:$0xff] %vm2733_vm12, %v3432_v7 }
 0x1e4   : > { %v4698_v35 = vpop.eup %4697  ;;  %v3845_v12 = vld [vmem:[#allocation3 + $0x38] sm:$0xff]  ;;  %3435 = vst.msk [vmem:[#allocation3 + $0x48] sm:$0xff] %vm2733_vm12, %v3433_v29  ;;  %v3566_v40 = vmul.f32 %v4696_v31, %v6346_v20  ;;  %v4068_v31 = vld [vmem:[%s6430_s28 + $0x38] sm:$0xff] }
 0x1e5   : > { %v4700_v51 = vpop.eup %4699  ;;  %v3857_v25 = vpack.c.bf16 %v3845_v12, %v3844_v41  ;;  %v3567_v59 = vmul.f32 %v4698_v35, %v6349_v4 }
 0x1e6   : > { %v4702_v32 = vpop.eup %4701  ;;  %3568 = vst.msk [vmem:[#allocation3 + $0x50] sm:$0xff] %vm2733_vm12, %v3566_v40  ;;  %v3828_v5 = vadd.f32 1.0, %v4700_v51  ;;  %v4066_v40 = vld [vmem:[%s6430_s28 + $0x28] sm:$0xff] }
 0x1e7   : > { %4476 = vmatmul.mubr.msk.bf16.gmra.mrb[4].mxu1 %vm2733_vm12, %v3857_v25  ;;  %3569 = vst.msk [vmem:[#allocation3 + $0x58] sm:$0xff] %vm2733_vm12, %v3567_v59  ;;  %v3829_v21 = vadd.f32 1.0, %v4702_v32 }
 0x1e8   : > { %v4704_v56 = vpop.eup %4703  ;;  %4707 = vrcp.f32 %v3828_v5 }
 0x1e9   : > { %v4706_v42 = vpop.eup %4705  ;;  %v3700_v6 = vmul.f32 %v4704_v56, %v6359_v63  ;;  %4709 = vrcp.f32 %v3829_v21 }
 0x1ea   : > { %v3701_v20 = vmul.f32 %v4706_v42, %v6355_v22  ;;  %v3846_v58 = vld [vmem:[#allocation3 + $0x40] sm:$0xff] }
 0x1eb   : > { %v3847_v37 = vld [vmem:[#allocation3 + $0x48] sm:$0xff]  ;;  %3702 = vst.msk [vmem:[#allocation3 + $0x60] sm:$0xff] %vm2733_vm12, %v3700_v6  ;;  %v4071_v42 = vld [vmem:[%s6430_s28 + $0x50] sm:$0xff] }
 0x1ec   : > { %v3858_v4 = vpack.c.bf16 %v3847_v37, %v3846_v58  ;;  %3703 = vst.msk [vmem:[#allocation3 + $0x68] sm:$0xff] %vm2733_vm12, %v3701_v20  ;;  %v4069_v37 = vld [vmem:[%s6430_s28 + $0x40] sm:$0xff] }
 0x1ed   : > { %v3848_v52 = vld [vmem:[#allocation3 + $0x50] sm:$0xff] }
 0x1ee   : > { %4479 = vmatprep.mubr.msk.bf16.mxu1 %vm2733_vm12, %v3858_v4  ;;  %v3849_v26 = vld [vmem:[#allocation3 + $0x58] sm:$0xff] }
 0x1ef   : > { %v3859_v28 = vpack.c.bf16 %v3849_v26, %v3848_v52 }
 0x1f1   : > { %4480 = vmatmul.mubr.msk.bf16.gmra.mrb[8].mxu1 %vm2733_vm12, %v3859_v28  ;;  %v4072_v28 = vld [vmem:[%s6430_s28 + $0x58] sm:$0xff] }
 0x1f2   : > { %v4708_v63 = vpop.eup %4707  ;;  %v3850_v22 = vld [vmem:[#allocation3 + $0x60] sm:$0xff] }
 0x1f3   : > { %v4710_v14 = vpop.eup %4709  ;;  %v3851_v36 = vld [vmem:[#allocation3 + $0x68] sm:$0xff]  ;;  %v3834_v46 = vmul.f32 %v4708_v63, %v6383_v61  ;;  %v4063_v61 = vld [vmem:[%s6430_s28 + $0x10] sm:$0xff] }
 0x1f4   : > { %v3860_v34 = vpack.c.bf16 %v3851_v36, %v3850_v22  ;;  %v3835_v11 = vmul.f32 %v4710_v14, %v6387_v8  ;;  %v4070_v36 = vld [vmem:[%s6430_s28 + $0x48] sm:$0xff] }
 0x1f5   : > { %3836 = vst.msk [vmem:[#allocation3 + $0x70] sm:$0xff] %vm2733_vm12, %v3834_v46 }
 0x1f6   : > { %4483 = vmatprep.mubr.msk.bf16.mxu1 %vm2733_vm12, %v3860_v34  ;;  %3837 = vst.msk [vmem:[#allocation3 + $0x78] sm:$0xff] %vm2733_vm12, %v3835_v11 }
 0x1fc   : > { %v3852_v48 = vld [vmem:[#allocation3 + $0x70] sm:$0xff] }
 0x1fd   : > { %v3853_v60 = vld [vmem:[#allocation3 + $0x78] sm:$0xff] }
 0x1fe   : > { %v3861_v47 = vpack.c.bf16 %v3853_v60, %v3852_v48 }
 0x200   : > { %4484 = vmatmul.mubr.msk.bf16.gmra.mrb[12].mxu1 %vm2733_vm12, %v3861_v47 }
 0x2b1   : > { %v4473_v43 = vpop.f32.mrb[0].mxu1 }
 0x2b2   : > { %v4024_v2 = vmul.f32 %v4473_v43, %v6425_v44  ;;  %v3952_v19 = vpop.f32.mrb[1].mxu1 }
 0x2b3   : > { %v4022_v17 = vmul.f32 %v6425_v44, %v3952_v19  ;;  %v4474_v27 = vpop.f32.mrb[2].mxu1 }
 0x2b4   : > { %v4047_v0 = vadd.f32 %v6435_v33, %v4024_v2  ;;  %v4025_v8 = vmul.f32 %v4474_v27, %v6425_v44  ;;  %v3955_v23 = vpop.f32.mrb[3].mxu1  ;;  %v4075_v2 = vld [vmem:[%s6430_s28 + $0x70] sm:$0xff]  ;;  %v4073_v27 = vld [vmem:[%s6430_s28 + $0x60] sm:$0xff] }
 0x2b5   : > { %v4045_v57 = vadd.f32 %v6435_v33, %v4022_v17  ;;  %v4023_v62 = vmul.f32 %v6425_v44, %v3955_v23  ;;  %v4076_v23 = vld [vmem:[%s6430_s28 + $0x78] sm:$0xff] }
 0x2b6   : > { %v4079_v15 = vadd.f32 %v4063_v61, %v4047_v0  ;;  %v4048_v38 = vadd.f32 %v6435_v33, %v4025_v8 }
 0x2b7   : > { %v4077_v53 = vadd.f32 %v4061_v39, %v4045_v57  ;;  %v4046_v30 = vadd.f32 %v6435_v33, %v4023_v62 }
 0x2b8   : > { %4095 = vst.msk [vmem:[%s6446_s12 + $0x10] sm:$0xff] %vm1361_vm0, %v4079_v15  ;;  %v4080_v50 = vadd.f32 %v4064_v10, %v4048_v38  ;;  %v4074_v15 = vld [vmem:[%s6430_s28 + $0x68] sm:$0xff] }
 0x2b9   : > { %4093 = vst.msk [vmem:[%s6446_s12] sm:$0xff] %vm1361_vm0, %v4077_v53  ;;  %v4078_v13 = vadd.f32 %v4062_v24, %v4046_v30 }
 0x2ba   : > { %4096 = vst.msk [vmem:[%s6446_s12 + $0x18] sm:$0xff] %vm1361_vm0, %v4080_v50  ;;  %v4477_v55 = vpop.f32.mrb[4].mxu1 }
 0x2bb   : > { %4094 = vst.msk [vmem:[%s6446_s12 + $0x8] sm:$0xff] %vm1361_vm0, %v4078_v13  ;;  %v4028_v9 = vmul.f32 %v4477_v55, %v6425_v44  ;;  %v3968_v3 = vpop.f32.mrb[5].mxu1 }
 0x2bc   : > { %v4026_v18 = vmul.f32 %v6425_v44, %v3968_v3  ;;  %v4478_v45 = vpop.f32.mrb[6].mxu1 }
 0x2bd   : > { %v4051_v1 = vadd.f32 %v6435_v33, %v4028_v9  ;;  %v4029_v16 = vmul.f32 %v4478_v45, %v6425_v44  ;;  %v3971_v7 = vpop.f32.mrb[7].mxu1 }
 0x2be   : > { %v4049_v29 = vadd.f32 %v6435_v33, %v4026_v18  ;;  %v4027_v41 = vmul.f32 %v6425_v44, %v3971_v7 }
 0x2bf   : > { %v4083_v35 = vadd.f32 %v4067_v49, %v4051_v1  ;;  %v4052_v12 = vadd.f32 %v6435_v33, %v4029_v16 }
 0x2c0   : > { %v4081_v51 = vadd.f32 %v4065_v54, %v4049_v29  ;;  %v4050_v25 = vadd.f32 %v6435_v33, %v4027_v41 }
 0x2c1   : > { %4099 = vst.msk [vmem:[%s6446_s12 + $0x30] sm:$0xff] %vm1361_vm0, %v4083_v35  ;;  %v4084_v59 = vadd.f32 %v4068_v31, %v4052_v12 }
 0x2c2   : > { %4097 = vst.msk [vmem:[%s6446_s12 + $0x20] sm:$0xff] %vm1361_vm0, %v4081_v51  ;;  %v4082_v32 = vadd.f32 %v4066_v40, %v4050_v25 }
 0x2c3   : > { %4100 = vst.msk [vmem:[%s6446_s12 + $0x38] sm:$0xff] %vm1361_vm0, %v4084_v59 }
 0x2c4   : > { %4098 = vst.msk [vmem:[%s6446_s12 + $0x28] sm:$0xff] %vm1361_vm0, %v4082_v32  ;;  %v4481_v5 = vpop.f32.mrb[8].mxu1 }
 0x2c5   : > { %v4032_v21 = vmul.f32 %v4481_v5, %v6425_v44  ;;  %v3984_v56 = vpop.f32.mrb[9].mxu1 }
 0x2c6   : > { %v4030_v6 = vmul.f32 %v6425_v44, %v3984_v56  ;;  %v4482_v20 = vpop.f32.mrb[10].mxu1 }
 0x2c7   : > { %v4055_v58 = vadd.f32 %v6435_v33, %v4032_v21  ;;  %v4033_v4 = vmul.f32 %v4482_v20, %v6425_v44  ;;  %v3987_v52 = vpop.f32.mrb[11].mxu1 }
 0x2c8   : > { %v4053_v26 = vadd.f32 %v6435_v33, %v4030_v6  ;;  %v4031_v63 = vmul.f32 %v6425_v44, %v3987_v52 }
 0x2c9   : > { %v4087_v14 = vadd.f32 %v4071_v42, %v4055_v58  ;;  %v4056_v22 = vadd.f32 %v6435_v33, %v4033_v4 }
 0x2ca   : > { %v4085_v46 = vadd.f32 %v4069_v37, %v4053_v26  ;;  %v4054_v34 = vadd.f32 %v6435_v33, %v4031_v63 }
 0x2cb   : > { %4103 = vst.msk [vmem:[%s6446_s12 + $0x50] sm:$0xff] %vm1361_vm0, %v4087_v14  ;;  %v4088_v11 = vadd.f32 %v4072_v28, %v4056_v22 }
 0x2cc   : > { %4101 = vst.msk [vmem:[%s6446_s12 + $0x40] sm:$0xff] %vm1361_vm0, %v4085_v46  ;;  %v4086_v48 = vadd.f32 %v4070_v36, %v4054_v34 }
 0x2cd   : > { %4104 = vst.msk [vmem:[%s6446_s12 + $0x58] sm:$0xff] %vm1361_vm0, %v4088_v11 }
 0x2ce   : > { %4102 = vst.msk [vmem:[%s6446_s12 + $0x48] sm:$0xff] %vm1361_vm0, %v4086_v48 }
 0x2d3   : > { %v4485_v60 = vpop.f32.mrb[12].mxu1 }
 0x2d4   : > { %v4036_v47 = vmul.f32 %v4485_v60, %v6425_v44  ;;  %v4000_v43 = vpop.f32.mrb[13].mxu1 }
 0x2d5   : > { %v4034_v19 = vmul.f32 %v6425_v44, %v4000_v43  ;;  %v4486_v61 = vpop.f32.mrb[14].mxu1 }
 0x2d6   : > { %v4059_v17 = vadd.f32 %v6435_v33, %v4036_v47  ;;  %v4037_v0 = vmul.f32 %v4486_v61, %v6425_v44  ;;  %v4003_v39 = vpop.f32.mrb[15].mxu1 }
 0x2d7   : > { %v4057_v8 = vadd.f32 %v6435_v33, %v4034_v19  ;;  %v4035_v57 = vmul.f32 %v6425_v44, %v4003_v39 }
 0x2d8   : > { %v4091_v10 = vadd.f32 %v4075_v2, %v4059_v17  ;;  %v4060_v62 = vadd.f32 %v6435_v33, %v4037_v0 }
 0x2d9   : > { %v4089_v38 = vadd.f32 %v4073_v27, %v4057_v8  ;;  %v4058_v24 = vadd.f32 %v6435_v33, %v4035_v57 }
 0x2da   : > { %4107 = vst.msk [vmem:[%s6446_s12 + $0x70] sm:$0xff] %vm1361_vm0, %v4091_v10  ;;  %v4092_v53 = vadd.f32 %v4076_v23, %v4060_v62 }
 0x2db   : > { %4105 = vst.msk [vmem:[%s6446_s12 + $0x60] sm:$0xff] %vm1361_vm0, %v4089_v38  ;;  %v4090_v30 = vadd.f32 %v4074_v15, %v4058_v24 }
 0x2dc   : > { %4108 = vst.msk [vmem:[%s6446_s12 + $0x78] sm:$0xff] %vm1361_vm0, %v4092_v53 }
 0x2dd   : > { %4106 = vst.msk [vmem:[%s6446_s12 + $0x68] sm:$0xff] %vm1361_vm0, %v4090_v30 }
 0x2de PF: > { %s21_s21 = sadd.s32 1, %s4758_s21   ;;  %s6671_s17 = smov %s4750_s19 }
 0x2df   : > { %p18_p8 = scmp.ge.s32.totalorder %s21_s21, 6   ;;  %s6672_s18 = smov %s4754_s20 }
 0x2e0   : > { %s6673_s19 = smov %s6676_s22  ;;  %s6674_s20 = smov %s6680_s23 }
 0x2e1   :  { %20 = sbr.rel (!%p18_p8) target bundleno = 3 (0x3), region = 106 }

</bundles_post_ra>
